<compile_context>
chip_gen: v6e
topology: v6e:2x2x1
jax: 0.10.0
libtpu: 0.0.40
codegen_flags: <defaults>
</compile_context>

<pallas_src>
import jax
import jax.numpy as jnp
from jax import lax
from jax.experimental import pallas as pl
from jax.experimental.pallas import tpu as pltpu
import numpy as np

VMEM_SPEC = pl.BlockSpec(memory_space=pltpu.MemorySpace.VMEM)


# ---------------------------------------------------------------------------
# Fused kernel: embedding -> n_layers x (bi-LSTM) -> linear
# ---------------------------------------------------------------------------
def _make_fused_kernel(T, B):
    def kernel(ids_ref, table_ref, wih0_ref, wihf_ref, wihb_ref,
               whh_ref, bias_ref, wout_ref, bout_ref, out_ref):
        N = T * B
        n_layers = whh_ref.shape[0]
        H = whh_ref.shape[2]
        H4 = 4 * H
        V = table_ref.shape[0]

        # ---------------- embedding (one-hot @ table; toy vocab) -------------
        # Note: out-of-range ids silently map to a zero embedding (nn.Embedding
        # would raise) -- acceptable for in-range inputs.
        ids = ids_ref[...]                                        # (N, 1) int32
        iota = lax.broadcasted_iota(jnp.int32, (N, V), 1)
        onehot = (iota == ids).astype(jnp.float32)
        x = jnp.dot(onehot, table_ref[...],
                    preferred_element_type=jnp.float32)           # (N, E)

        # Lane mask selecting the tanh ("g") gate block [2H, 3H) of the 4H gates.
        lane = lax.broadcasted_iota(jnp.int32, (B, H4), 1)
        g_mask = (lane >= 2 * H) & (lane < 3 * H)

        def cell(gates, c):
            # Whole-vreg transcendentals (EUP) + one select (VPU), then static
            # lane slices to split the 4 gate blocks (PyTorch order i,f,g,o).
            act = jnp.where(g_mask, jnp.tanh(gates), jax.nn.sigmoid(gates))
            i = act[:, 0 * H:1 * H]
            f = act[:, 1 * H:2 * H]
            g = act[:, 2 * H:3 * H]
            o = act[:, 3 * H:4 * H]
            c_new = f * c + i * g
            h_new = o * jnp.tanh(c_new)
            return h_new, c_new

        def bi_lstm(xw_f, xw_b, whh_f, whh_b):
            # xw_*: (N, 4H) hoisted input projections (bias already folded in).
            hf = jnp.zeros((B, H), jnp.float32)
            cf = jnp.zeros((B, H), jnp.float32)
            hb = jnp.zeros((B, H), jnp.float32)
            cb = jnp.zeros((B, H), jnp.float32)
            hf_steps = [None] * T
            hb_steps = [None] * T
            for t in range(T):        # fully unrolled; fwd/bwd interleaved for ILP
                tb = T - 1 - t
                gates_f = xw_f[t * B:(t + 1) * B, :] + jnp.dot(
                    hf, whh_f, preferred_element_type=jnp.float32)
                gates_b = xw_b[tb * B:(tb + 1) * B, :] + jnp.dot(
                    hb, whh_b, preferred_element_type=jnp.float32)
                hf, cf = cell(gates_f, cf)
                hb, cb = cell(gates_b, cb)
                hf_steps[t] = hf
                hb_steps[tb] = hb
            return (jnp.concatenate(hf_steps, axis=0),      # (N, H), time-major
                    jnp.concatenate(hb_steps, axis=0))      # (N, H), time-major

        # ---------------- layer 0 (input projection hoisted) -----------------
        xw_f = jnp.dot(x, wih0_ref[0], preferred_element_type=jnp.float32) \
            + bias_ref[0, 0]
        xw_b = jnp.dot(x, wih0_ref[1], preferred_element_type=jnp.float32) \
            + bias_ref[0, 1]
        hf_all, hb_all = bi_lstm(xw_f, xw_b, whh_ref[0, 0], whh_ref[0, 1])

        # ---------------- stacked layers --------------------------------------
        # Next-layer input concat([fwd, bwd]) is never materialized: the split
        # W_ih halves consume the fwd / bwd streams directly.
        for l in range(1, n_layers):
            xw = []
            for d in range(2):
                xw.append(jnp.dot(hf_all, wihf_ref[l - 1, d],
                                  preferred_element_type=jnp.float32)
                          + jnp.dot(hb_all, wihb_ref[l - 1, d],
                                    preferred_element_type=jnp.float32)
                          + bias_ref[l, d])
            hf_all, hb_all = bi_lstm(xw[0], xw[1], whh_ref[l, 0], whh_ref[l, 1])

        # ---------------- final linear (fused, lane-dense padded output) -----
        out_ref[...] = (jnp.dot(hf_all, wout_ref[0],
                                preferred_element_type=jnp.float32)
                        + jnp.dot(hb_all, wout_ref[1],
                                  preferred_element_type=jnp.float32)
                        + bout_ref[...])

    return kernel


# ---------------------------------------------------------------------------
# Wrappers
# ---------------------------------------------------------------------------
def pack_params(params, out_pad=128):
    """Pack logical (PyTorch-layout-derived) params into kernel operands."""
    layers = params["lstm_layers"]
    L = len(layers)
    H = layers[0]["fwd"][1].shape[0]                              # w_hh_t: (H, 4H)

    wih0 = jnp.stack([layers[0][d][0] for d in ("fwd", "bwd")])   # (2, E, 4H)
    whh = jnp.stack([jnp.stack([layers[l][d][1] for d in ("fwd", "bwd")])
                     for l in range(L)])                          # (L, 2, H, 4H)
    bias = jnp.stack([jnp.stack([layers[l][d][2] for d in ("fwd", "bwd")])
                      for l in range(L)])                         # (L, 2, 1, 4H)
    if L > 1:
        wihf = jnp.stack([jnp.stack([layers[l][d][0][:H] for d in ("fwd", "bwd")])
                          for l in range(1, L)])                  # (L-1, 2, H, 4H)
        wihb = jnp.stack([jnp.stack([layers[l][d][0][H:] for d in ("fwd", "bwd")])
                          for l in range(1, L)])                  # (L-1, 2, H, 4H)
    else:
        wihf = jnp.zeros((1, 2, H, 4 * H), jnp.float32)
        wihb = jnp.zeros((1, 2, H, 4 * H), jnp.float32)

    w_out_t = params["w_out_t"]                                   # (2H, O)
    b_out = params["b_out"]                                       # (1, O)
    O = w_out_t.shape[1]

    def pad_out(w):                                               # (H, O) -> (H, out_pad)
        return jnp.zeros((H, out_pad), jnp.float32).at[:, :O].set(w)

    wout = jnp.stack([pad_out(w_out_t[:H]), pad_out(w_out_t[H:])])  # (2, H, OP)
    bout = jnp.zeros((1, out_pad), jnp.float32).at[:, :O].set(b_out)

    return {"table": params["embedding"], "wih0": wih0, "wihf": wihf,
            "wihb": wihb, "whh": whh, "bias": bias, "wout": wout,
            "bout": bout, "out_dim": O}


def lstm_tagger_forward(packed, text):
    """text: (T, B) int32 -> (T, B, output_dim) f32 (single fused pallas_call)."""
    T, B = text.shape
    N = T * B
    OP = packed["bout"].shape[-1]
    kernel = _make_fused_kernel(T, B)
    out = pl.pallas_call(
        kernel,
        out_shape=jax.ShapeDtypeStruct((N, OP), jnp.float32),
        in_specs=[VMEM_SPEC] * 9,
        out_specs=VMEM_SPEC,
    )(text.reshape(N, 1).astype(jnp.int32),
      packed["table"], packed["wih0"], packed["wihf"], packed["wihb"],
      packed["whh"], packed["bias"], packed["wout"], packed["bout"])
    return out.reshape(T, B, OP)[:, :, :packed["out_dim"]]


# ---------------------------------------------------------------------------
# Pure-JAX reference (numerical sanity check against the logical params)
# ---------------------------------------------------------------------------
def _ref_lstm_dir(x, w_ih_t, w_hh_t, b):
    T, B, _ = x.shape
    H = w_hh_t.shape[0]

    def step(carry, x_t):
        h, c = carry
        gates = x_t @ w_ih_t + h @ w_hh_t + b
        i = jax.nn.sigmoid(gates[:, :H])
        f = jax.nn.sigmoid(gates[:, H:2 * H])
        g = jnp.tanh(gates[:, 2 * H:3 * H])
        o = jax.nn.sigmoid(gates[:, 3 * H:])
        c = f * c + i * g
        h = o * jnp.tanh(c)
        return (h, c), h

    (_, _), hs = lax.scan(step, (jnp.zeros((B, H)), jnp.zeros((B, H))), x)
    return hs


def ref_forward(params, text):
    T, B = text.shape
    x = jnp.take(params["embedding"], text.reshape(-1), axis=0).reshape(T, B, -1)
    for layer in params["lstm_layers"]:
        fwd = _ref_lstm_dir(x, *layer["fwd"])
        bwd = _ref_lstm_dir(x[::-1], *layer["bwd"])[::-1]
        x = jnp.concatenate([fwd, bwd], axis=-1)
    out = x.reshape(T * B, -1) @ params["w_out_t"] + params["b_out"]
    return out.reshape(T, B, -1)


# ---------------------------------------------------------------------------
# Deterministic parameter construction (synthetic; mirrors nn.Module shapes)
# ---------------------------------------------------------------------------
def make_params(key, vocab, emb_dim, hidden, out_dim, n_layers, pad_idx):
    keys = jax.random.split(key, 4 + 8 * n_layers)
    ki = iter(keys)

    table = jax.random.normal(next(ki), (vocab, emb_dim), jnp.float32) * 0.1
    table = table.at[pad_idx].set(0.0)                            # padding_idx row = 0

    scale = 1.0 / np.sqrt(hidden)

    def uni(k, shape):
        return jax.random.uniform(k, shape, jnp.float32, -scale, scale)

    layers = []
    for l in range(n_layers):
        in_size = emb_dim if l == 0 else 2 * hidden               # bidirectional stacking
        dirs = {}
        for d in ("fwd", "bwd"):
            w_ih = uni(next(ki), (4 * hidden, in_size))           # PyTorch: (4H, in)
            w_hh = uni(next(ki), (4 * hidden, hidden))            # PyTorch: (4H, H)
            b_ih = uni(next(ki), (4 * hidden,))
            b_hh = uni(next(ki), (4 * hidden,))
            dirs[d] = (w_ih.T, w_hh.T, (b_ih + b_hh).reshape(1, -1))
        layers.append(dirs)

    w_out = uni(next(ki), (out_dim, 2 * hidden))                  # nn.Linear: (O, 2H)
    b_out = uni(next(ki), (out_dim,))

    return {
        "embedding": table,
        "lstm_layers": layers,
        "w_out_t": w_out.T,
        "b_out": b_out.reshape(1, -1),
    }


# ---------------------------------------------------------------------------
if __name__ == "__main__":
    # Small shapes consistent with the module's forward (4H = 128 lanes).
    VOCAB, EMB, HID, OUT = 128, 32, 32, 8
    N_LAYERS, PAD_IDX = 2, 0
    SEQ, BATCH = 8, 2

    key = jax.random.PRNGKey(0)
    k_par, k_txt = jax.random.split(key)
    params = make_params(k_par, VOCAB, EMB, HID, OUT, N_LAYERS, PAD_IDX)
    packed = pack_params(params)
    text = jax.random.randint(k_txt, (SEQ, BATCH), 0, VOCAB, dtype=jnp.int32)

    out = jax.block_until_ready(lstm_tagger_forward(packed, text))
    ref = jax.block_until_ready(ref_forward(params, text))

    assert out.shape == (SEQ, BATCH, OUT), out.shape
    np.testing.assert_allclose(np.asarray(out), np.asarray(ref), rtol=2e-3, atol=2e-3)
    print("KERNEL_OK")
</pallas_src>

<mosaic_0001>
module attributes {stable_mosaic.version = 11 : i64} {
  func.func @kernel(%arg0: memref<16x1xi32, #tpu.memory_space<vmem>>, %arg1: memref<128x32xf32, #tpu.memory_space<vmem>>, %arg2: memref<2x32x128xf32, #tpu.memory_space<vmem>>, %arg3: memref<1x2x32x128xf32, #tpu.memory_space<vmem>>, %arg4: memref<1x2x32x128xf32, #tpu.memory_space<vmem>>, %arg5: memref<2x2x32x128xf32, #tpu.memory_space<vmem>>, %arg6: memref<2x2x1x128xf32, #tpu.memory_space<vmem>>, %arg7: memref<2x32x128xf32, #tpu.memory_space<vmem>>, %arg8: memref<1x128xf32, #tpu.memory_space<vmem>>, %arg9: memref<16x128xf32, #tpu.memory_space<vmem>>) attributes {dimension_semantics = [], scalar_prefetch = 0 : i64, scratch_operands = 0 : i64, tpu.core_type = #tpu.core_type<tc>} {
    %c0 = arith.constant 0 : index
    %c0_0 = arith.constant 0 : index
    %0 = vector.load %arg0[%c0, %c0_0] : memref<16x1xi32, #tpu.memory_space<vmem>>, vector<16x1xi32>
    %1 = tpu.iota {dimensions = array<i32: 1>} : vector<16x128xi32>
    %2 = vector.broadcast %0 : vector<16x1xi32> to vector<16x128xi32>
    %3 = arith.cmpi eq, %1, %2 : vector<16x128xi32>
    %4 = arith.extui %3 : vector<16x128xi1> to vector<16x128xi32>
    %5 = arith.sitofp %4 : vector<16x128xi32> to vector<16x128xf32>
    %c0_1 = arith.constant 0 : index
    %c0_2 = arith.constant 0 : index
    %6 = vector.load %arg1[%c0_1, %c0_2] : memref<128x32xf32, #tpu.memory_space<vmem>>, vector<128x32xf32>
    %cst = arith.constant dense<0.000000e+00> : vector<16x32xf32>
    %7 = tpu.matmul %5, %6, %cst {dimension_numbers = #tpu.dot_dimension_numbers<[1], [0], [0], [1], [0, 0, 1, 1], [], []>} : vector<16x128xf32>, vector<128x32xf32>, vector<16x32xf32> -> vector<16x32xf32>
    %8 = tpu.iota {dimensions = array<i32: 1>} : vector<2x128xi32>
    %c64_i32 = arith.constant 64 : i32
    %9 = vector.broadcast %c64_i32 : i32 to vector<2x128xi32>
    %10 = arith.cmpi sge, %8, %9 : vector<2x128xi32>
    %c96_i32 = arith.constant 96 : i32
    %11 = vector.broadcast %c96_i32 : i32 to vector<2x128xi32>
    %12 = arith.cmpi slt, %8, %11 : vector<2x128xi32>
    %13 = arith.andi %10, %12 : vector<2x128xi1>
    %c0_3 = arith.constant 0 : index
    %c0_4 = arith.constant 0 : index
    %c0_5 = arith.constant 0 : index
    %14 = vector.load %arg2[%c0_3, %c0_4, %c0_5] : memref<2x32x128xf32, #tpu.memory_space<vmem>>, vector<1x32x128xf32>
    %15 = vector.shape_cast %14 : vector<1x32x128xf32> to vector<32x128xf32>
    %cst_6 = arith.constant dense<0.000000e+00> : vector<16x128xf32>
    %16 = tpu.matmul %7, %15, %cst_6 {dimension_numbers = #tpu.dot_dimension_numbers<[1], [0], [0], [1], [0, 0, 1, 1], [], []>} : vector<16x32xf32>, vector<32x128xf32>, vector<16x128xf32> -> vector<16x128xf32>
    %c0_7 = arith.constant 0 : index
    %c0_8 = arith.constant 0 : index
    %c0_9 = arith.constant 0 : index
    %c0_10 = arith.constant 0 : index
    %17 = vector.load %arg6[%c0_7, %c0_8, %c0_9, %c0_10] : memref<2x2x1x128xf32, #tpu.memory_space<vmem>>, vector<1x1x1x128xf32>
    %18 = vector.shape_cast %17 : vector<1x1x1x128xf32> to vector<1x128xf32>
    %19 = vector.broadcast %18 : vector<1x128xf32> to vector<16x128xf32>
    %20 = arith.addf %16, %19 : vector<16x128xf32>
    %c1 = arith.constant 1 : index
    %c0_11 = arith.constant 0 : index
    %c0_12 = arith.constant 0 : index
    %21 = vector.load %arg2[%c1, %c0_11, %c0_12] : memref<2x32x128xf32, #tpu.memory_space<vmem>>, vector<1x32x128xf32>
    %22 = vector.shape_cast %21 : vector<1x32x128xf32> to vector<32x128xf32>
    %cst_13 = arith.constant dense<0.000000e+00> : vector<16x128xf32>
    %23 = tpu.matmul %7, %22, %cst_13 {dimension_numbers = #tpu.dot_dimension_numbers<[1], [0], [0], [1], [0, 0, 1, 1], [], []>} : vector<16x32xf32>, vector<32x128xf32>, vector<16x128xf32> -> vector<16x128xf32>
    %c0_14 = arith.constant 0 : index
    %c1_15 = arith.constant 1 : index
    %c0_16 = arith.constant 0 : index
    %c0_17 = arith.constant 0 : index
    %24 = vector.load %arg6[%c0_14, %c1_15, %c0_16, %c0_17] : memref<2x2x1x128xf32, #tpu.memory_space<vmem>>, vector<1x1x1x128xf32>
    %25 = vector.shape_cast %24 : vector<1x1x1x128xf32> to vector<1x128xf32>
    %26 = vector.broadcast %25 : vector<1x128xf32> to vector<16x128xf32>
    %27 = arith.addf %23, %26 : vector<16x128xf32>
    %c0_18 = arith.constant 0 : index
    %c0_19 = arith.constant 0 : index
    %c0_20 = arith.constant 0 : index
    %c0_21 = arith.constant 0 : index
    %28 = vector.load %arg5[%c0_18, %c0_19, %c0_20, %c0_21] : memref<2x2x32x128xf32, #tpu.memory_space<vmem>>, vector<1x1x32x128xf32>
    %29 = vector.shape_cast %28 : vector<1x1x32x128xf32> to vector<32x128xf32>
    %c0_22 = arith.constant 0 : index
    %c1_23 = arith.constant 1 : index
    %c0_24 = arith.constant 0 : index
    %c0_25 = arith.constant 0 : index
    %30 = vector.load %arg5[%c0_22, %c1_23, %c0_24, %c0_25] : memref<2x2x32x128xf32, #tpu.memory_space<vmem>>, vector<1x1x32x128xf32>
    %31 = vector.shape_cast %30 : vector<1x1x32x128xf32> to vector<32x128xf32>
    %cst_26 = arith.constant 0.000000e+00 : f32
    %32 = vector.broadcast %cst_26 : f32 to vector<2x32xf32>
    %cst_27 = arith.constant 0.000000e+00 : f32
    %33 = vector.broadcast %cst_27 : f32 to vector<2x32xf32>
    %cst_28 = arith.constant 0.000000e+00 : f32
    %34 = vector.broadcast %cst_28 : f32 to vector<2x32xf32>
    %cst_29 = arith.constant 0.000000e+00 : f32
    %35 = vector.broadcast %cst_29 : f32 to vector<2x32xf32>
    %36 = vector.extract_strided_slice %20 {offsets = [0, 0], sizes = [2, 128], strides = [1, 1]} : vector<16x128xf32> to vector<2x128xf32>
    %cst_30 = arith.constant dense<0.000000e+00> : vector<2x128xf32>
    %37 = tpu.matmul %32, %29, %cst_30 {dimension_numbers = #tpu.dot_dimension_numbers<[1], [0], [0], [1], [0, 0, 1, 1], [], []>} : vector<2x32xf32>, vector<32x128xf32>, vector<2x128xf32> -> vector<2x128xf32>
    %38 = arith.addf %36, %37 : vector<2x128xf32>
    %39 = vector.extract_strided_slice %27 {offsets = [14, 0], sizes = [2, 128], strides = [1, 1]} : vector<16x128xf32> to vector<2x128xf32>
    %cst_31 = arith.constant dense<0.000000e+00> : vector<2x128xf32>
    %40 = tpu.matmul %34, %31, %cst_31 {dimension_numbers = #tpu.dot_dimension_numbers<[1], [0], [0], [1], [0, 0, 1, 1], [], []>} : vector<2x32xf32>, vector<32x128xf32>, vector<2x128xf32> -> vector<2x128xf32>
    %41 = arith.addf %39, %40 : vector<2x128xf32>
    %42 = math.tanh %38 : vector<2x128xf32>
    %43 = arith.negf %38 : vector<2x128xf32>
    %44 = math.exp %43 : vector<2x128xf32>
    %cst_32 = arith.constant 1.000000e+00 : f32
    %45 = vector.broadcast %cst_32 : f32 to vector<2x128xf32>
    %46 = arith.addf %45, %44 : vector<2x128xf32>
    %47 = arith.divf %45, %46 : vector<2x128xf32>
    %48 = arith.select %13, %42, %47 : vector<2x128xi1>, vector<2x128xf32>
    %49 = vector.extract_strided_slice %48 {offsets = [0, 0], sizes = [2, 32], strides = [1, 1]} : vector<2x128xf32> to vector<2x32xf32>
    %50 = vector.extract_strided_slice %48 {offsets = [0, 32], sizes = [2, 32], strides = [1, 1]} : vector<2x128xf32> to vector<2x32xf32>
    %51 = vector.extract_strided_slice %48 {offsets = [0, 64], sizes = [2, 32], strides = [1, 1]} : vector<2x128xf32> to vector<2x32xf32>
    %52 = vector.extract_strided_slice %48 {offsets = [0, 96], sizes = [2, 32], strides = [1, 1]} : vector<2x128xf32> to vector<2x32xf32>
    %53 = arith.mulf %50, %33 : vector<2x32xf32>
    %54 = arith.mulf %49, %51 : vector<2x32xf32>
    %55 = arith.addf %53, %54 : vector<2x32xf32>
    %56 = math.tanh %55 : vector<2x32xf32>
    %57 = arith.mulf %52, %56 : vector<2x32xf32>
    %58 = math.tanh %41 : vector<2x128xf32>
    %59 = arith.negf %41 : vector<2x128xf32>
    %60 = math.exp %59 : vector<2x128xf32>
    %cst_33 = arith.constant 1.000000e+00 : f32
    %61 = vector.broadcast %cst_33 : f32 to vector<2x128xf32>
    %62 = arith.addf %61, %60 : vector<2x128xf32>
    %63 = arith.divf %61, %62 : vector<2x128xf32>
    %64 = arith.select %13, %58, %63 : vector<2x128xi1>, vector<2x128xf32>
    %65 = vector.extract_strided_slice %64 {offsets = [0, 0], sizes = [2, 32], strides = [1, 1]} : vector<2x128xf32> to vector<2x32xf32>
    %66 = vector.extract_strided_slice %64 {offsets = [0, 32], sizes = [2, 32], strides = [1, 1]} : vector<2x128xf32> to vector<2x32xf32>
    %67 = vector.extract_strided_slice %64 {offsets = [0, 64], sizes = [2, 32], strides = [1, 1]} : vector<2x128xf32> to vector<2x32xf32>
    %68 = vector.extract_strided_slice %64 {offsets = [0, 96], sizes = [2, 32], strides = [1, 1]} : vector<2x128xf32> to vector<2x32xf32>
    %69 = arith.mulf %66, %35 : vector<2x32xf32>
    %70 = arith.mulf %65, %67 : vector<2x32xf32>
    %71 = arith.addf %69, %70 : vector<2x32xf32>
    %72 = math.tanh %71 : vector<2x32xf32>
    %73 = arith.mulf %68, %72 : vector<2x32xf32>
    %74 = vector.extract_strided_slice %20 {offsets = [2, 0], sizes = [2, 128], strides = [1, 1]} : vector<16x128xf32> to vector<2x128xf32>
    %cst_34 = arith.constant dense<0.000000e+00> : vector<2x128xf32>
    %75 = tpu.matmul %57, %29, %cst_34 {dimension_numbers = #tpu.dot_dimension_numbers<[1], [0], [0], [1], [0, 0, 1, 1], [], []>} : vector<2x32xf32>, vector<32x128xf32>, vector<2x128xf32> -> vector<2x128xf32>
    %76 = arith.addf %74, %75 : vector<2x128xf32>
    %77 = vector.extract_strided_slice %27 {offsets = [12, 0], sizes = [2, 128], strides = [1, 1]} : vector<16x128xf32> to vector<2x128xf32>
    %cst_35 = arith.constant dense<0.000000e+00> : vector<2x128xf32>
    %78 = tpu.matmul %73, %31, %cst_35 {dimension_numbers = #tpu.dot_dimension_numbers<[1], [0], [0], [1], [0, 0, 1, 1], [], []>} : vector<2x32xf32>, vector<32x128xf32>, vector<2x128xf32> -> vector<2x128xf32>
    %79 = arith.addf %77, %78 : vector<2x128xf32>
    %80 = math.tanh %76 : vector<2x128xf32>
    %81 = arith.negf %76 : vector<2x128xf32>
    %82 = math.exp %81 : vector<2x128xf32>
    %cst_36 = arith.constant 1.000000e+00 : f32
    %83 = vector.broadcast %cst_36 : f32 to vector<2x128xf32>
    %84 = arith.addf %83, %82 : vector<2x128xf32>
    %85 = arith.divf %83, %84 : vector<2x128xf32>
    %86 = arith.select %13, %80, %85 : vector<2x128xi1>, vector<2x128xf32>
    %87 = vector.extract_strided_slice %86 {offsets = [0, 0], sizes = [2, 32], strides = [1, 1]} : vector<2x128xf32> to vector<2x32xf32>
    %88 = vector.extract_strided_slice %86 {offsets = [0, 32], sizes = [2, 32], strides = [1, 1]} : vector<2x128xf32> to vector<2x32xf32>
    %89 = vector.extract_strided_slice %86 {offsets = [0, 64], sizes = [2, 32], strides = [1, 1]} : vector<2x128xf32> to vector<2x32xf32>
    %90 = vector.extract_strided_slice %86 {offsets = [0, 96], sizes = [2, 32], strides = [1, 1]} : vector<2x128xf32> to vector<2x32xf32>
    %91 = arith.mulf %88, %55 : vector<2x32xf32>
    %92 = arith.mulf %87, %89 : vector<2x32xf32>
    %93 = arith.addf %91, %92 : vector<2x32xf32>
    %94 = math.tanh %93 : vector<2x32xf32>
    %95 = arith.mulf %90, %94 : vector<2x32xf32>
    %96 = math.tanh %79 : vector<2x128xf32>
    %97 = arith.negf %79 : vector<2x128xf32>
    %98 = math.exp %97 : vector<2x128xf32>
    %cst_37 = arith.constant 1.000000e+00 : f32
    %99 = vector.broadcast %cst_37 : f32 to vector<2x128xf32>
    %100 = arith.addf %99, %98 : vector<2x128xf32>
    %101 = arith.divf %99, %100 : vector<2x128xf32>
    %102 = arith.select %13, %96, %101 : vector<2x128xi1>, vector<2x128xf32>
    %103 = vector.extract_strided_slice %102 {offsets = [0, 0], sizes = [2, 32], strides = [1, 1]} : vector<2x128xf32> to vector<2x32xf32>
    %104 = vector.extract_strided_slice %102 {offsets = [0, 32], sizes = [2, 32], strides = [1, 1]} : vector<2x128xf32> to vector<2x32xf32>
    %105 = vector.extract_strided_slice %102 {offsets = [0, 64], sizes = [2, 32], strides = [1, 1]} : vector<2x128xf32> to vector<2x32xf32>
    %106 = vector.extract_strided_slice %102 {offsets = [0, 96], sizes = [2, 32], strides = [1, 1]} : vector<2x128xf32> to vector<2x32xf32>
    %107 = arith.mulf %104, %71 : vector<2x32xf32>
    %108 = arith.mulf %103, %105 : vector<2x32xf32>
    %109 = arith.addf %107, %108 : vector<2x32xf32>
    %110 = math.tanh %109 : vector<2x32xf32>
    %111 = arith.mulf %106, %110 : vector<2x32xf32>
    %112 = vector.extract_strided_slice %20 {offsets = [4, 0], sizes = [2, 128], strides = [1, 1]} : vector<16x128xf32> to vector<2x128xf32>
    %cst_38 = arith.constant dense<0.000000e+00> : vector<2x128xf32>
    %113 = tpu.matmul %95, %29, %cst_38 {dimension_numbers = #tpu.dot_dimension_numbers<[1], [0], [0], [1], [0, 0, 1, 1], [], []>} : vector<2x32xf32>, vector<32x128xf32>, vector<2x128xf32> -> vector<2x128xf32>
    %114 = arith.addf %112, %113 : vector<2x128xf32>
    %115 = vector.extract_strided_slice %27 {offsets = [10, 0], sizes = [2, 128], strides = [1, 1]} : vector<16x128xf32> to vector<2x128xf32>
    %cst_39 = arith.constant dense<0.000000e+00> : vector<2x128xf32>
    %116 = tpu.matmul %111, %31, %cst_39 {dimension_numbers = #tpu.dot_dimension_numbers<[1], [0], [0], [1], [0, 0, 1, 1], [], []>} : vector<2x32xf32>, vector<32x128xf32>, vector<2x128xf32> -> vector<2x128xf32>
    %117 = arith.addf %115, %116 : vector<2x128xf32>
    %118 = math.tanh %114 : vector<2x128xf32>
    %119 = arith.negf %114 : vector<2x128xf32>
    %120 = math.exp %119 : vector<2x128xf32>
    %cst_40 = arith.constant 1.000000e+00 : f32
    %121 = vector.broadcast %cst_40 : f32 to vector<2x128xf32>
    %122 = arith.addf %121, %120 : vector<2x128xf32>
    %123 = arith.divf %121, %122 : vector<2x128xf32>
    %124 = arith.select %13, %118, %123 : vector<2x128xi1>, vector<2x128xf32>
    %125 = vector.extract_strided_slice %124 {offsets = [0, 0], sizes = [2, 32], strides = [1, 1]} : vector<2x128xf32> to vector<2x32xf32>
    %126 = vector.extract_strided_slice %124 {offsets = [0, 32], sizes = [2, 32], strides = [1, 1]} : vector<2x128xf32> to vector<2x32xf32>
    %127 = vector.extract_strided_slice %124 {offsets = [0, 64], sizes = [2, 32], strides = [1, 1]} : vector<2x128xf32> to vector<2x32xf32>
    %128 = vector.extract_strided_slice %124 {offsets = [0, 96], sizes = [2, 32], strides = [1, 1]} : vector<2x128xf32> to vector<2x32xf32>
    %129 = arith.mulf %126, %93 : vector<2x32xf32>
    %130 = arith.mulf %125, %127 : vector<2x32xf32>
    %131 = arith.addf %129, %130 : vector<2x32xf32>
    %132 = math.tanh %131 : vector<2x32xf32>
    %133 = arith.mulf %128, %132 : vector<2x32xf32>
    %134 = math.tanh %117 : vector<2x128xf32>
    %135 = arith.negf %117 : vector<2x128xf32>
    %136 = math.exp %135 : vector<2x128xf32>
    %cst_41 = arith.constant 1.000000e+00 : f32
    %137 = vector.broadcast %cst_41 : f32 to vector<2x128xf32>
    %138 = arith.addf %137, %136 : vector<2x128xf32>
    %139 = arith.divf %137, %138 : vector<2x128xf32>
    %140 = arith.select %13, %134, %139 : vector<2x128xi1>, vector<2x128xf32>
    %141 = vector.extract_strided_slice %140 {offsets = [0, 0], sizes = [2, 32], strides = [1, 1]} : vector<2x128xf32> to vector<2x32xf32>
    %142 = vector.extract_strided_slice %140 {offsets = [0, 32], sizes = [2, 32], strides = [1, 1]} : vector<2x128xf32> to vector<2x32xf32>
    %143 = vector.extract_strided_slice %140 {offsets = [0, 64], sizes = [2, 32], strides = [1, 1]} : vector<2x128xf32> to vector<2x32xf32>
    %144 = vector.extract_strided_slice %140 {offsets = [0, 96], sizes = [2, 32], strides = [1, 1]} : vector<2x128xf32> to vector<2x32xf32>
    %145 = arith.mulf %142, %109 : vector<2x32xf32>
    %146 = arith.mulf %141, %143 : vector<2x32xf32>
    %147 = arith.addf %145, %146 : vector<2x32xf32>
    %148 = math.tanh %147 : vector<2x32xf32>
    %149 = arith.mulf %144, %148 : vector<2x32xf32>
    %150 = vector.extract_strided_slice %20 {offsets = [6, 0], sizes = [2, 128], strides = [1, 1]} : vector<16x128xf32> to vector<2x128xf32>
    %cst_42 = arith.constant dense<0.000000e+00> : vector<2x128xf32>
    %151 = tpu.matmul %133, %29, %cst_42 {dimension_numbers = #tpu.dot_dimension_numbers<[1], [0], [0], [1], [0, 0, 1, 1], [], []>} : vector<2x32xf32>, vector<32x128xf32>, vector<2x128xf32> -> vector<2x128xf32>
    %152 = arith.addf %150, %151 : vector<2x128xf32>
    %153 = vector.extract_strided_slice %27 {offsets = [8, 0], sizes = [2, 128], strides = [1, 1]} : vector<16x128xf32> to vector<2x128xf32>
    %cst_43 = arith.constant dense<0.000000e+00> : vector<2x128xf32>
    %154 = tpu.matmul %149, %31, %cst_43 {dimension_numbers = #tpu.dot_dimension_numbers<[1], [0], [0], [1], [0, 0, 1, 1], [], []>} : vector<2x32xf32>, vector<32x128xf32>, vector<2x128xf32> -> vector<2x128xf32>
    %155 = arith.addf %153, %154 : vector<2x128xf32>
    %156 = math.tanh %152 : vector<2x128xf32>
    %157 = arith.negf %152 : vector<2x128xf32>
    %158 = math.exp %157 : vector<2x128xf32>
    %cst_44 = arith.constant 1.000000e+00 : f32
    %159 = vector.broadcast %cst_44 : f32 to vector<2x128xf32>
    %160 = arith.addf %159, %158 : vector<2x128xf32>
    %161 = arith.divf %159, %160 : vector<2x128xf32>
    %162 = arith.select %13, %156, %161 : vector<2x128xi1>, vector<2x128xf32>
    %163 = vector.extract_strided_slice %162 {offsets = [0, 0], sizes = [2, 32], strides = [1, 1]} : vector<2x128xf32> to vector<2x32xf32>
    %164 = vector.extract_strided_slice %162 {offsets = [0, 32], sizes = [2, 32], strides = [1, 1]} : vector<2x128xf32> to vector<2x32xf32>
    %165 = vector.extract_strided_slice %162 {offsets = [0, 64], sizes = [2, 32], strides = [1, 1]} : vector<2x128xf32> to vector<2x32xf32>
    %166 = vector.extract_strided_slice %162 {offsets = [0, 96], sizes = [2, 32], strides = [1, 1]} : vector<2x128xf32> to vector<2x32xf32>
    %167 = arith.mulf %164, %131 : vector<2x32xf32>
    %168 = arith.mulf %163, %165 : vector<2x32xf32>
    %169 = arith.addf %167, %168 : vector<2x32xf32>
    %170 = math.tanh %169 : vector<2x32xf32>
    %171 = arith.mulf %166, %170 : vector<2x32xf32>
    %172 = math.tanh %155 : vector<2x128xf32>
    %173 = arith.negf %155 : vector<2x128xf32>
    %174 = math.exp %173 : vector<2x128xf32>
    %cst_45 = arith.constant 1.000000e+00 : f32
    %175 = vector.broadcast %cst_45 : f32 to vector<2x128xf32>
    %176 = arith.addf %175, %174 : vector<2x128xf32>
    %177 = arith.divf %175, %176 : vector<2x128xf32>
    %178 = arith.select %13, %172, %177 : vector<2x128xi1>, vector<2x128xf32>
    %179 = vector.extract_strided_slice %178 {offsets = [0, 0], sizes = [2, 32], strides = [1, 1]} : vector<2x128xf32> to vector<2x32xf32>
    %180 = vector.extract_strided_slice %178 {offsets = [0, 32], sizes = [2, 32], strides = [1, 1]} : vector<2x128xf32> to vector<2x32xf32>
    %181 = vector.extract_strided_slice %178 {offsets = [0, 64], sizes = [2, 32], strides = [1, 1]} : vector<2x128xf32> to vector<2x32xf32>
    %182 = vector.extract_strided_slice %178 {offsets = [0, 96], sizes = [2, 32], strides = [1, 1]} : vector<2x128xf32> to vector<2x32xf32>
    %183 = arith.mulf %180, %147 : vector<2x32xf32>
    %184 = arith.mulf %179, %181 : vector<2x32xf32>
    %185 = arith.addf %183, %184 : vector<2x32xf32>
    %186 = math.tanh %185 : vector<2x32xf32>
    %187 = arith.mulf %182, %186 : vector<2x32xf32>
    %188 = vector.extract_strided_slice %20 {offsets = [8, 0], sizes = [2, 128], strides = [1, 1]} : vector<16x128xf32> to vector<2x128xf32>
    %cst_46 = arith.constant dense<0.000000e+00> : vector<2x128xf32>
    %189 = tpu.matmul %171, %29, %cst_46 {dimension_numbers = #tpu.dot_dimension_numbers<[1], [0], [0], [1], [0, 0, 1, 1], [], []>} : vector<2x32xf32>, vector<32x128xf32>, vector<2x128xf32> -> vector<2x128xf32>
    %190 = arith.addf %188, %189 : vector<2x128xf32>
    %191 = vector.extract_strided_slice %27 {offsets = [6, 0], sizes = [2, 128], strides = [1, 1]} : vector<16x128xf32> to vector<2x128xf32>
    %cst_47 = arith.constant dense<0.000000e+00> : vector<2x128xf32>
    %192 = tpu.matmul %187, %31, %cst_47 {dimension_numbers = #tpu.dot_dimension_numbers<[1], [0], [0], [1], [0, 0, 1, 1], [], []>} : vector<2x32xf32>, vector<32x128xf32>, vector<2x128xf32> -> vector<2x128xf32>
    %193 = arith.addf %191, %192 : vector<2x128xf32>
    %194 = math.tanh %190 : vector<2x128xf32>
    %195 = arith.negf %190 : vector<2x128xf32>
    %196 = math.exp %195 : vector<2x128xf32>
    %cst_48 = arith.constant 1.000000e+00 : f32
    %197 = vector.broadcast %cst_48 : f32 to vector<2x128xf32>
    %198 = arith.addf %197, %196 : vector<2x128xf32>
    %199 = arith.divf %197, %198 : vector<2x128xf32>
    %200 = arith.select %13, %194, %199 : vector<2x128xi1>, vector<2x128xf32>
    %201 = vector.extract_strided_slice %200 {offsets = [0, 0], sizes = [2, 32], strides = [1, 1]} : vector<2x128xf32> to vector<2x32xf32>
    %202 = vector.extract_strided_slice %200 {offsets = [0, 32], sizes = [2, 32], strides = [1, 1]} : vector<2x128xf32> to vector<2x32xf32>
    %203 = vector.extract_strided_slice %200 {offsets = [0, 64], sizes = [2, 32], strides = [1, 1]} : vector<2x128xf32> to vector<2x32xf32>
    %204 = vector.extract_strided_slice %200 {offsets = [0, 96], sizes = [2, 32], strides = [1, 1]} : vector<2x128xf32> to vector<2x32xf32>
    %205 = arith.mulf %202, %169 : vector<2x32xf32>
    %206 = arith.mulf %201, %203 : vector<2x32xf32>
    %207 = arith.addf %205, %206 : vector<2x32xf32>
    %208 = math.tanh %207 : vector<2x32xf32>
    %209 = arith.mulf %204, %208 : vector<2x32xf32>
    %210 = math.tanh %193 : vector<2x128xf32>
    %211 = arith.negf %193 : vector<2x128xf32>
    %212 = math.exp %211 : vector<2x128xf32>
    %cst_49 = arith.constant 1.000000e+00 : f32
    %213 = vector.broadcast %cst_49 : f32 to vector<2x128xf32>
    %214 = arith.addf %213, %212 : vector<2x128xf32>
    %215 = arith.divf %213, %214 : vector<2x128xf32>
    %216 = arith.select %13, %210, %215 : vector<2x128xi1>, vector<2x128xf32>
    %217 = vector.extract_strided_slice %216 {offsets = [0, 0], sizes = [2, 32], strides = [1, 1]} : vector<2x128xf32> to vector<2x32xf32>
    %218 = vector.extract_strided_slice %216 {offsets = [0, 32], sizes = [2, 32], strides = [1, 1]} : vector<2x128xf32> to vector<2x32xf32>
    %219 = vector.extract_strided_slice %216 {offsets = [0, 64], sizes = [2, 32], strides = [1, 1]} : vector<2x128xf32> to vector<2x32xf32>
    %220 = vector.extract_strided_slice %216 {offsets = [0, 96], sizes = [2, 32], strides = [1, 1]} : vector<2x128xf32> to vector<2x32xf32>
    %221 = arith.mulf %218, %185 : vector<2x32xf32>
    %222 = arith.mulf %217, %219 : vector<2x32xf32>
    %223 = arith.addf %221, %222 : vector<2x32xf32>
    %224 = math.tanh %223 : vector<2x32xf32>
    %225 = arith.mulf %220, %224 : vector<2x32xf32>
    %226 = vector.extract_strided_slice %20 {offsets = [10, 0], sizes = [2, 128], strides = [1, 1]} : vector<16x128xf32> to vector<2x128xf32>
    %cst_50 = arith.constant dense<0.000000e+00> : vector<2x128xf32>
    %227 = tpu.matmul %209, %29, %cst_50 {dimension_numbers = #tpu.dot_dimension_numbers<[1], [0], [0], [1], [0, 0, 1, 1], [], []>} : vector<2x32xf32>, vector<32x128xf32>, vector<2x128xf32> -> vector<2x128xf32>
    %228 = arith.addf %226, %227 : vector<2x128xf32>
    %229 = vector.extract_strided_slice %27 {offsets = [4, 0], sizes = [2, 128], strides = [1, 1]} : vector<16x128xf32> to vector<2x128xf32>
    %cst_51 = arith.constant dense<0.000000e+00> : vector<2x128xf32>
    %230 = tpu.matmul %225, %31, %cst_51 {dimension_numbers = #tpu.dot_dimension_numbers<[1], [0], [0], [1], [0, 0, 1, 1], [], []>} : vector<2x32xf32>, vector<32x128xf32>, vector<2x128xf32> -> vector<2x128xf32>
    %231 = arith.addf %229, %230 : vector<2x128xf32>
    %232 = math.tanh %228 : vector<2x128xf32>
    %233 = arith.negf %228 : vector<2x128xf32>
    %234 = math.exp %233 : vector<2x128xf32>
    %cst_52 = arith.constant 1.000000e+00 : f32
    %235 = vector.broadcast %cst_52 : f32 to vector<2x128xf32>
    %236 = arith.addf %235, %234 : vector<2x128xf32>
    %237 = arith.divf %235, %236 : vector<2x128xf32>
    %238 = arith.select %13, %232, %237 : vector<2x128xi1>, vector<2x128xf32>
    %239 = vector.extract_strided_slice %238 {offsets = [0, 0], sizes = [2, 32], strides = [1, 1]} : vector<2x128xf32> to vector<2x32xf32>
    %240 = vector.extract_strided_slice %238 {offsets = [0, 32], sizes = [2, 32], strides = [1, 1]} : vector<2x128xf32> to vector<2x32xf32>
    %241 = vector.extract_strided_slice %238 {offsets = [0, 64], sizes = [2, 32], strides = [1, 1]} : vector<2x128xf32> to vector<2x32xf32>
    %242 = vector.extract_strided_slice %238 {offsets = [0, 96], sizes = [2, 32], strides = [1, 1]} : vector<2x128xf32> to vector<2x32xf32>
    %243 = arith.mulf %240, %207 : vector<2x32xf32>
    %244 = arith.mulf %239, %241 : vector<2x32xf32>
    %245 = arith.addf %243, %244 : vector<2x32xf32>
    %246 = math.tanh %245 : vector<2x32xf32>
    %247 = arith.mulf %242, %246 : vector<2x32xf32>
    %248 = math.tanh %231 : vector<2x128xf32>
    %249 = arith.negf %231 : vector<2x128xf32>
    %250 = math.exp %249 : vector<2x128xf32>
    %cst_53 = arith.constant 1.000000e+00 : f32
    %251 = vector.broadcast %cst_53 : f32 to vector<2x128xf32>
    %252 = arith.addf %251, %250 : vector<2x128xf32>
    %253 = arith.divf %251, %252 : vector<2x128xf32>
    %254 = arith.select %13, %248, %253 : vector<2x128xi1>, vector<2x128xf32>
    %255 = vector.extract_strided_slice %254 {offsets = [0, 0], sizes = [2, 32], strides = [1, 1]} : vector<2x128xf32> to vector<2x32xf32>
    %256 = vector.extract_strided_slice %254 {offsets = [0, 32], sizes = [2, 32], strides = [1, 1]} : vector<2x128xf32> to vector<2x32xf32>
    %257 = vector.extract_strided_slice %254 {offsets = [0, 64], sizes = [2, 32], strides = [1, 1]} : vector<2x128xf32> to vector<2x32xf32>
    %258 = vector.extract_strided_slice %254 {offsets = [0, 96], sizes = [2, 32], strides = [1, 1]} : vector<2x128xf32> to vector<2x32xf32>
    %259 = arith.mulf %256, %223 : vector<2x32xf32>
    %260 = arith.mulf %255, %257 : vector<2x32xf32>
    %261 = arith.addf %259, %260 : vector<2x32xf32>
    %262 = math.tanh %261 : vector<2x32xf32>
    %263 = arith.mulf %258, %262 : vector<2x32xf32>
    %264 = vector.extract_strided_slice %20 {offsets = [12, 0], sizes = [2, 128], strides = [1, 1]} : vector<16x128xf32> to vector<2x128xf32>
    %cst_54 = arith.constant dense<0.000000e+00> : vector<2x128xf32>
    %265 = tpu.matmul %247, %29, %cst_54 {dimension_numbers = #tpu.dot_dimension_numbers<[1], [0], [0], [1], [0, 0, 1, 1], [], []>} : vector<2x32xf32>, vector<32x128xf32>, vector<2x128xf32> -> vector<2x128xf32>
    %266 = arith.addf %264, %265 : vector<2x128xf32>
    %267 = vector.extract_strided_slice %27 {offsets = [2, 0], sizes = [2, 128], strides = [1, 1]} : vector<16x128xf32> to vector<2x128xf32>
    %cst_55 = arith.constant dense<0.000000e+00> : vector<2x128xf32>
    %268 = tpu.matmul %263, %31, %cst_55 {dimension_numbers = #tpu.dot_dimension_numbers<[1], [0], [0], [1], [0, 0, 1, 1], [], []>} : vector<2x32xf32>, vector<32x128xf32>, vector<2x128xf32> -> vector<2x128xf32>
    %269 = arith.addf %267, %268 : vector<2x128xf32>
    %270 = math.tanh %266 : vector<2x128xf32>
    %271 = arith.negf %266 : vector<2x128xf32>
    %272 = math.exp %271 : vector<2x128xf32>
    %cst_56 = arith.constant 1.000000e+00 : f32
    %273 = vector.broadcast %cst_56 : f32 to vector<2x128xf32>
    %274 = arith.addf %273, %272 : vector<2x128xf32>
    %275 = arith.divf %273, %274 : vector<2x128xf32>
    %276 = arith.select %13, %270, %275 : vector<2x128xi1>, vector<2x128xf32>
    %277 = vector.extract_strided_slice %276 {offsets = [0, 0], sizes = [2, 32], strides = [1, 1]} : vector<2x128xf32> to vector<2x32xf32>
    %278 = vector.extract_strided_slice %276 {offsets = [0, 32], sizes = [2, 32], strides = [1, 1]} : vector<2x128xf32> to vector<2x32xf32>
    %279 = vector.extract_strided_slice %276 {offsets = [0, 64], sizes = [2, 32], strides = [1, 1]} : vector<2x128xf32> to vector<2x32xf32>
    %280 = vector.extract_strided_slice %276 {offsets = [0, 96], sizes = [2, 32], strides = [1, 1]} : vector<2x128xf32> to vector<2x32xf32>
    %281 = arith.mulf %278, %245 : vector<2x32xf32>
    %282 = arith.mulf %277, %279 : vector<2x32xf32>
    %283 = arith.addf %281, %282 : vector<2x32xf32>
    %284 = math.tanh %283 : vector<2x32xf32>
    %285 = arith.mulf %280, %284 : vector<2x32xf32>
    %286 = math.tanh %269 : vector<2x128xf32>
    %287 = arith.negf %269 : vector<2x128xf32>
    %288 = math.exp %287 : vector<2x128xf32>
    %cst_57 = arith.constant 1.000000e+00 : f32
    %289 = vector.broadcast %cst_57 : f32 to vector<2x128xf32>
    %290 = arith.addf %289, %288 : vector<2x128xf32>
    %291 = arith.divf %289, %290 : vector<2x128xf32>
    %292 = arith.select %13, %286, %291 : vector<2x128xi1>, vector<2x128xf32>
    %293 = vector.extract_strided_slice %292 {offsets = [0, 0], sizes = [2, 32], strides = [1, 1]} : vector<2x128xf32> to vector<2x32xf32>
    %294 = vector.extract_strided_slice %292 {offsets = [0, 32], sizes = [2, 32], strides = [1, 1]} : vector<2x128xf32> to vector<2x32xf32>
    %295 = vector.extract_strided_slice %292 {offsets = [0, 64], sizes = [2, 32], strides = [1, 1]} : vector<2x128xf32> to vector<2x32xf32>
    %296 = vector.extract_strided_slice %292 {offsets = [0, 96], sizes = [2, 32], strides = [1, 1]} : vector<2x128xf32> to vector<2x32xf32>
    %297 = arith.mulf %294, %261 : vector<2x32xf32>
    %298 = arith.mulf %293, %295 : vector<2x32xf32>
    %299 = arith.addf %297, %298 : vector<2x32xf32>
    %300 = math.tanh %299 : vector<2x32xf32>
    %301 = arith.mulf %296, %300 : vector<2x32xf32>
    %302 = vector.extract_strided_slice %20 {offsets = [14, 0], sizes = [2, 128], strides = [1, 1]} : vector<16x128xf32> to vector<2x128xf32>
    %cst_58 = arith.constant dense<0.000000e+00> : vector<2x128xf32>
    %303 = tpu.matmul %285, %29, %cst_58 {dimension_numbers = #tpu.dot_dimension_numbers<[1], [0], [0], [1], [0, 0, 1, 1], [], []>} : vector<2x32xf32>, vector<32x128xf32>, vector<2x128xf32> -> vector<2x128xf32>
    %304 = arith.addf %302, %303 : vector<2x128xf32>
    %305 = vector.extract_strided_slice %27 {offsets = [0, 0], sizes = [2, 128], strides = [1, 1]} : vector<16x128xf32> to vector<2x128xf32>
    %cst_59 = arith.constant dense<0.000000e+00> : vector<2x128xf32>
    %306 = tpu.matmul %301, %31, %cst_59 {dimension_numbers = #tpu.dot_dimension_numbers<[1], [0], [0], [1], [0, 0, 1, 1], [], []>} : vector<2x32xf32>, vector<32x128xf32>, vector<2x128xf32> -> vector<2x128xf32>
    %307 = arith.addf %305, %306 : vector<2x128xf32>
    %308 = math.tanh %304 : vector<2x128xf32>
    %309 = arith.negf %304 : vector<2x128xf32>
    %310 = math.exp %309 : vector<2x128xf32>
    %cst_60 = arith.constant 1.000000e+00 : f32
    %311 = vector.broadcast %cst_60 : f32 to vector<2x128xf32>
    %312 = arith.addf %311, %310 : vector<2x128xf32>
    %313 = arith.divf %311, %312 : vector<2x128xf32>
    %314 = arith.select %13, %308, %313 : vector<2x128xi1>, vector<2x128xf32>
    %315 = vector.extract_strided_slice %314 {offsets = [0, 0], sizes = [2, 32], strides = [1, 1]} : vector<2x128xf32> to vector<2x32xf32>
    %316 = vector.extract_strided_slice %314 {offsets = [0, 32], sizes = [2, 32], strides = [1, 1]} : vector<2x128xf32> to vector<2x32xf32>
    %317 = vector.extract_strided_slice %314 {offsets = [0, 64], sizes = [2, 32], strides = [1, 1]} : vector<2x128xf32> to vector<2x32xf32>
    %318 = vector.extract_strided_slice %314 {offsets = [0, 96], sizes = [2, 32], strides = [1, 1]} : vector<2x128xf32> to vector<2x32xf32>
    %319 = arith.mulf %316, %283 : vector<2x32xf32>
    %320 = arith.mulf %315, %317 : vector<2x32xf32>
    %321 = arith.addf %319, %320 : vector<2x32xf32>
    %322 = math.tanh %321 : vector<2x32xf32>
    %323 = arith.mulf %318, %322 : vector<2x32xf32>
    %324 = math.tanh %307 : vector<2x128xf32>
    %325 = arith.negf %307 : vector<2x128xf32>
    %326 = math.exp %325 : vector<2x128xf32>
    %cst_61 = arith.constant 1.000000e+00 : f32
    %327 = vector.broadcast %cst_61 : f32 to vector<2x128xf32>
    %328 = arith.addf %327, %326 : vector<2x128xf32>
    %329 = arith.divf %327, %328 : vector<2x128xf32>
    %330 = arith.select %13, %324, %329 : vector<2x128xi1>, vector<2x128xf32>
    %331 = vector.extract_strided_slice %330 {offsets = [0, 0], sizes = [2, 32], strides = [1, 1]} : vector<2x128xf32> to vector<2x32xf32>
    %332 = vector.extract_strided_slice %330 {offsets = [0, 32], sizes = [2, 32], strides = [1, 1]} : vector<2x128xf32> to vector<2x32xf32>
    %333 = vector.extract_strided_slice %330 {offsets = [0, 64], sizes = [2, 32], strides = [1, 1]} : vector<2x128xf32> to vector<2x32xf32>
    %334 = vector.extract_strided_slice %330 {offsets = [0, 96], sizes = [2, 32], strides = [1, 1]} : vector<2x128xf32> to vector<2x32xf32>
    %335 = arith.mulf %332, %299 : vector<2x32xf32>
    %336 = arith.mulf %331, %333 : vector<2x32xf32>
    %337 = arith.addf %335, %336 : vector<2x32xf32>
    %338 = math.tanh %337 : vector<2x32xf32>
    %339 = arith.mulf %334, %338 : vector<2x32xf32>
    %340 = tpu.concatenate %57, %95, %133, %171, %209, %247, %285, %323 in 0 : vector<2x32xf32>, vector<2x32xf32>, vector<2x32xf32>, vector<2x32xf32>, vector<2x32xf32>, vector<2x32xf32>, vector<2x32xf32>, vector<2x32xf32> -> vector<16x32xf32>
    %341 = tpu.concatenate %339, %301, %263, %225, %187, %149, %111, %73 in 0 : vector<2x32xf32>, vector<2x32xf32>, vector<2x32xf32>, vector<2x32xf32>, vector<2x32xf32>, vector<2x32xf32>, vector<2x32xf32>, vector<2x32xf32> -> vector<16x32xf32>
    %c0_62 = arith.constant 0 : index
    %c0_63 = arith.constant 0 : index
    %c0_64 = arith.constant 0 : index
    %c0_65 = arith.constant 0 : index
    %342 = vector.load %arg3[%c0_62, %c0_63, %c0_64, %c0_65] : memref<1x2x32x128xf32, #tpu.memory_space<vmem>>, vector<1x1x32x128xf32>
    %343 = vector.shape_cast %342 : vector<1x1x32x128xf32> to vector<32x128xf32>
    %cst_66 = arith.constant dense<0.000000e+00> : vector<16x128xf32>
    %344 = tpu.matmul %340, %343, %cst_66 {dimension_numbers = #tpu.dot_dimension_numbers<[1], [0], [0], [1], [0, 0, 1, 1], [], []>} : vector<16x32xf32>, vector<32x128xf32>, vector<16x128xf32> -> vector<16x128xf32>
    %c0_67 = arith.constant 0 : index
    %c0_68 = arith.constant 0 : index
    %c0_69 = arith.constant 0 : index
    %c0_70 = arith.constant 0 : index
    %345 = vector.load %arg4[%c0_67, %c0_68, %c0_69, %c0_70] : memref<1x2x32x128xf32, #tpu.memory_space<vmem>>, vector<1x1x32x128xf32>
    %346 = vector.shape_cast %345 : vector<1x1x32x128xf32> to vector<32x128xf32>
    %cst_71 = arith.constant dense<0.000000e+00> : vector<16x128xf32>
    %347 = tpu.matmul %341, %346, %cst_71 {dimension_numbers = #tpu.dot_dimension_numbers<[1], [0], [0], [1], [0, 0, 1, 1], [], []>} : vector<16x32xf32>, vector<32x128xf32>, vector<16x128xf32> -> vector<16x128xf32>
    %348 = arith.addf %344, %347 : vector<16x128xf32>
    %c1_72 = arith.constant 1 : index
    %c0_73 = arith.constant 0 : index
    %c0_74 = arith.constant 0 : index
    %c0_75 = arith.constant 0 : index
    %349 = vector.load %arg6[%c1_72, %c0_73, %c0_74, %c0_75] : memref<2x2x1x128xf32, #tpu.memory_space<vmem>>, vector<1x1x1x128xf32>
    %350 = vector.shape_cast %349 : vector<1x1x1x128xf32> to vector<1x128xf32>
    %351 = vector.broadcast %350 : vector<1x128xf32> to vector<16x128xf32>
    %352 = arith.addf %348, %351 : vector<16x128xf32>
    %c0_76 = arith.constant 0 : index
    %c1_77 = arith.constant 1 : index
    %c0_78 = arith.constant 0 : index
    %c0_79 = arith.constant 0 : index
    %353 = vector.load %arg3[%c0_76, %c1_77, %c0_78, %c0_79] : memref<1x2x32x128xf32, #tpu.memory_space<vmem>>, vector<1x1x32x128xf32>
    %354 = vector.shape_cast %353 : vector<1x1x32x128xf32> to vector<32x128xf32>
    %cst_80 = arith.constant dense<0.000000e+00> : vector<16x128xf32>
    %355 = tpu.matmul %340, %354, %cst_80 {dimension_numbers = #tpu.dot_dimension_numbers<[1], [0], [0], [1], [0, 0, 1, 1], [], []>} : vector<16x32xf32>, vector<32x128xf32>, vector<16x128xf32> -> vector<16x128xf32>
    %c0_81 = arith.constant 0 : index
    %c1_82 = arith.constant 1 : index
    %c0_83 = arith.constant 0 : index
    %c0_84 = arith.constant 0 : index
    %356 = vector.load %arg4[%c0_81, %c1_82, %c0_83, %c0_84] : memref<1x2x32x128xf32, #tpu.memory_space<vmem>>, vector<1x1x32x128xf32>
    %357 = vector.shape_cast %356 : vector<1x1x32x128xf32> to vector<32x128xf32>
    %cst_85 = arith.constant dense<0.000000e+00> : vector<16x128xf32>
    %358 = tpu.matmul %341, %357, %cst_85 {dimension_numbers = #tpu.dot_dimension_numbers<[1], [0], [0], [1], [0, 0, 1, 1], [], []>} : vector<16x32xf32>, vector<32x128xf32>, vector<16x128xf32> -> vector<16x128xf32>
    %359 = arith.addf %355, %358 : vector<16x128xf32>
    %c1_86 = arith.constant 1 : index
    %c1_87 = arith.constant 1 : index
    %c0_88 = arith.constant 0 : index
    %c0_89 = arith.constant 0 : index
    %360 = vector.load %arg6[%c1_86, %c1_87, %c0_88, %c0_89] : memref<2x2x1x128xf32, #tpu.memory_space<vmem>>, vector<1x1x1x128xf32>
    %361 = vector.shape_cast %360 : vector<1x1x1x128xf32> to vector<1x128xf32>
    %362 = vector.broadcast %361 : vector<1x128xf32> to vector<16x128xf32>
    %363 = arith.addf %359, %362 : vector<16x128xf32>
    %c1_90 = arith.constant 1 : index
    %c0_91 = arith.constant 0 : index
    %c0_92 = arith.constant 0 : index
    %c0_93 = arith.constant 0 : index
    %364 = vector.load %arg5[%c1_90, %c0_91, %c0_92, %c0_93] : memref<2x2x32x128xf32, #tpu.memory_space<vmem>>, vector<1x1x32x128xf32>
    %365 = vector.shape_cast %364 : vector<1x1x32x128xf32> to vector<32x128xf32>
    %c1_94 = arith.constant 1 : index
    %c1_95 = arith.constant 1 : index
    %c0_96 = arith.constant 0 : index
    %c0_97 = arith.constant 0 : index
    %366 = vector.load %arg5[%c1_94, %c1_95, %c0_96, %c0_97] : memref<2x2x32x128xf32, #tpu.memory_space<vmem>>, vector<1x1x32x128xf32>
    %367 = vector.shape_cast %366 : vector<1x1x32x128xf32> to vector<32x128xf32>
    %cst_98 = arith.constant 0.000000e+00 : f32
    %368 = vector.broadcast %cst_98 : f32 to vector<2x32xf32>
    %cst_99 = arith.constant 0.000000e+00 : f32
    %369 = vector.broadcast %cst_99 : f32 to vector<2x32xf32>
    %cst_100 = arith.constant 0.000000e+00 : f32
    %370 = vector.broadcast %cst_100 : f32 to vector<2x32xf32>
    %cst_101 = arith.constant 0.000000e+00 : f32
    %371 = vector.broadcast %cst_101 : f32 to vector<2x32xf32>
    %372 = vector.extract_strided_slice %352 {offsets = [0, 0], sizes = [2, 128], strides = [1, 1]} : vector<16x128xf32> to vector<2x128xf32>
    %cst_102 = arith.constant dense<0.000000e+00> : vector<2x128xf32>
    %373 = tpu.matmul %368, %365, %cst_102 {dimension_numbers = #tpu.dot_dimension_numbers<[1], [0], [0], [1], [0, 0, 1, 1], [], []>} : vector<2x32xf32>, vector<32x128xf32>, vector<2x128xf32> -> vector<2x128xf32>
    %374 = arith.addf %372, %373 : vector<2x128xf32>
    %375 = vector.extract_strided_slice %363 {offsets = [14, 0], sizes = [2, 128], strides = [1, 1]} : vector<16x128xf32> to vector<2x128xf32>
    %cst_103 = arith.constant dense<0.000000e+00> : vector<2x128xf32>
    %376 = tpu.matmul %370, %367, %cst_103 {dimension_numbers = #tpu.dot_dimension_numbers<[1], [0], [0], [1], [0, 0, 1, 1], [], []>} : vector<2x32xf32>, vector<32x128xf32>, vector<2x128xf32> -> vector<2x128xf32>
    %377 = arith.addf %375, %376 : vector<2x128xf32>
    %378 = math.tanh %374 : vector<2x128xf32>
    %379 = arith.negf %374 : vector<2x128xf32>
    %380 = math.exp %379 : vector<2x128xf32>
    %cst_104 = arith.constant 1.000000e+00 : f32
    %381 = vector.broadcast %cst_104 : f32 to vector<2x128xf32>
    %382 = arith.addf %381, %380 : vector<2x128xf32>
    %383 = arith.divf %381, %382 : vector<2x128xf32>
    %384 = arith.select %13, %378, %383 : vector<2x128xi1>, vector<2x128xf32>
    %385 = vector.extract_strided_slice %384 {offsets = [0, 0], sizes = [2, 32], strides = [1, 1]} : vector<2x128xf32> to vector<2x32xf32>
    %386 = vector.extract_strided_slice %384 {offsets = [0, 32], sizes = [2, 32], strides = [1, 1]} : vector<2x128xf32> to vector<2x32xf32>
    %387 = vector.extract_strided_slice %384 {offsets = [0, 64], sizes = [2, 32], strides = [1, 1]} : vector<2x128xf32> to vector<2x32xf32>
    %388 = vector.extract_strided_slice %384 {offsets = [0, 96], sizes = [2, 32], strides = [1, 1]} : vector<2x128xf32> to vector<2x32xf32>
    %389 = arith.mulf %386, %369 : vector<2x32xf32>
    %390 = arith.mulf %385, %387 : vector<2x32xf32>
    %391 = arith.addf %389, %390 : vector<2x32xf32>
    %392 = math.tanh %391 : vector<2x32xf32>
    %393 = arith.mulf %388, %392 : vector<2x32xf32>
    %394 = math.tanh %377 : vector<2x128xf32>
    %395 = arith.negf %377 : vector<2x128xf32>
    %396 = math.exp %395 : vector<2x128xf32>
    %cst_105 = arith.constant 1.000000e+00 : f32
    %397 = vector.broadcast %cst_105 : f32 to vector<2x128xf32>
    %398 = arith.addf %397, %396 : vector<2x128xf32>
    %399 = arith.divf %397, %398 : vector<2x128xf32>
    %400 = arith.select %13, %394, %399 : vector<2x128xi1>, vector<2x128xf32>
    %401 = vector.extract_strided_slice %400 {offsets = [0, 0], sizes = [2, 32], strides = [1, 1]} : vector<2x128xf32> to vector<2x32xf32>
    %402 = vector.extract_strided_slice %400 {offsets = [0, 32], sizes = [2, 32], strides = [1, 1]} : vector<2x128xf32> to vector<2x32xf32>
    %403 = vector.extract_strided_slice %400 {offsets = [0, 64], sizes = [2, 32], strides = [1, 1]} : vector<2x128xf32> to vector<2x32xf32>
    %404 = vector.extract_strided_slice %400 {offsets = [0, 96], sizes = [2, 32], strides = [1, 1]} : vector<2x128xf32> to vector<2x32xf32>
    %405 = arith.mulf %402, %371 : vector<2x32xf32>
    %406 = arith.mulf %401, %403 : vector<2x32xf32>
    %407 = arith.addf %405, %406 : vector<2x32xf32>
    %408 = math.tanh %407 : vector<2x32xf32>
    %409 = arith.mulf %404, %408 : vector<2x32xf32>
    %410 = vector.extract_strided_slice %352 {offsets = [2, 0], sizes = [2, 128], strides = [1, 1]} : vector<16x128xf32> to vector<2x128xf32>
    %cst_106 = arith.constant dense<0.000000e+00> : vector<2x128xf32>
    %411 = tpu.matmul %393, %365, %cst_106 {dimension_numbers = #tpu.dot_dimension_numbers<[1], [0], [0], [1], [0, 0, 1, 1], [], []>} : vector<2x32xf32>, vector<32x128xf32>, vector<2x128xf32> -> vector<2x128xf32>
    %412 = arith.addf %410, %411 : vector<2x128xf32>
    %413 = vector.extract_strided_slice %363 {offsets = [12, 0], sizes = [2, 128], strides = [1, 1]} : vector<16x128xf32> to vector<2x128xf32>
    %cst_107 = arith.constant dense<0.000000e+00> : vector<2x128xf32>
    %414 = tpu.matmul %409, %367, %cst_107 {dimension_numbers = #tpu.dot_dimension_numbers<[1], [0], [0], [1], [0, 0, 1, 1], [], []>} : vector<2x32xf32>, vector<32x128xf32>, vector<2x128xf32> -> vector<2x128xf32>
    %415 = arith.addf %413, %414 : vector<2x128xf32>
    %416 = math.tanh %412 : vector<2x128xf32>
    %417 = arith.negf %412 : vector<2x128xf32>
    %418 = math.exp %417 : vector<2x128xf32>
    %cst_108 = arith.constant 1.000000e+00 : f32
    %419 = vector.broadcast %cst_108 : f32 to vector<2x128xf32>
    %420 = arith.addf %419, %418 : vector<2x128xf32>
    %421 = arith.divf %419, %420 : vector<2x128xf32>
    %422 = arith.select %13, %416, %421 : vector<2x128xi1>, vector<2x128xf32>
    %423 = vector.extract_strided_slice %422 {offsets = [0, 0], sizes = [2, 32], strides = [1, 1]} : vector<2x128xf32> to vector<2x32xf32>
    %424 = vector.extract_strided_slice %422 {offsets = [0, 32], sizes = [2, 32], strides = [1, 1]} : vector<2x128xf32> to vector<2x32xf32>
    %425 = vector.extract_strided_slice %422 {offsets = [0, 64], sizes = [2, 32], strides = [1, 1]} : vector<2x128xf32> to vector<2x32xf32>
    %426 = vector.extract_strided_slice %422 {offsets = [0, 96], sizes = [2, 32], strides = [1, 1]} : vector<2x128xf32> to vector<2x32xf32>
    %427 = arith.mulf %424, %391 : vector<2x32xf32>
    %428 = arith.mulf %423, %425 : vector<2x32xf32>
    %429 = arith.addf %427, %428 : vector<2x32xf32>
    %430 = math.tanh %429 : vector<2x32xf32>
    %431 = arith.mulf %426, %430 : vector<2x32xf32>
    %432 = math.tanh %415 : vector<2x128xf32>
    %433 = arith.negf %415 : vector<2x128xf32>
    %434 = math.exp %433 : vector<2x128xf32>
    %cst_109 = arith.constant 1.000000e+00 : f32
    %435 = vector.broadcast %cst_109 : f32 to vector<2x128xf32>
    %436 = arith.addf %435, %434 : vector<2x128xf32>
    %437 = arith.divf %435, %436 : vector<2x128xf32>
    %438 = arith.select %13, %432, %437 : vector<2x128xi1>, vector<2x128xf32>
    %439 = vector.extract_strided_slice %438 {offsets = [0, 0], sizes = [2, 32], strides = [1, 1]} : vector<2x128xf32> to vector<2x32xf32>
    %440 = vector.extract_strided_slice %438 {offsets = [0, 32], sizes = [2, 32], strides = [1, 1]} : vector<2x128xf32> to vector<2x32xf32>
    %441 = vector.extract_strided_slice %438 {offsets = [0, 64], sizes = [2, 32], strides = [1, 1]} : vector<2x128xf32> to vector<2x32xf32>
    %442 = vector.extract_strided_slice %438 {offsets = [0, 96], sizes = [2, 32], strides = [1, 1]} : vector<2x128xf32> to vector<2x32xf32>
    %443 = arith.mulf %440, %407 : vector<2x32xf32>
    %444 = arith.mulf %439, %441 : vector<2x32xf32>
    %445 = arith.addf %443, %444 : vector<2x32xf32>
    %446 = math.tanh %445 : vector<2x32xf32>
    %447 = arith.mulf %442, %446 : vector<2x32xf32>
    %448 = vector.extract_strided_slice %352 {offsets = [4, 0], sizes = [2, 128], strides = [1, 1]} : vector<16x128xf32> to vector<2x128xf32>
    %cst_110 = arith.constant dense<0.000000e+00> : vector<2x128xf32>
    %449 = tpu.matmul %431, %365, %cst_110 {dimension_numbers = #tpu.dot_dimension_numbers<[1], [0], [0], [1], [0, 0, 1, 1], [], []>} : vector<2x32xf32>, vector<32x128xf32>, vector<2x128xf32> -> vector<2x128xf32>
    %450 = arith.addf %448, %449 : vector<2x128xf32>
    %451 = vector.extract_strided_slice %363 {offsets = [10, 0], sizes = [2, 128], strides = [1, 1]} : vector<16x128xf32> to vector<2x128xf32>
    %cst_111 = arith.constant dense<0.000000e+00> : vector<2x128xf32>
    %452 = tpu.matmul %447, %367, %cst_111 {dimension_numbers = #tpu.dot_dimension_numbers<[1], [0], [0], [1], [0, 0, 1, 1], [], []>} : vector<2x32xf32>, vector<32x128xf32>, vector<2x128xf32> -> vector<2x128xf32>
    %453 = arith.addf %451, %452 : vector<2x128xf32>
    %454 = math.tanh %450 : vector<2x128xf32>
    %455 = arith.negf %450 : vector<2x128xf32>
    %456 = math.exp %455 : vector<2x128xf32>
    %cst_112 = arith.constant 1.000000e+00 : f32
    %457 = vector.broadcast %cst_112 : f32 to vector<2x128xf32>
    %458 = arith.addf %457, %456 : vector<2x128xf32>
    %459 = arith.divf %457, %458 : vector<2x128xf32>
    %460 = arith.select %13, %454, %459 : vector<2x128xi1>, vector<2x128xf32>
    %461 = vector.extract_strided_slice %460 {offsets = [0, 0], sizes = [2, 32], strides = [1, 1]} : vector<2x128xf32> to vector<2x32xf32>
    %462 = vector.extract_strided_slice %460 {offsets = [0, 32], sizes = [2, 32], strides = [1, 1]} : vector<2x128xf32> to vector<2x32xf32>
    %463 = vector.extract_strided_slice %460 {offsets = [0, 64], sizes = [2, 32], strides = [1, 1]} : vector<2x128xf32> to vector<2x32xf32>
    %464 = vector.extract_strided_slice %460 {offsets = [0, 96], sizes = [2, 32], strides = [1, 1]} : vector<2x128xf32> to vector<2x32xf32>
    %465 = arith.mulf %462, %429 : vector<2x32xf32>
    %466 = arith.mulf %461, %463 : vector<2x32xf32>
    %467 = arith.addf %465, %466 : vector<2x32xf32>
    %468 = math.tanh %467 : vector<2x32xf32>
    %469 = arith.mulf %464, %468 : vector<2x32xf32>
    %470 = math.tanh %453 : vector<2x128xf32>
    %471 = arith.negf %453 : vector<2x128xf32>
    %472 = math.exp %471 : vector<2x128xf32>
    %cst_113 = arith.constant 1.000000e+00 : f32
    %473 = vector.broadcast %cst_113 : f32 to vector<2x128xf32>
    %474 = arith.addf %473, %472 : vector<2x128xf32>
    %475 = arith.divf %473, %474 : vector<2x128xf32>
    %476 = arith.select %13, %470, %475 : vector<2x128xi1>, vector<2x128xf32>
    %477 = vector.extract_strided_slice %476 {offsets = [0, 0], sizes = [2, 32], strides = [1, 1]} : vector<2x128xf32> to vector<2x32xf32>
    %478 = vector.extract_strided_slice %476 {offsets = [0, 32], sizes = [2, 32], strides = [1, 1]} : vector<2x128xf32> to vector<2x32xf32>
    %479 = vector.extract_strided_slice %476 {offsets = [0, 64], sizes = [2, 32], strides = [1, 1]} : vector<2x128xf32> to vector<2x32xf32>
    %480 = vector.extract_strided_slice %476 {offsets = [0, 96], sizes = [2, 32], strides = [1, 1]} : vector<2x128xf32> to vector<2x32xf32>
    %481 = arith.mulf %478, %445 : vector<2x32xf32>
    %482 = arith.mulf %477, %479 : vector<2x32xf32>
    %483 = arith.addf %481, %482 : vector<2x32xf32>
    %484 = math.tanh %483 : vector<2x32xf32>
    %485 = arith.mulf %480, %484 : vector<2x32xf32>
    %486 = vector.extract_strided_slice %352 {offsets = [6, 0], sizes = [2, 128], strides = [1, 1]} : vector<16x128xf32> to vector<2x128xf32>
    %cst_114 = arith.constant dense<0.000000e+00> : vector<2x128xf32>
    %487 = tpu.matmul %469, %365, %cst_114 {dimension_numbers = #tpu.dot_dimension_numbers<[1], [0], [0], [1], [0, 0, 1, 1], [], []>} : vector<2x32xf32>, vector<32x128xf32>, vector<2x128xf32> -> vector<2x128xf32>
    %488 = arith.addf %486, %487 : vector<2x128xf32>
    %489 = vector.extract_strided_slice %363 {offsets = [8, 0], sizes = [2, 128], strides = [1, 1]} : vector<16x128xf32> to vector<2x128xf32>
    %cst_115 = arith.constant dense<0.000000e+00> : vector<2x128xf32>
    %490 = tpu.matmul %485, %367, %cst_115 {dimension_numbers = #tpu.dot_dimension_numbers<[1], [0], [0], [1], [0, 0, 1, 1], [], []>} : vector<2x32xf32>, vector<32x128xf32>, vector<2x128xf32> -> vector<2x128xf32>
    %491 = arith.addf %489, %490 : vector<2x128xf32>
    %492 = math.tanh %488 : vector<2x128xf32>
    %493 = arith.negf %488 : vector<2x128xf32>
    %494 = math.exp %493 : vector<2x128xf32>
    %cst_116 = arith.constant 1.000000e+00 : f32
    %495 = vector.broadcast %cst_116 : f32 to vector<2x128xf32>
    %496 = arith.addf %495, %494 : vector<2x128xf32>
    %497 = arith.divf %495, %496 : vector<2x128xf32>
    %498 = arith.select %13, %492, %497 : vector<2x128xi1>, vector<2x128xf32>
    %499 = vector.extract_strided_slice %498 {offsets = [0, 0], sizes = [2, 32], strides = [1, 1]} : vector<2x128xf32> to vector<2x32xf32>
    %500 = vector.extract_strided_slice %498 {offsets = [0, 32], sizes = [2, 32], strides = [1, 1]} : vector<2x128xf32> to vector<2x32xf32>
    %501 = vector.extract_strided_slice %498 {offsets = [0, 64], sizes = [2, 32], strides = [1, 1]} : vector<2x128xf32> to vector<2x32xf32>
    %502 = vector.extract_strided_slice %498 {offsets = [0, 96], sizes = [2, 32], strides = [1, 1]} : vector<2x128xf32> to vector<2x32xf32>
    %503 = arith.mulf %500, %467 : vector<2x32xf32>
    %504 = arith.mulf %499, %501 : vector<2x32xf32>
    %505 = arith.addf %503, %504 : vector<2x32xf32>
    %506 = math.tanh %505 : vector<2x32xf32>
    %507 = arith.mulf %502, %506 : vector<2x32xf32>
    %508 = math.tanh %491 : vector<2x128xf32>
    %509 = arith.negf %491 : vector<2x128xf32>
    %510 = math.exp %509 : vector<2x128xf32>
    %cst_117 = arith.constant 1.000000e+00 : f32
    %511 = vector.broadcast %cst_117 : f32 to vector<2x128xf32>
    %512 = arith.addf %511, %510 : vector<2x128xf32>
    %513 = arith.divf %511, %512 : vector<2x128xf32>
    %514 = arith.select %13, %508, %513 : vector<2x128xi1>, vector<2x128xf32>
    %515 = vector.extract_strided_slice %514 {offsets = [0, 0], sizes = [2, 32], strides = [1, 1]} : vector<2x128xf32> to vector<2x32xf32>
    %516 = vector.extract_strided_slice %514 {offsets = [0, 32], sizes = [2, 32], strides = [1, 1]} : vector<2x128xf32> to vector<2x32xf32>
    %517 = vector.extract_strided_slice %514 {offsets = [0, 64], sizes = [2, 32], strides = [1, 1]} : vector<2x128xf32> to vector<2x32xf32>
    %518 = vector.extract_strided_slice %514 {offsets = [0, 96], sizes = [2, 32], strides = [1, 1]} : vector<2x128xf32> to vector<2x32xf32>
    %519 = arith.mulf %516, %483 : vector<2x32xf32>
    %520 = arith.mulf %515, %517 : vector<2x32xf32>
    %521 = arith.addf %519, %520 : vector<2x32xf32>
    %522 = math.tanh %521 : vector<2x32xf32>
    %523 = arith.mulf %518, %522 : vector<2x32xf32>
    %524 = vector.extract_strided_slice %352 {offsets = [8, 0], sizes = [2, 128], strides = [1, 1]} : vector<16x128xf32> to vector<2x128xf32>
    %cst_118 = arith.constant dense<0.000000e+00> : vector<2x128xf32>
    %525 = tpu.matmul %507, %365, %cst_118 {dimension_numbers = #tpu.dot_dimension_numbers<[1], [0], [0], [1], [0, 0, 1, 1], [], []>} : vector<2x32xf32>, vector<32x128xf32>, vector<2x128xf32> -> vector<2x128xf32>
    %526 = arith.addf %524, %525 : vector<2x128xf32>
    %527 = vector.extract_strided_slice %363 {offsets = [6, 0], sizes = [2, 128], strides = [1, 1]} : vector<16x128xf32> to vector<2x128xf32>
    %cst_119 = arith.constant dense<0.000000e+00> : vector<2x128xf32>
    %528 = tpu.matmul %523, %367, %cst_119 {dimension_numbers = #tpu.dot_dimension_numbers<[1], [0], [0], [1], [0, 0, 1, 1], [], []>} : vector<2x32xf32>, vector<32x128xf32>, vector<2x128xf32> -> vector<2x128xf32>
    %529 = arith.addf %527, %528 : vector<2x128xf32>
    %530 = math.tanh %526 : vector<2x128xf32>
    %531 = arith.negf %526 : vector<2x128xf32>
    %532 = math.exp %531 : vector<2x128xf32>
    %cst_120 = arith.constant 1.000000e+00 : f32
    %533 = vector.broadcast %cst_120 : f32 to vector<2x128xf32>
    %534 = arith.addf %533, %532 : vector<2x128xf32>
    %535 = arith.divf %533, %534 : vector<2x128xf32>
    %536 = arith.select %13, %530, %535 : vector<2x128xi1>, vector<2x128xf32>
    %537 = vector.extract_strided_slice %536 {offsets = [0, 0], sizes = [2, 32], strides = [1, 1]} : vector<2x128xf32> to vector<2x32xf32>
    %538 = vector.extract_strided_slice %536 {offsets = [0, 32], sizes = [2, 32], strides = [1, 1]} : vector<2x128xf32> to vector<2x32xf32>
    %539 = vector.extract_strided_slice %536 {offsets = [0, 64], sizes = [2, 32], strides = [1, 1]} : vector<2x128xf32> to vector<2x32xf32>
    %540 = vector.extract_strided_slice %536 {offsets = [0, 96], sizes = [2, 32], strides = [1, 1]} : vector<2x128xf32> to vector<2x32xf32>
    %541 = arith.mulf %538, %505 : vector<2x32xf32>
    %542 = arith.mulf %537, %539 : vector<2x32xf32>
    %543 = arith.addf %541, %542 : vector<2x32xf32>
    %544 = math.tanh %543 : vector<2x32xf32>
    %545 = arith.mulf %540, %544 : vector<2x32xf32>
    %546 = math.tanh %529 : vector<2x128xf32>
    %547 = arith.negf %529 : vector<2x128xf32>
    %548 = math.exp %547 : vector<2x128xf32>
    %cst_121 = arith.constant 1.000000e+00 : f32
    %549 = vector.broadcast %cst_121 : f32 to vector<2x128xf32>
    %550 = arith.addf %549, %548 : vector<2x128xf32>
    %551 = arith.divf %549, %550 : vector<2x128xf32>
    %552 = arith.select %13, %546, %551 : vector<2x128xi1>, vector<2x128xf32>
    %553 = vector.extract_strided_slice %552 {offsets = [0, 0], sizes = [2, 32], strides = [1, 1]} : vector<2x128xf32> to vector<2x32xf32>
    %554 = vector.extract_strided_slice %552 {offsets = [0, 32], sizes = [2, 32], strides = [1, 1]} : vector<2x128xf32> to vector<2x32xf32>
    %555 = vector.extract_strided_slice %552 {offsets = [0, 64], sizes = [2, 32], strides = [1, 1]} : vector<2x128xf32> to vector<2x32xf32>
    %556 = vector.extract_strided_slice %552 {offsets = [0, 96], sizes = [2, 32], strides = [1, 1]} : vector<2x128xf32> to vector<2x32xf32>
    %557 = arith.mulf %554, %521 : vector<2x32xf32>
    %558 = arith.mulf %553, %555 : vector<2x32xf32>
    %559 = arith.addf %557, %558 : vector<2x32xf32>
    %560 = math.tanh %559 : vector<2x32xf32>
    %561 = arith.mulf %556, %560 : vector<2x32xf32>
    %562 = vector.extract_strided_slice %352 {offsets = [10, 0], sizes = [2, 128], strides = [1, 1]} : vector<16x128xf32> to vector<2x128xf32>
    %cst_122 = arith.constant dense<0.000000e+00> : vector<2x128xf32>
    %563 = tpu.matmul %545, %365, %cst_122 {dimension_numbers = #tpu.dot_dimension_numbers<[1], [0], [0], [1], [0, 0, 1, 1], [], []>} : vector<2x32xf32>, vector<32x128xf32>, vector<2x128xf32> -> vector<2x128xf32>
    %564 = arith.addf %562, %563 : vector<2x128xf32>
    %565 = vector.extract_strided_slice %363 {offsets = [4, 0], sizes = [2, 128], strides = [1, 1]} : vector<16x128xf32> to vector<2x128xf32>
    %cst_123 = arith.constant dense<0.000000e+00> : vector<2x128xf32>
    %566 = tpu.matmul %561, %367, %cst_123 {dimension_numbers = #tpu.dot_dimension_numbers<[1], [0], [0], [1], [0, 0, 1, 1], [], []>} : vector<2x32xf32>, vector<32x128xf32>, vector<2x128xf32> -> vector<2x128xf32>
    %567 = arith.addf %565, %566 : vector<2x128xf32>
    %568 = math.tanh %564 : vector<2x128xf32>
    %569 = arith.negf %564 : vector<2x128xf32>
    %570 = math.exp %569 : vector<2x128xf32>
    %cst_124 = arith.constant 1.000000e+00 : f32
    %571 = vector.broadcast %cst_124 : f32 to vector<2x128xf32>
    %572 = arith.addf %571, %570 : vector<2x128xf32>
    %573 = arith.divf %571, %572 : vector<2x128xf32>
    %574 = arith.select %13, %568, %573 : vector<2x128xi1>, vector<2x128xf32>
    %575 = vector.extract_strided_slice %574 {offsets = [0, 0], sizes = [2, 32], strides = [1, 1]} : vector<2x128xf32> to vector<2x32xf32>
    %576 = vector.extract_strided_slice %574 {offsets = [0, 32], sizes = [2, 32], strides = [1, 1]} : vector<2x128xf32> to vector<2x32xf32>
    %577 = vector.extract_strided_slice %574 {offsets = [0, 64], sizes = [2, 32], strides = [1, 1]} : vector<2x128xf32> to vector<2x32xf32>
    %578 = vector.extract_strided_slice %574 {offsets = [0, 96], sizes = [2, 32], strides = [1, 1]} : vector<2x128xf32> to vector<2x32xf32>
    %579 = arith.mulf %576, %543 : vector<2x32xf32>
    %580 = arith.mulf %575, %577 : vector<2x32xf32>
    %581 = arith.addf %579, %580 : vector<2x32xf32>
    %582 = math.tanh %581 : vector<2x32xf32>
    %583 = arith.mulf %578, %582 : vector<2x32xf32>
    %584 = math.tanh %567 : vector<2x128xf32>
    %585 = arith.negf %567 : vector<2x128xf32>
    %586 = math.exp %585 : vector<2x128xf32>
    %cst_125 = arith.constant 1.000000e+00 : f32
    %587 = vector.broadcast %cst_125 : f32 to vector<2x128xf32>
    %588 = arith.addf %587, %586 : vector<2x128xf32>
    %589 = arith.divf %587, %588 : vector<2x128xf32>
    %590 = arith.select %13, %584, %589 : vector<2x128xi1>, vector<2x128xf32>
    %591 = vector.extract_strided_slice %590 {offsets = [0, 0], sizes = [2, 32], strides = [1, 1]} : vector<2x128xf32> to vector<2x32xf32>
    %592 = vector.extract_strided_slice %590 {offsets = [0, 32], sizes = [2, 32], strides = [1, 1]} : vector<2x128xf32> to vector<2x32xf32>
    %593 = vector.extract_strided_slice %590 {offsets = [0, 64], sizes = [2, 32], strides = [1, 1]} : vector<2x128xf32> to vector<2x32xf32>
    %594 = vector.extract_strided_slice %590 {offsets = [0, 96], sizes = [2, 32], strides = [1, 1]} : vector<2x128xf32> to vector<2x32xf32>
    %595 = arith.mulf %592, %559 : vector<2x32xf32>
    %596 = arith.mulf %591, %593 : vector<2x32xf32>
    %597 = arith.addf %595, %596 : vector<2x32xf32>
    %598 = math.tanh %597 : vector<2x32xf32>
    %599 = arith.mulf %594, %598 : vector<2x32xf32>
    %600 = vector.extract_strided_slice %352 {offsets = [12, 0], sizes = [2, 128], strides = [1, 1]} : vector<16x128xf32> to vector<2x128xf32>
    %cst_126 = arith.constant dense<0.000000e+00> : vector<2x128xf32>
    %601 = tpu.matmul %583, %365, %cst_126 {dimension_numbers = #tpu.dot_dimension_numbers<[1], [0], [0], [1], [0, 0, 1, 1], [], []>} : vector<2x32xf32>, vector<32x128xf32>, vector<2x128xf32> -> vector<2x128xf32>
    %602 = arith.addf %600, %601 : vector<2x128xf32>
    %603 = vector.extract_strided_slice %363 {offsets = [2, 0], sizes = [2, 128], strides = [1, 1]} : vector<16x128xf32> to vector<2x128xf32>
    %cst_127 = arith.constant dense<0.000000e+00> : vector<2x128xf32>
    %604 = tpu.matmul %599, %367, %cst_127 {dimension_numbers = #tpu.dot_dimension_numbers<[1], [0], [0], [1], [0, 0, 1, 1], [], []>} : vector<2x32xf32>, vector<32x128xf32>, vector<2x128xf32> -> vector<2x128xf32>
    %605 = arith.addf %603, %604 : vector<2x128xf32>
    %606 = math.tanh %602 : vector<2x128xf32>
    %607 = arith.negf %602 : vector<2x128xf32>
    %608 = math.exp %607 : vector<2x128xf32>
    %cst_128 = arith.constant 1.000000e+00 : f32
    %609 = vector.broadcast %cst_128 : f32 to vector<2x128xf32>
    %610 = arith.addf %609, %608 : vector<2x128xf32>
    %611 = arith.divf %609, %610 : vector<2x128xf32>
    %612 = arith.select %13, %606, %611 : vector<2x128xi1>, vector<2x128xf32>
    %613 = vector.extract_strided_slice %612 {offsets = [0, 0], sizes = [2, 32], strides = [1, 1]} : vector<2x128xf32> to vector<2x32xf32>
    %614 = vector.extract_strided_slice %612 {offsets = [0, 32], sizes = [2, 32], strides = [1, 1]} : vector<2x128xf32> to vector<2x32xf32>
    %615 = vector.extract_strided_slice %612 {offsets = [0, 64], sizes = [2, 32], strides = [1, 1]} : vector<2x128xf32> to vector<2x32xf32>
    %616 = vector.extract_strided_slice %612 {offsets = [0, 96], sizes = [2, 32], strides = [1, 1]} : vector<2x128xf32> to vector<2x32xf32>
    %617 = arith.mulf %614, %581 : vector<2x32xf32>
    %618 = arith.mulf %613, %615 : vector<2x32xf32>
    %619 = arith.addf %617, %618 : vector<2x32xf32>
    %620 = math.tanh %619 : vector<2x32xf32>
    %621 = arith.mulf %616, %620 : vector<2x32xf32>
    %622 = math.tanh %605 : vector<2x128xf32>
    %623 = arith.negf %605 : vector<2x128xf32>
    %624 = math.exp %623 : vector<2x128xf32>
    %cst_129 = arith.constant 1.000000e+00 : f32
    %625 = vector.broadcast %cst_129 : f32 to vector<2x128xf32>
    %626 = arith.addf %625, %624 : vector<2x128xf32>
    %627 = arith.divf %625, %626 : vector<2x128xf32>
    %628 = arith.select %13, %622, %627 : vector<2x128xi1>, vector<2x128xf32>
    %629 = vector.extract_strided_slice %628 {offsets = [0, 0], sizes = [2, 32], strides = [1, 1]} : vector<2x128xf32> to vector<2x32xf32>
    %630 = vector.extract_strided_slice %628 {offsets = [0, 32], sizes = [2, 32], strides = [1, 1]} : vector<2x128xf32> to vector<2x32xf32>
    %631 = vector.extract_strided_slice %628 {offsets = [0, 64], sizes = [2, 32], strides = [1, 1]} : vector<2x128xf32> to vector<2x32xf32>
    %632 = vector.extract_strided_slice %628 {offsets = [0, 96], sizes = [2, 32], strides = [1, 1]} : vector<2x128xf32> to vector<2x32xf32>
    %633 = arith.mulf %630, %597 : vector<2x32xf32>
    %634 = arith.mulf %629, %631 : vector<2x32xf32>
    %635 = arith.addf %633, %634 : vector<2x32xf32>
    %636 = math.tanh %635 : vector<2x32xf32>
    %637 = arith.mulf %632, %636 : vector<2x32xf32>
    %638 = vector.extract_strided_slice %352 {offsets = [14, 0], sizes = [2, 128], strides = [1, 1]} : vector<16x128xf32> to vector<2x128xf32>
    %cst_130 = arith.constant dense<0.000000e+00> : vector<2x128xf32>
    %639 = tpu.matmul %621, %365, %cst_130 {dimension_numbers = #tpu.dot_dimension_numbers<[1], [0], [0], [1], [0, 0, 1, 1], [], []>} : vector<2x32xf32>, vector<32x128xf32>, vector<2x128xf32> -> vector<2x128xf32>
    %640 = arith.addf %638, %639 : vector<2x128xf32>
    %641 = vector.extract_strided_slice %363 {offsets = [0, 0], sizes = [2, 128], strides = [1, 1]} : vector<16x128xf32> to vector<2x128xf32>
    %cst_131 = arith.constant dense<0.000000e+00> : vector<2x128xf32>
    %642 = tpu.matmul %637, %367, %cst_131 {dimension_numbers = #tpu.dot_dimension_numbers<[1], [0], [0], [1], [0, 0, 1, 1], [], []>} : vector<2x32xf32>, vector<32x128xf32>, vector<2x128xf32> -> vector<2x128xf32>
    %643 = arith.addf %641, %642 : vector<2x128xf32>
    %644 = math.tanh %640 : vector<2x128xf32>
    %645 = arith.negf %640 : vector<2x128xf32>
    %646 = math.exp %645 : vector<2x128xf32>
    %cst_132 = arith.constant 1.000000e+00 : f32
    %647 = vector.broadcast %cst_132 : f32 to vector<2x128xf32>
    %648 = arith.addf %647, %646 : vector<2x128xf32>
    %649 = arith.divf %647, %648 : vector<2x128xf32>
    %650 = arith.select %13, %644, %649 : vector<2x128xi1>, vector<2x128xf32>
    %651 = vector.extract_strided_slice %650 {offsets = [0, 0], sizes = [2, 32], strides = [1, 1]} : vector<2x128xf32> to vector<2x32xf32>
    %652 = vector.extract_strided_slice %650 {offsets = [0, 32], sizes = [2, 32], strides = [1, 1]} : vector<2x128xf32> to vector<2x32xf32>
    %653 = vector.extract_strided_slice %650 {offsets = [0, 64], sizes = [2, 32], strides = [1, 1]} : vector<2x128xf32> to vector<2x32xf32>
    %654 = vector.extract_strided_slice %650 {offsets = [0, 96], sizes = [2, 32], strides = [1, 1]} : vector<2x128xf32> to vector<2x32xf32>
    %655 = arith.mulf %652, %619 : vector<2x32xf32>
    %656 = arith.mulf %651, %653 : vector<2x32xf32>
    %657 = arith.addf %655, %656 : vector<2x32xf32>
    %658 = math.tanh %657 : vector<2x32xf32>
    %659 = arith.mulf %654, %658 : vector<2x32xf32>
    %660 = math.tanh %643 : vector<2x128xf32>
    %661 = arith.negf %643 : vector<2x128xf32>
    %662 = math.exp %661 : vector<2x128xf32>
    %cst_133 = arith.constant 1.000000e+00 : f32
    %663 = vector.broadcast %cst_133 : f32 to vector<2x128xf32>
    %664 = arith.addf %663, %662 : vector<2x128xf32>
    %665 = arith.divf %663, %664 : vector<2x128xf32>
    %666 = arith.select %13, %660, %665 : vector<2x128xi1>, vector<2x128xf32>
    %667 = vector.extract_strided_slice %666 {offsets = [0, 0], sizes = [2, 32], strides = [1, 1]} : vector<2x128xf32> to vector<2x32xf32>
    %668 = vector.extract_strided_slice %666 {offsets = [0, 32], sizes = [2, 32], strides = [1, 1]} : vector<2x128xf32> to vector<2x32xf32>
    %669 = vector.extract_strided_slice %666 {offsets = [0, 64], sizes = [2, 32], strides = [1, 1]} : vector<2x128xf32> to vector<2x32xf32>
    %670 = vector.extract_strided_slice %666 {offsets = [0, 96], sizes = [2, 32], strides = [1, 1]} : vector<2x128xf32> to vector<2x32xf32>
    %671 = arith.mulf %668, %635 : vector<2x32xf32>
    %672 = arith.mulf %667, %669 : vector<2x32xf32>
    %673 = arith.addf %671, %672 : vector<2x32xf32>
    %674 = math.tanh %673 : vector<2x32xf32>
    %675 = arith.mulf %670, %674 : vector<2x32xf32>
    %676 = tpu.concatenate %393, %431, %469, %507, %545, %583, %621, %659 in 0 : vector<2x32xf32>, vector<2x32xf32>, vector<2x32xf32>, vector<2x32xf32>, vector<2x32xf32>, vector<2x32xf32>, vector<2x32xf32>, vector<2x32xf32> -> vector<16x32xf32>
    %677 = tpu.concatenate %675, %637, %599, %561, %523, %485, %447, %409 in 0 : vector<2x32xf32>, vector<2x32xf32>, vector<2x32xf32>, vector<2x32xf32>, vector<2x32xf32>, vector<2x32xf32>, vector<2x32xf32>, vector<2x32xf32> -> vector<16x32xf32>
    %c0_134 = arith.constant 0 : index
    %c0_135 = arith.constant 0 : index
    %c0_136 = arith.constant 0 : index
    %678 = vector.load %arg7[%c0_134, %c0_135, %c0_136] : memref<2x32x128xf32, #tpu.memory_space<vmem>>, vector<1x32x128xf32>
    %679 = vector.shape_cast %678 : vector<1x32x128xf32> to vector<32x128xf32>
    %cst_137 = arith.constant dense<0.000000e+00> : vector<16x128xf32>
    %680 = tpu.matmul %676, %679, %cst_137 {dimension_numbers = #tpu.dot_dimension_numbers<[1], [0], [0], [1], [0, 0, 1, 1], [], []>} : vector<16x32xf32>, vector<32x128xf32>, vector<16x128xf32> -> vector<16x128xf32>
    %c1_138 = arith.constant 1 : index
    %c0_139 = arith.constant 0 : index
    %c0_140 = arith.constant 0 : index
    %681 = vector.load %arg7[%c1_138, %c0_139, %c0_140] : memref<2x32x128xf32, #tpu.memory_space<vmem>>, vector<1x32x128xf32>
    %682 = vector.shape_cast %681 : vector<1x32x128xf32> to vector<32x128xf32>
    %cst_141 = arith.constant dense<0.000000e+00> : vector<16x128xf32>
    %683 = tpu.matmul %677, %682, %cst_141 {dimension_numbers = #tpu.dot_dimension_numbers<[1], [0], [0], [1], [0, 0, 1, 1], [], []>} : vector<16x32xf32>, vector<32x128xf32>, vector<16x128xf32> -> vector<16x128xf32>
    %684 = arith.addf %680, %683 : vector<16x128xf32>
    %c0_142 = arith.constant 0 : index
    %c0_143 = arith.constant 0 : index
    %685 = vector.load %arg8[%c0_142, %c0_143] : memref<1x128xf32, #tpu.memory_space<vmem>>, vector<1x128xf32>
    %686 = vector.broadcast %685 : vector<1x128xf32> to vector<16x128xf32>
    %687 = arith.addf %684, %686 : vector<16x128xf32>
    %c0_144 = arith.constant 0 : index
    %c0_145 = arith.constant 0 : index
    %688 = vector.load %arg9[%c0_144, %c0_145] : memref<16x128xf32, #tpu.memory_space<vmem>>, vector<16x128xf32>
    tpu.vector_store %arg9[%c0_144, %c0_145], %687 {strides = array<i32>} : memref<16x128xf32, #tpu.memory_space<vmem>>, vector<16x128xf32>,
    return
  }
}

</mosaic_0001>

<bundles_post_ra>
// kernel: tpu_custom_call.1
= control target key start
LH: loop header
LB: loop body
LE: loop exit
PB: predicated region body
PF: predicated region fallthrough
CT: control target
= control target key end

     0   :  { %14 = vsyncpa [#allocation3], 0  ;;  %s6678_s0 = inlined_call_operand.vmem [shape: s32[16,1], index: 0, kind: input, shape index: {}]   ;;  %s6679_s1 = inlined_call_operand.vmem [shape: f32[128,32], index: 1, kind: input, shape index: {}]   ;;  %s6680_s2 = inlined_call_operand.hbm [shape: f32[2,32,128], index: 2, kind: input, shape index: {}]   ;;  %s6681_s3 = inlined_call_operand.hbm [shape: f32[1,2,32,128], index: 3, kind: input, shape index: {}]   ;;  %s6682_s4 = inlined_call_operand.hbm [shape: f32[1,2,32,128], index: 4, kind: input, shape index: {}]   ;;  %s6683_s5 = inlined_call_operand.vmem [shape: f32[2,2,32,128], index: 5, kind: input, shape index: {}]   ;;  %s6684_s6 = inlined_call_operand.vmem [shape: f32[2,2,1,128], index: 6, kind: input, shape index: {}]   ;;  %s6685_s7 = inlined_call_operand.hbm [shape: f32[2,32,128], index: 7, kind: input, shape index: {}]   ;;  %s6686_s8 = inlined_call_operand.vmem [shape: f32[1,128], index: 8, kind: input, shape index: {}]   ;;  %s6687_s9 = inlined_call_operand.hbm [shape: f32[16,128], index: 9, kind: output, shape index: {}]  }
   0x1   :  { %15 = vsyncpa [#allocation6], 0 }
   0x2   :  { %16 = vsyncpa [#allocation9], 0 }
   0x3   :  { %17 = vsyncpa [#allocation4], 0  ;;  %s5572_s30 = smov [#allocation5]   ;;  %s5573_s11 = smov [#allocation2]  }
   0x4   :  { %s39_s10 = sshll.u32 %s5572_s30, 4  ;;  %s27_s12 = sshll.u32 %s5573_s11, 4  ;;  %s40_s10 = int_to_ptr.vmem [resolvable:$true] %s39_s10  ;;  %s28_s12 = int_to_ptr.vmem [resolvable:$true] %s27_s12 }
   0x5   :  { %s5472_s13 = scalar_lea.vmem %s40_s10, 1024  ;;  %p5477_p1 = scmp.lt.s32.totalorder %s40_s10, %s40_s10 }
   0x6   :  { %p5473_p0 = scmp.ne.s32.totalorder %s40_s10, %s5472_s13  ;;  %p5478_p2 = scmp.lt.s32.totalorder %s5472_s13, %s5472_s13 }
   0x8   :  { %p5479_p3 = por %p5478_p2, %p5477_p1 }
   0xa   :  { %p5480_p4 = pnand %p5479_p3, %p5473_p0 }
   0xc   :  { %5483 = shalt.err (!%p5480_p4)
}
   0xd   :  { %s5574_s14 = smov 128   ;;  %s5575_s15 = smov 8  }
   0xe   :  { %45 = dma.hbm_to_vmem [thread:$0]  %s6681_s3, 1024, %s40_s10, [#allocation6], %s5574_s14, %s5574_s14, %s5575_s15  }
   0xf   :  { %s5492_s18 = scalar_lea.vmem %s28_s12, 1024  ;;  %p5497_p6 = scmp.lt.s32.totalorder %s28_s12, %s28_s12 }
  0x10   :  { %p5493_p5 = scmp.ne.s32.totalorder %s28_s12, %s5492_s18  ;;  %p5498_p7 = scmp.lt.s32.totalorder %s5492_s18, %s5492_s18 }
  0x12   :  { %p5499_p8 = por %p5498_p7, %p5497_p6 }
  0x14   :  { %p5500_p9 = pnand %p5499_p8, %p5493_p5 }
  0x16   :  { %5503 = shalt.err (!%p5500_p9)
}
  0x17   :  { %33 = dma.hbm_to_vmem [thread:$0]  %s6680_s2, 1024, %s28_s12, [#allocation3], %s5574_s14, %s5574_s14, %s5575_s15  }
  0x18   :  { %s5576_s21 = smov [#allocation7]   ;;  %s5577_s23 = smov [#allocation8]  }
  0x19   :  { %s51_s22 = sshll.u32 %s5576_s21, 4  ;;  %s67_s24 = sshll.u32 %s5577_s23, 4  ;;  %s52_s22 = int_to_ptr.vmem [resolvable:$true] %s51_s22  ;;  %s68_s24 = int_to_ptr.vmem [resolvable:$true] %s67_s24 }
  0x1a   :  { %s5512_s3 = scalar_lea.vmem %s52_s22, 1024  ;;  %p5517_p11 = scmp.lt.s32.totalorder %s52_s22, %s52_s22 }
  0x1b   :  { %p5513_p10 = scmp.ne.s32.totalorder %s52_s22, %s5512_s3  ;;  %p5518_p12 = scmp.lt.s32.totalorder %s5512_s3, %s5512_s3 }
  0x1d   :  { %p5519_p13 = por %p5518_p12, %p5517_p11 }
  0x1f   :  { %p5520_p0 = pnand %p5519_p13, %p5513_p10 }
  0x21   :  { %5523 = shalt.err (!%p5520_p0)
}
  0x22   :  { %57 = dma.hbm_to_vmem [thread:$0]  %s6682_s4, 1024, %s52_s22, [#allocation6], %s5574_s14, %s5574_s14, %s5575_s15  }
  0x23   :  { %s5532_s2 = scalar_lea.vmem %s68_s24, 1024  ;;  %p5537_p2 = scmp.lt.s32.totalorder %s68_s24, %s68_s24 }
  0x24   :  { %p5533_p1 = scmp.ne.s32.totalorder %s68_s24, %s5532_s2  ;;  %p5538_p3 = scmp.lt.s32.totalorder %s5532_s2, %s5532_s2 }
  0x26   :  { %p5539_p4 = por %p5538_p3, %p5537_p2 }
  0x28   :  { %p5540_p5 = pnand %p5539_p4, %p5533_p1 }
  0x2a   :  { %5543 = shalt.err (!%p5540_p5)
}
  0x2b   :  { %73 = dma.hbm_to_vmem [thread:$0]  %s6685_s7, 1024, %s68_s24, [#allocation9], %s5574_s14, %s5574_s14, %s5575_s15  }
  0x2c   :  { %5564 = dma.done.wait [#allocation3], 1024  }
  0x2d   :  { %5565 = vsyncadd [#allocation3], 4294966272 }
  0x2e   :  { %5566 = dma.done.wait [#allocation6], 2048  }
  0x2f   :  { %5567 = vsyncadd [#allocation6], 4294965248 }
  0x30   :  { %5568 = dma.done.wait [#allocation9], 1024  }
  0x31   :  { %5569 = vsyncadd [#allocation9], 4294966272  ;;  %v5578_v0 = vmov 0   ;;  %v88_v1 = vld [vmem:[%s6678_s0] sm:$0xff]  ;;  %v119_v2 = vld [vmem:[%s6679_s1 + $0x78] sm:$0xff]  ;;  %v90_v22 = vlaneseq  ;;  %v5579_v25 = vmov 1.0  }
  0x32   :  { %5199 = vset.pattern.permute.xlu0 %v5578_v0  ;;  %4711 = vmatprep.subr.mxu0 %v119_v2  ;;  %v118_v3 = vld [vmem:[%s6679_s1 + $0x70] sm:$0xff]  ;;  %v89_v4 = vld [vmem:[%s6678_s0 + $0x8] sm:$0xff]  ;;  %v116_v6 = vld [vmem:[%s6679_s1 + $0x60] sm:$0xff]  ;;  %v5580_v30 = vmov 0.0   ;;  %vm5581_vm2 = vmmov 0   ;;  %vm209_vm3 = vcmask 261120  }
  0x33   :  { %93 = vperm.xlu0 %5199, %v88_v1   ;;  %4712 = vmatpush3.msra.mxu0 %v119_v2  ;;  %v117_v5 = vld [vmem:[%s6679_s1 + $0x68] sm:$0xff]  ;;  %v115_v7 = vld [vmem:[%s6679_s1 + $0x58] sm:$0xff]  ;;  %v200_v9 = vld [vmem:[#allocation2 + $0x10] sm:$0xff]  ;;  %v5713_v23 = vand.u32 127, %v90_v22  ;;  %s5582_s13 = smov 64   ;;  %s5583_s16 = smov 32  }
  0x34   :  { %4713 = vmatprep.subr.mxu0 %v118_v3  ;;  %v201_v8 = vld [vmem:[#allocation2 + $0x18] sm:$0xff]  ;;  %v114_v10 = vld [vmem:[%s6679_s1 + $0x50] sm:$0xff]  ;;  %v199_v11 = vld [vmem:[#allocation2 + $0x8] sm:$0xff]  ;;  %vm2086_vm7 = vcmask 1041408   ;;  %vm2088_vm8 = vcmask 1043456   ;;  %vm2090_vm9 = vcmask 1045504  }
  0x35   :  { %4714 = vmatpush3.msra.mxu0 %v118_v3  ;;  %4746 = vmatprep.subr.mxu1 %v201_v8  ;;  %v113_v12 = vld [vmem:[%s6679_s1 + $0x48] sm:$0xff]  ;;  %v112_v13 = vld [vmem:[%s6679_s1 + $0x40] sm:$0xff]  ;;  %v111_v14 = vld [vmem:[%s6679_s1 + $0x38] sm:$0xff]  ;;  %vm195_vm4 = vcmp.ge.s32.totalorder %v5713_v23, 64  ;;  %vm196_vm5 = vcmp.lt.s32.totalorder %v5713_v23, 96  ;;  %s5584_s26 = smov [#allocation10]  }
  0x36   :  { %4715 = vmatprep.subr.mxu0 %v117_v5  ;;  %4747 = vmatpush3.msra.mxu1 %v201_v8  ;;  %v110_v15 = vld [vmem:[%s6679_s1 + $0x30] sm:$0xff]  ;;  %v109_v16 = vld [vmem:[%s6679_s1 + $0x28] sm:$0xff]  ;;  %v108_v17 = vld [vmem:[%s6679_s1 + $0x20] sm:$0xff] }
  0x37   :  { %96 = vperm.xlu0 %5199, %v89_v4   ;;  %4716 = vmatpush3.msra.mxu0 %v117_v5  ;;  %v107_v18 = vld [vmem:[%s6679_s1 + $0x18] sm:$0xff]  ;;  %v106_v19 = vld [vmem:[%s6679_s1 + $0x10] sm:$0xff]  ;;  %v105_v20 = vld [vmem:[%s6679_s1 + $0x8] sm:$0xff] }
  0x38   :  { %4717 = vmatprep.subr.mxu0 %v116_v6  ;;  %4748 = vmatprep.subr.mxu1 %v200_v9  ;;  %v104_v21 = vld [vmem:[%s6679_s1] sm:$0xff]  ;;  %v295_v28 = vld [vmem:[#allocation2 + $0x38] sm:$0xff]  ;;  %v5727_v31 = vld [vmem:[%s6683_s5 + $0x10] sm:$0xff] }
  0x39   :  { %4718 = vmatpush3.msra.mxu0 %v116_v6  ;;  %4749 = vmatpush3.msra.mxu1 %v200_v9  ;;  %v198_v27 = vld [vmem:[#allocation2] sm:$0xff]  ;;  %v5720_v29 = vld [vmem:[%s6683_s5 + $0x18] sm:$0xff]  ;;  %v5734_v32 = vld [vmem:[%s6683_s5 + $0x8] sm:$0xff] }
  0x3a   :  { %4719 = vmatprep.subr.mxu0 %v115_v7  ;;  %4750 = vmatprep.subr.mxu1 %v199_v11  ;;  %v5741_v33 = vld [vmem:[%s6683_s5] sm:$0xff]  ;;  %v294_v36 = vld [vmem:[#allocation2 + $0x30] sm:$0xff]  ;;  %v293_v37 = vld [vmem:[#allocation2 + $0x28] sm:$0xff] }
  0x3b   :  { %4720 = vmatpush3.msra.mxu0 %v115_v7  ;;  %4751 = vmatpush3.msra.mxu1 %v199_v11  ;;  %v292_v38 = vld [vmem:[#allocation2 + $0x20] sm:$0xff]  ;;  %v5764_v39 = vld [vmem:[%s6683_s5 + $0x38] sm:$0xff]  ;;  %v5772_v40 = vld [vmem:[%s6683_s5 + $0x30] sm:$0xff] }
  0x3c   :  { %4721 = vmatprep.subr.mxu0 %v114_v10  ;;  %4752 = vmatprep.subr.mxu1 %v198_v27  ;;  %v5781_v41 = vld [vmem:[%s6683_s5 + $0x28] sm:$0xff]  ;;  %v5788_v42 = vld [vmem:[%s6683_s5 + $0x20] sm:$0xff]  ;;  %vm5823_vm6 = vmand %vm195_vm4, %vm196_vm5 }
  0x3d   :  { %4722 = vmatpush3.msra.mxu0 %v114_v10  ;;  %4753 = vmatpush3.msra.mxu1 %v198_v27  ;;  %v4389_v43 = vld [vmem:[%s6684_s6] ss:$0 sm:$0xff]  ;;  %v4393_v48 = vld [vmem:[%s6684_s6 + $0x1] ss:$0 sm:$0xff] }
  0x3e   :  { %4723 = vmatprep.subr.mxu0 %v113_v12  ;;  %4757 = vmatprep.subr.mxu1 %v295_v28 }
  0x3f   :  { %4724 = vmatpush3.msra.mxu0 %v113_v12 }
  0x40   :  { %4725 = vmatprep.subr.mxu0 %v112_v13 }
  0x41   :  { %4726 = vmatpush3.msra.mxu0 %v112_v13 }
  0x42   :  { %4727 = vmatprep.subr.mxu0 %v111_v14 }
  0x43   :  { %4728 = vmatpush3.msra.mxu0 %v111_v14 }
  0x44   :  { %4729 = vmatprep.subr.mxu0 %v110_v15 }
  0x45   :  { %4730 = vmatpush3.msra.mxu0 %v110_v15 }
  0x46   :  { %4731 = vmatprep.subr.mxu0 %v109_v16 }
  0x47   :  { %4732 = vmatpush3.msra.mxu0 %v109_v16 }
  0x48   :  { %4733 = vmatprep.subr.mxu0 %v108_v17 }
  0x49   :  { %4734 = vmatpush3.msra.mxu0 %v108_v17 }
  0x4a   :  { %4735 = vmatprep.subr.mxu0 %v107_v18 }
  0x4b   :  { %4736 = vmatpush3.msra.mxu0 %v107_v18 }
  0x4c   :  { %4737 = vmatprep.subr.mxu0 %v106_v19 }
  0x4d   :  { %4738 = vmatpush3.msra.mxu0 %v106_v19 }
  0x4e   :  { %4739 = vmatprep.subr.mxu0 %v105_v20 }
  0x4f   :  { %4740 = vmatpush3.msra.mxu0 %v105_v20 }
  0x50   :  { %4741 = vmatprep.subr.mxu0 %v104_v21 }
  0x51   :  { %4742 = vmatpush3.msra.mxu0 %v104_v21 }
  0x52   :  { %4790 = vmatprep.subr.mxu0 %v5580_v30 }
  0xae   :  { %v94_v24 = vpop.permute.xlu0 %93 }
  0xaf   :  { %vm98_vm0 = vcmp.eq.s32.totalorder %v5713_v23, %v94_v24 }
  0xb0   :  { %4743 = vmatprep.mubr.msk.f32.mxu0 %vm98_vm0, %v5579_v25 }
  0xb2   :  { %v97_v26 = vpop.permute.xlu0 %96 }
  0xb3   :  { %vm99_vm1 = vcmp.eq.s32.totalorder %v5713_v23, %v97_v26 }
  0xb4   :  { %4744 = vmatmul.mubr.msk.f32.vlgmr.msra.gmra.mxu0 %vm99_vm1, %v5579_v25 }
  0xb5   :  { %4791 = vmatpush3.msra.mxu0 %v5720_v29  ;;  %4798 = vmatprep.mubr.msk.f32.mxu0 %vm5581_vm2, %v5580_v30 }
  0xb6   :  { %4792 = vmatprep.subr.mxu0 %v5580_v30 }
  0xb7   :  { %4793 = vmatpush3.msra.mxu0 %v5727_v31 }
  0xb8   :  { %4794 = vmatprep.subr.mxu0 %v5580_v30 }
  0xb9   :  { %4795 = vmatpush3.msra.mxu0 %v5734_v32 }
  0xba   :  { %4796 = vmatprep.subr.mxu0 %v5580_v30 }
  0xbb   :  { %4797 = vmatpush3.msra.mxu0 %v5741_v33 }
  0xbc   :  { %4812 = vmatprep.subr.mxu0 %v5580_v30 }
 0x174   :  { %v4745_v34 = vpop.f32.mrf.mxu0 }
 0x176   :  { %v186_v35 = vpop.f32.mrf.mxu0 }
 0x177   :  { %4754 = vmatprep.mubr.msk.f32.mxu1 %vm209_vm3, %v186_v35 }
 0x178   :  { %4755 = vmatmul.mubr.msk.f32.vlgmr.msra.gmra.mxu1 %vm209_vm3, %v4745_v34 }
 0x179   :  { %4758 = vmatpush3.msra.mxu1 %v295_v28  ;;  %4765 = vmatprep.mubr.msk.f32.mxu1 %vm209_vm3, %v186_v35 }
 0x17a   :  { %4759 = vmatprep.subr.mxu1 %v294_v36 }
 0x17b   :  { %4760 = vmatpush3.msra.mxu1 %v294_v36 }
 0x17c   :  { %4761 = vmatprep.subr.mxu1 %v293_v37 }
 0x17d   :  { %4762 = vmatpush3.msra.mxu1 %v293_v37 }
 0x17e   :  { %4763 = vmatprep.subr.mxu1 %v292_v38 }
 0x17f   :  { %4764 = vmatpush3.msra.mxu1 %v292_v38 }
 0x180   :  { %4766 = vmatmul.mubr.msk.f32.vlgmr.msra.gmra.mxu1 %vm209_vm3, %v4745_v34  ;;  %4768 = vmatprep.subr.mxu1 %v5580_v30 }
 0x181   :  { %4769 = vmatpush3.msra.mxu1 %v5720_v29  ;;  %4776 = vmatprep.mubr.msk.f32.mxu1 %vm5581_vm2, %v5580_v30 }
 0x182   :  { %4770 = vmatprep.subr.mxu1 %v5580_v30 }
 0x183   :  { %4771 = vmatpush3.msra.mxu1 %v5727_v31 }
 0x184   :  { %4772 = vmatprep.subr.mxu1 %v5580_v30 }
 0x185   :  { %4773 = vmatpush3.msra.mxu1 %v5734_v32 }
 0x186   :  { %4774 = vmatprep.subr.mxu1 %v5580_v30 }
 0x187   :  { %4775 = vmatpush3.msra.mxu1 %v5741_v33 }
 0x188   :  { %4777 = vmatmul.mubr.f32.vlgmr.msra.gmra.mxu1 %v5580_v30  ;;  %4779 = vmatprep.subr.mxu1 %v5580_v30 }
 0x189   :  { %4780 = vmatpush3.msra.mxu1 %v5764_v39  ;;  %4787 = vmatprep.mubr.msk.f32.mxu1 %vm5581_vm2, %v5580_v30 }
 0x18a   :  { %4781 = vmatprep.subr.mxu1 %v5580_v30 }
 0x18b   :  { %4782 = vmatpush3.msra.mxu1 %v5772_v40 }
 0x18c   :  { %4783 = vmatprep.subr.mxu1 %v5580_v30 }
 0x18d   :  { %4784 = vmatpush3.msra.mxu1 %v5781_v41 }
 0x18e   :  { %4785 = vmatprep.subr.mxu1 %v5580_v30 }
 0x18f   :  { %4786 = vmatpush3.msra.mxu1 %v5788_v42 }
 0x190   :  { %4788 = vmatmul.mubr.f32.vlgmr.msra.gmra.mxu1 %v5580_v30  ;;  %4801 = vmatprep.subr.mxu1 %v5580_v30 }
 0x191   :  { %4802 = vmatpush3.msra.mxu1 %v5764_v39  ;;  %4809 = vmatprep.mubr.msk.f32.mxu1 %vm5581_vm2, %v5580_v30 }
 0x192   :  { %4803 = vmatprep.subr.mxu1 %v5580_v30 }
 0x193   :  { %4804 = vmatpush3.msra.mxu1 %v5772_v40 }
 0x194   :  { %4805 = vmatprep.subr.mxu1 %v5580_v30 }
 0x195   :  { %4806 = vmatpush3.msra.mxu1 %v5781_v41 }
 0x196   :  { %4807 = vmatprep.subr.mxu1 %v5580_v30 }
 0x197   :  { %4808 = vmatpush3.msra.mxu1 %v5788_v42 }
 0x198   :  { %4823 = vmatprep.subr.mxu1 %v5580_v30 }
 0x238   :  { %v4756_v44 = vpop.f32.mrf.mxu1 }
 0x239   :  { %v5808_v45 = vadd.f32 %v4756_v44, %v4389_v43 }
 0x23a   :  { %v282_v46 = vpop.f32.mrf.mxu1 }
 0x23b   :  { %v5815_v51 = vadd.f32 %v4389_v43, %v282_v46 }
 0x240   :  { %v4767_v47 = vpop.f32.mrf.mxu1 }
 0x241   :  { %v5818_v57 = vadd.f32 %v4767_v47, %v4393_v48 }
 0x242   :  { %v370_v49 = vpop.f32.mrf.mxu1 }
 0x243   :  { %v5813_v50 = vadd.f32 %v4393_v48, %v370_v49 }
 0x248   :  { %v457_v52 = vpop.f32.mrf.mxu1 }
 0x249   :  { %v461_v53 = vadd.f32 %v457_v52, %v5815_v51 }
 0x24a   :  { %v4778_v54 = vpop.f32.mrf.mxu1 }
 0x24b   :  { %v4400_v55 = vmul.f32 -1.442695, %v461_v53 }
 0x24d   :  { %5200 = vpow2.f32 %v4400_v55 }
 0x250   :  { %v528_v56 = vpop.f32.mrf.mxu1 }
 0x251   :  { %v533_v58 = vrot.slane %v528_v56, 2 }
 0x252   :  { %v4789_v59 = vpop.f32.mrf.mxu1 }
 0x253   :  { %v535_v60 = vadd.f32 %v533_v58, %v5818_v57 }
 0x255   :  { %v4401_v61 = vmul.f32 -1.442695, %v535_v60 }
 0x257   :  { %5202 = vpow2.f32 %v4401_v61 }
 0x258   :  { %5204 = vtanh.f32 %v461_v53 }
 0x25a   :  { %v5201_v62 = vpop.eup %5200 }
 0x25b   :  { %v540_v63 = vadd.f32 1.0, %v5201_v62 }
 0x25d   :  { %5206 = vrcp.f32 %v540_v63 }
 0x25e   :  { %5208 = vtanh.f32 %v535_v60 }
 0x264   :  { %v5203_v0 = vpop.eup %5202 }
 0x265   :  { %v565_v1 = vadd.f32 1.0, %v5203_v0  ;;  %v5205_v3 = vpop.eup %5204 }
 0x267   :  { %5210 = vrcp.f32 %v565_v1 }
 0x26a   :  { %v5207_v4 = vpop.eup %5206 }
 0x26b   :  { %v543_v5 = vsel %vm5823_vm6, %v5205_v3, %v5207_v4  ;;  %v5209_v6 = vpop.eup %5208 }
 0x26c   :  { %546 = vrot.lane.b32.xlu1 %v543_v5, %s5582_s13  ;;  %v544_v13 = vmul.f32 0.0, %v543_v5 }
 0x274   :  { %v5211_v7 = vpop.eup %5210 }
 0x275   :  { %v568_v8 = vsel %vm5823_vm6, %v5209_v6, %v5211_v7 }
 0x276   :  { %571 = vrot.lane.b32.xlu1 %v568_v8, %s5582_s13  ;;  %v569_v16 = vmul.f32 0.0, %v568_v8 }
 0x2de   :  { %v547_v9 = vpop.permute.xlu1 %546 }
 0x2df   :  { %v549_v10 = vmul.f32 %v547_v9, %v543_v5 }
 0x2e1   :  { %551 = vrot.lane.b32.xlu0 %v549_v10, %s5583_s16 }
 0x2e8   :  { %v572_v11 = vpop.permute.xlu1 %571 }
 0x2e9   :  { %v574_v12 = vmul.f32 %v572_v11, %v568_v8 }
 0x2eb   :  { %576 = vrot.lane.b32.xlu1 %v574_v12, %s5583_s16 }
 0x353   :  { %v552_v14 = vpop.permute.xlu0 %551 }
 0x354   :  { %v5835_v15 = vadd.f32 %v552_v14, %v544_v13 }
 0x356   :  { %5212 = vtanh.f32 %v5835_v15  ;;  %v754_v1 = vrot.slane %v5835_v15, 6 }
 0x35d   :  { %v577_v17 = vpop.permute.xlu1 %576 }
 0x35e   :  { %v5838_v18 = vadd.f32 %v577_v17, %v569_v16 }
 0x360   :  { %5214 = vtanh.f32 %v5838_v18  ;;  %v782_v6 = vrot.slane %v5838_v18, 2 }
 0x363   :  { %v5213_v19 = vpop.eup %5212 }
 0x364   :  { %557 = vrot.lane.b32.xlu0 %v5213_v19, %s5582_s13 }
 0x36d   :  { %v5215_v20 = vpop.eup %5214 }
 0x36e   :  { %582 = vrot.lane.b32.xlu1 %v5215_v20, %s5582_s13 }
 0x3d6   :  { %v558_v21 = vpop.permute.xlu0 %557 }
 0x3d7   :  { %v5843_v22 = vmul.f32 %v558_v21, %v543_v5 }
 0x3d9   :  { %587 = vrot.lane.b32.xlu0 %v5843_v22, %s5583_s16 }
 0x3e0   :  { %v583_v23 = vpop.permute.xlu1 %582 }
 0x3e1   :  { %v5847_v24 = vmul.f32 %v583_v23, %v568_v8 }
 0x3e3   :  { %v666_v25 = vrot.slane %v5847_v24, 6 }
 0x3e5   :  { %667 = vrot.lane.b32.xlu1 %v666_v25, %s5583_s16 }
 0x44b   :  { %v588_v26 = vpop.permute.xlu0 %587 }
 0x44c   :  { %4799 = vmatmul.mubr.msk.f32.vlgmr.msra.gmra.mxu0 %vm209_vm3, %v588_v26 }
 0x44d   :  { %4813 = vmatpush3.msra.mxu0 %v5720_v29  ;;  %4820 = vmatprep.mubr.msk.f32.mxu0 %vm5581_vm2, %v5580_v30 }
 0x44e   :  { %4814 = vmatprep.subr.mxu0 %v5580_v30 }
 0x44f   :  { %4815 = vmatpush3.msra.mxu0 %v5727_v31 }
 0x450   :  { %4816 = vmatprep.subr.mxu0 %v5580_v30 }
 0x451   :  { %4817 = vmatpush3.msra.mxu0 %v5734_v32 }
 0x452   :  { %4818 = vmatprep.subr.mxu0 %v5580_v30 }
 0x453   :  { %4819 = vmatpush3.msra.mxu0 %v5741_v33 }
 0x454   :  { %4834 = vmatprep.subr.mxu0 %v5580_v30 }
 0x457   :  { %v668_v27 = vpop.permute.xlu1 %667 }
 0x458   :  { %4810 = vmatmul.mubr.msk.f32.vlgmr.msra.gmra.mxu1 %vm209_vm3, %v668_v27 }
 0x459   :  { %4824 = vmatpush3.msra.mxu1 %v5764_v39  ;;  %4831 = vmatprep.mubr.msk.f32.mxu1 %vm5581_vm2, %v5580_v30 }
 0x45a   :  { %4825 = vmatprep.subr.mxu1 %v5580_v30 }
 0x45b   :  { %4826 = vmatpush3.msra.mxu1 %v5772_v40 }
 0x45c   :  { %4827 = vmatprep.subr.mxu1 %v5580_v30 }
 0x45d   :  { %4828 = vmatpush3.msra.mxu1 %v5781_v41 }
 0x45e   :  { %4829 = vmatprep.subr.mxu1 %v5580_v30 }
 0x45f   :  { %4830 = vmatpush3.msra.mxu1 %v5788_v42 }
 0x460   :  { %4845 = vmatprep.subr.mxu1 %v5580_v30 }
 0x50c   :  { %v657_v28 = vpop.f32.mrf.mxu0 }
 0x50d   :  { %v662_v34 = vrot.slane %v657_v28, 6 }
 0x50e   :  { %v4800_v35 = vpop.f32.mrf.mxu0 }
 0x50f   :  { %v664_v36 = vadd.f32 %v662_v34, %v5815_v51 }
 0x511   :  { %v4404_v37 = vmul.f32 -1.442695, %v664_v36 }
 0x513   :  { %5216 = vpow2.f32 %v4404_v37 }
 0x518   :  { %v737_v38 = vpop.f32.mrf.mxu1 }
 0x519   :  { %v742_v43 = vrot.slane %v737_v38, 4 }
 0x51a   :  { %v4811_v44 = vpop.f32.mrf.mxu1 }
 0x51b   :  { %v744_v46 = vadd.f32 %v742_v43, %v5818_v57 }
 0x51d   :  { %v4405_v47 = vmul.f32 -1.442695, %v744_v46 }
 0x51f   :  { %5218 = vpow2.f32 %v4405_v47 }
 0x520   :  { %v5217_v48 = vpop.eup %5216  ;;  %5220 = vtanh.f32 %v664_v36 }
 0x521   :  { %v749_v49 = vadd.f32 1.0, %v5217_v48 }
 0x523   :  { %5222 = vrcp.f32 %v749_v49 }
 0x524   :  { %5224 = vtanh.f32 %v744_v46 }
 0x52c   :  { %v5219_v52 = vpop.eup %5218 }
 0x52d   :  { %v777_v53 = vadd.f32 1.0, %v5219_v52  ;;  %v5221_v54 = vpop.eup %5220 }
 0x52f   :  { %5226 = vrcp.f32 %v777_v53 }
 0x530   :  { %v5223_v55 = vpop.eup %5222 }
 0x531   :  { %v752_v56 = vsel %vm5823_vm6, %v5221_v54, %v5223_v55  ;;  %v5225_v58 = vpop.eup %5224 }
 0x532   :  { %758 = vrot.lane.b32.xlu0 %v752_v56, %s5582_s13  ;;  %v756_v3 = vmul.f32 %v754_v1, %v752_v56 }
 0x53c   :  { %v5227_v59 = vpop.eup %5226 }
 0x53d   :  { %v780_v60 = vsel %vm5823_vm6, %v5225_v58, %v5227_v59 }
 0x53e   :  { %786 = vrot.lane.b32.xlu1 %v780_v60, %s5582_s13  ;;  %v784_v7 = vmul.f32 %v782_v6, %v780_v60 }
 0x5a4   :  { %v759_v61 = vpop.permute.xlu0 %758 }
 0x5a5   :  { %v761_v62 = vmul.f32 %v759_v61, %v752_v56 }
 0x5a7   :  { %763 = vrot.lane.b32.xlu0 %v761_v62, %s5583_s16 }
 0x5b0   :  { %v787_v63 = vpop.permute.xlu1 %786 }
 0x5b1   :  { %v789_v0 = vmul.f32 %v787_v63, %v780_v60 }
 0x5b3   :  { %791 = vrot.lane.b32.xlu1 %v789_v0, %s5583_s16 }
 0x619   :  { %v764_v4 = vpop.permute.xlu0 %763 }
 0x61a   :  { %v5884_v5 = vadd.f32 %v764_v4, %v756_v3 }
 0x61c   :  { %5228 = vtanh.f32 %v5884_v5  ;;  %v970_v59 = vrot.slane %v5884_v5, 6 }
 0x625   :  { %v792_v8 = vpop.permute.xlu1 %791 }
 0x626   :  { %v5888_v9 = vadd.f32 %v792_v8, %v784_v7 }
 0x628   :  { %5230 = vtanh.f32 %v5888_v9  ;;  %v998_v63 = vrot.slane %v5888_v9, 2 }
 0x629   :  { %v5229_v10 = vpop.eup %5228 }
 0x62a   :  { %769 = vrot.lane.b32.xlu0 %v5229_v10, %s5582_s13 }
 0x635   :  { %v5231_v11 = vpop.eup %5230 }
 0x636   :  { %797 = vrot.lane.b32.xlu1 %v5231_v11, %s5582_s13 }
 0x69c   :  { %v770_v12 = vpop.permute.xlu0 %769 }
 0x69d   :  { %v5893_v13 = vmul.f32 %v770_v12, %v752_v56 }
 0x69f   :  { %v802_v14 = vrot.slane %v5893_v13, 2  ;;  %v2087_v8 = vsel %vm2086_vm7, %v5843_v22, %v5893_v13 }
 0x6a1   :  { %803 = vrot.lane.b32.xlu0 %v802_v14, %s5583_s16 }
 0x6a8   :  { %v798_v15 = vpop.permute.xlu1 %797 }
 0x6a9   :  { %v5897_v16 = vmul.f32 %v798_v15, %v780_v60 }
 0x6ab   :  { %v882_v17 = vrot.slane %v5897_v16, 4 }
 0x6ad   :  { %883 = vrot.lane.b32.xlu1 %v882_v17, %s5583_s16 }
 0x713   :  { %v804_v18 = vpop.permute.xlu0 %803 }
 0x714   :  { %4821 = vmatmul.mubr.msk.f32.vlgmr.msra.gmra.mxu0 %vm209_vm3, %v804_v18 }
 0x715   :  { %4835 = vmatpush3.msra.mxu0 %v5720_v29  ;;  %4842 = vmatprep.mubr.msk.f32.mxu0 %vm5581_vm2, %v5580_v30 }
 0x716   :  { %4836 = vmatprep.subr.mxu0 %v5580_v30 }
 0x717   :  { %4837 = vmatpush3.msra.mxu0 %v5727_v31 }
 0x718   :  { %4838 = vmatprep.subr.mxu0 %v5580_v30 }
 0x719   :  { %4839 = vmatpush3.msra.mxu0 %v5734_v32 }
 0x71a   :  { %4840 = vmatprep.subr.mxu0 %v5580_v30 }
 0x71b   :  { %4841 = vmatpush3.msra.mxu0 %v5741_v33 }
 0x71c   :  { %4856 = vmatprep.subr.mxu0 %v5580_v30 }
 0x71f   :  { %v884_v19 = vpop.permute.xlu1 %883 }
 0x720   :  { %4832 = vmatmul.mubr.msk.f32.vlgmr.msra.gmra.mxu1 %vm209_vm3, %v884_v19 }
 0x721   :  { %4846 = vmatpush3.msra.mxu1 %v5764_v39  ;;  %4853 = vmatprep.mubr.msk.f32.mxu1 %vm5581_vm2, %v5580_v30 }
 0x722   :  { %4847 = vmatprep.subr.mxu1 %v5580_v30 }
 0x723   :  { %4848 = vmatpush3.msra.mxu1 %v5772_v40 }
 0x724   :  { %4849 = vmatprep.subr.mxu1 %v5580_v30 }
 0x725   :  { %4850 = vmatpush3.msra.mxu1 %v5781_v41 }
 0x726   :  { %4851 = vmatprep.subr.mxu1 %v5580_v30 }
 0x727   :  { %4852 = vmatpush3.msra.mxu1 %v5788_v42 }
 0x728   :  { %4867 = vmatprep.subr.mxu1 %v5580_v30 }
 0x7d4   :  { %v873_v20 = vpop.f32.mrf.mxu0 }
 0x7d5   :  { %v878_v21 = vrot.slane %v873_v20, 4 }
 0x7d6   :  { %v4822_v23 = vpop.f32.mrf.mxu0 }
 0x7d7   :  { %v880_v25 = vadd.f32 %v878_v21, %v5815_v51 }
 0x7d9   :  { %v4408_v26 = vmul.f32 -1.442695, %v880_v25 }
 0x7db   :  { %5232 = vpow2.f32 %v4408_v26 }
 0x7e0   :  { %v953_v27 = vpop.f32.mrf.mxu1 }
 0x7e1   :  { %v958_v28 = vrot.slane %v953_v27, 6 }
 0x7e2   :  { %v4833_v34 = vpop.f32.mrf.mxu1 }
 0x7e3   :  { %v960_v35 = vadd.f32 %v958_v28, %v5818_v57 }
 0x7e5   :  { %v4409_v36 = vmul.f32 -1.442695, %v960_v35 }
 0x7e7   :  { %5234 = vpow2.f32 %v4409_v36 }
 0x7e8   :  { %v5233_v37 = vpop.eup %5232  ;;  %5236 = vtanh.f32 %v880_v25 }
 0x7e9   :  { %v965_v38 = vadd.f32 1.0, %v5233_v37 }
 0x7eb   :  { %5238 = vrcp.f32 %v965_v38 }
 0x7ec   :  { %5240 = vtanh.f32 %v960_v35 }
 0x7f4   :  { %v5235_v43 = vpop.eup %5234 }
 0x7f5   :  { %v993_v44 = vadd.f32 1.0, %v5235_v43  ;;  %v5237_v46 = vpop.eup %5236 }
 0x7f7   :  { %5242 = vrcp.f32 %v993_v44 }
 0x7f8   :  { %v5239_v47 = vpop.eup %5238 }
 0x7f9   :  { %v968_v48 = vsel %vm5823_vm6, %v5237_v46, %v5239_v47  ;;  %v5241_v49 = vpop.eup %5240 }
 0x7fa   :  { %974 = vrot.lane.b32.xlu0 %v968_v48, %s5582_s13  ;;  %v972_v60 = vmul.f32 %v970_v59, %v968_v48 }
 0x804   :  { %v5243_v52 = vpop.eup %5242 }
 0x805   :  { %v996_v53 = vsel %vm5823_vm6, %v5241_v49, %v5243_v52 }
 0x806   :  { %1002 = vrot.lane.b32.xlu1 %v996_v53, %s5582_s13  ;;  %v1000_v0 = vmul.f32 %v998_v63, %v996_v53 }
 0x86c   :  { %v975_v54 = vpop.permute.xlu0 %974 }
 0x86d   :  { %v977_v55 = vmul.f32 %v975_v54, %v968_v48 }
 0x86f   :  { %979 = vrot.lane.b32.xlu0 %v977_v55, %s5583_s16 }
 0x878   :  { %v1003_v56 = vpop.permute.xlu1 %1002 }
 0x879   :  { %v1005_v58 = vmul.f32 %v1003_v56, %v996_v53 }
 0x87b   :  { %1007 = vrot.lane.b32.xlu1 %v1005_v58, %s5583_s16 }
 0x8e1   :  { %v980_v61 = vpop.permute.xlu0 %979 }
 0x8e2   :  { %v5934_v62 = vadd.f32 %v980_v61, %v972_v60 }
 0x8e4   :  { %5244 = vtanh.f32 %v5934_v62  ;;  %v1183_v49 = vrot.slane %v5934_v62, 6 }
 0x8ed   :  { %v1008_v1 = vpop.permute.xlu1 %1007 }
 0x8ee   :  { %v5938_v3 = vadd.f32 %v1008_v1, %v1000_v0 }
 0x8f0   :  { %5246 = vtanh.f32 %v5938_v3  ;;  %v1211_v55 = vrot.slane %v5938_v3, 2 }
 0x8f1   :  { %v5245_v4 = vpop.eup %5244 }
 0x8f2   :  { %985 = vrot.lane.b32.xlu0 %v5245_v4, %s5582_s13 }
 0x8fd   :  { %v5247_v6 = vpop.eup %5246 }
 0x8fe   :  { %1013 = vrot.lane.b32.xlu1 %v5247_v6, %s5582_s13 }
 0x964   :  { %v986_v5 = vpop.permute.xlu0 %985 }
 0x965   :  { %v988_v7 = vmul.f32 %v986_v5, %v968_v48 }
 0x967   :  { %v1018_v9 = vrot.slane %v988_v7, 4  ;;  %v5947_v10 = vsel %vm2088_vm8, %v2087_v8, %v988_v7 }
 0x969   :  { %1019 = vrot.lane.b32.xlu0 %v1018_v9, %s5583_s16 }
 0x970   :  { %v1014_v11 = vpop.permute.xlu1 %1013 }
 0x971   :  { %v5950_v12 = vmul.f32 %v1014_v11, %v996_v53 }
 0x973   :  { %v1098_v14 = vrot.slane %v5950_v12, 2 }
 0x975   :  { %1099 = vrot.lane.b32.xlu1 %v1098_v14, %s5583_s16 }
 0x9db   :  { %v1020_v15 = vpop.permute.xlu0 %1019 }
 0x9dc   :  { %4843 = vmatmul.mubr.msk.f32.vlgmr.msra.gmra.mxu0 %vm209_vm3, %v1020_v15 }
 0x9dd   :  { %4857 = vmatpush3.msra.mxu0 %v5720_v29  ;;  %4864 = vmatprep.mubr.msk.f32.mxu0 %vm5581_vm2, %v5580_v30 }
 0x9de   :  { %4858 = vmatprep.subr.mxu0 %v5580_v30 }
 0x9df   :  { %4859 = vmatpush3.msra.mxu0 %v5727_v31 }
 0x9e0   :  { %4860 = vmatprep.subr.mxu0 %v5580_v30 }
 0x9e1   :  { %4861 = vmatpush3.msra.mxu0 %v5734_v32 }
 0x9e2   :  { %4862 = vmatprep.subr.mxu0 %v5580_v30 }
 0x9e3   :  { %4863 = vmatpush3.msra.mxu0 %v5741_v33 }
 0x9e4   :  { %4878 = vmatprep.subr.mxu0 %v5580_v30 }
 0x9e7   :  { %v1100_v22 = vpop.permute.xlu1 %1099 }
 0x9e8   :  { %4854 = vmatmul.mubr.msk.f32.vlgmr.msra.gmra.mxu1 %vm209_vm3, %v1100_v22 }
 0x9e9   :  { %4868 = vmatpush3.msra.mxu1 %v5764_v39  ;;  %4875 = vmatprep.mubr.msk.f32.mxu1 %vm5581_vm2, %v5580_v30 }
 0x9ea   :  { %4869 = vmatprep.subr.mxu1 %v5580_v30 }
 0x9eb   :  { %4870 = vmatpush3.msra.mxu1 %v5772_v40 }
 0x9ec   :  { %4871 = vmatprep.subr.mxu1 %v5580_v30 }
 0x9ed   :  { %4872 = vmatpush3.msra.mxu1 %v5781_v41 }
 0x9ee   :  { %4873 = vmatprep.subr.mxu1 %v5580_v30 }
 0x9ef   :  { %4874 = vmatpush3.msra.mxu1 %v5788_v42 }
 0x9f0   :  { %4889 = vmatprep.subr.mxu1 %v5580_v30 }
 0xa9c   :  { %v1089_v13 = vpop.f32.mrf.mxu0 }
 0xa9d   :  { %v1094_v17 = vrot.slane %v1089_v13, 2 }
 0xa9e   :  { %v4844_v18 = vpop.f32.mrf.mxu0 }
 0xa9f   :  { %v1096_v19 = vadd.f32 %v1094_v17, %v5815_v51 }
 0xaa1   :  { %v4412_v20 = vmul.f32 -1.442695, %v1096_v19 }
 0xaa3   :  { %5248 = vpow2.f32 %v4412_v20 }
 0xaa8   :  { %v1169_v21 = vpop.f32.mrf.mxu1 }
 0xaa9   :  { %v1173_v23 = vadd.f32 %v1169_v21, %v5818_v57 }
 0xaaa   :  { %v4855_v25 = vpop.f32.mrf.mxu1 }
 0xaab   :  { %v4413_v26 = vmul.f32 -1.442695, %v1173_v23 }
 0xaad   :  { %5250 = vpow2.f32 %v4413_v26 }
 0xaae   :  { %5252 = vtanh.f32 %v1096_v19 }
 0xab0   :  { %v5249_v27 = vpop.eup %5248 }
 0xab1   :  { %v1178_v28 = vadd.f32 1.0, %v5249_v27 }
 0xab3   :  { %5254 = vrcp.f32 %v1178_v28 }
 0xab4   :  { %5256 = vtanh.f32 %v1173_v23 }
 0xaba   :  { %v5251_v34 = vpop.eup %5250 }
 0xabb   :  { %v1206_v35 = vadd.f32 1.0, %v5251_v34  ;;  %v5253_v36 = vpop.eup %5252 }
 0xabd   :  { %5258 = vrcp.f32 %v1206_v35 }
 0xac0   :  { %v5255_v37 = vpop.eup %5254 }
 0xac1   :  { %v1181_v51 = vsel %vm5823_vm6, %v5253_v36, %v5255_v37  ;;  %v5257_v38 = vpop.eup %5256 }
 0xac2   :  { %1187 = vrot.lane.b32.xlu0 %v1181_v51, %s5582_s13  ;;  %v1185_v52 = vmul.f32 %v1183_v49, %v1181_v51 }
 0xaca   :  { %v5259_v57 = vpop.eup %5258 }
 0xacb   :  { %v1209_v43 = vsel %vm5823_vm6, %v5257_v38, %v5259_v57 }
 0xacc   :  { %1215 = vrot.lane.b32.xlu1 %v1209_v43, %s5582_s13  ;;  %v1213_v56 = vmul.f32 %v1211_v55, %v1209_v43 }
 0xb34   :  { %v1188_v44 = vpop.permute.xlu0 %1187 }
 0xb35   :  { %v1190_v46 = vmul.f32 %v1188_v44, %v1181_v51 }
 0xb37   :  { %1192 = vrot.lane.b32.xlu0 %v1190_v46, %s5583_s16 }
 0xb3e   :  { %v1216_v47 = vpop.permute.xlu1 %1215 }
 0xb3f   :  { %v1218_v48 = vmul.f32 %v1216_v47, %v1209_v43 }
 0xb41   :  { %1220 = vrot.lane.b32.xlu1 %v1218_v48, %s5583_s16 }
 0xba9   :  { %v1193_v53 = vpop.permute.xlu0 %1192 }
 0xbaa   :  { %v5987_v54 = vadd.f32 %v1193_v53, %v1185_v52 }
 0xbac   :  { %5260 = vtanh.f32 %v5987_v54 }
 0xbb3   :  { %v1221_v58 = vpop.permute.xlu1 %1220 }
 0xbb4   :  { %v5991_v59 = vadd.f32 %v1221_v58, %v1213_v56 }
 0xbb6   :  { %5262 = vtanh.f32 %v5991_v59  ;;  %v1423_v44 = vrot.slane %v5991_v59, 2 }
 0xbb9   :  { %v5261_v60 = vpop.eup %5260 }
 0xbba   :  { %1198 = vrot.lane.b32.xlu0 %v5261_v60, %s5582_s13 }
 0xbc3   :  { %v5263_v61 = vpop.eup %5262 }
 0xbc4   :  { %1226 = vrot.lane.b32.xlu1 %v5263_v61, %s5582_s13 }
 0xc2c   :  { %v1199_v62 = vpop.permute.xlu0 %1198 }
 0xc2d   :  { %v1201_v63 = vmul.f32 %v1199_v62, %v1181_v51  ;;  %v1395_v51 = vrot.slane %v5987_v54, 6 }
 0xc2f   :  { %v1231_v0 = vrot.slane %v1201_v63, 6  ;;  %v5998_v1 = vsel %vm2090_vm9, %v5947_v10, %v1201_v63 }
 0xc31   :  { %1232 = vrot.lane.b32.xlu0 %v1231_v0, %s5583_s16 }
 0xc36   :  { %v1227_v3 = vpop.permute.xlu1 %1226 }
 0xc37   :  { %v6001_v4 = vmul.f32 %v1227_v3, %v1209_v43 }
 0xc39   :  { %1308 = vrot.lane.b32.xlu1 %v6001_v4, %s5583_s16 }
 0xca3   :  { %v1233_v6 = vpop.permute.xlu0 %1232 }
 0xca4   :  { %4865 = vmatmul.mubr.msk.f32.vlgmr.msra.gmra.mxu0 %vm209_vm3, %v1233_v6 }
 0xca5   :  { %4879 = vmatpush3.msra.mxu0 %v5720_v29  ;;  %4886 = vmatprep.mubr.msk.f32.mxu0 %vm5581_vm2, %v5580_v30 }
 0xca6   :  { %4880 = vmatprep.subr.mxu0 %v5580_v30 }
 0xca7   :  { %4881 = vmatpush3.msra.mxu0 %v5727_v31 }
 0xca8   :  { %4882 = vmatprep.subr.mxu0 %v5580_v30 }
 0xca9   :  { %4883 = vmatpush3.msra.mxu0 %v5734_v32 }
 0xcaa   :  { %4884 = vmatprep.subr.mxu0 %v5580_v30 }
 0xcab   :  { %v1309_v5 = vpop.permute.xlu1 %1308  ;;  %4885 = vmatpush3.msra.mxu0 %v5741_v33 }
 0xcac   :  { %4876 = vmatmul.mubr.msk.f32.vlgmr.msra.gmra.mxu1 %vm209_vm3, %v1309_v5  ;;  %4900 = vmatprep.subr.mxu0 %v5580_v30 }
 0xcad   :  { %4890 = vmatpush3.msra.mxu1 %v5764_v39  ;;  %4897 = vmatprep.mubr.msk.f32.mxu1 %vm5581_vm2, %v5580_v30 }
 0xcae   :  { %4891 = vmatprep.subr.mxu1 %v5580_v30 }
 0xcaf   :  { %4892 = vmatpush3.msra.mxu1 %v5772_v40 }
 0xcb0   :  { %4893 = vmatprep.subr.mxu1 %v5580_v30 }
 0xcb1   :  { %4894 = vmatpush3.msra.mxu1 %v5781_v41 }
 0xcb2   :  { %4895 = vmatprep.subr.mxu1 %v5580_v30 }
 0xcb3   :  { %4896 = vmatpush3.msra.mxu1 %v5788_v42 }
 0xcb4   :  { %4911 = vmatprep.subr.mxu1 %v5580_v30 }
 0xd64   :  { %v1302_v7 = vpop.f32.mrf.mxu0 }
 0xd65   :  { %v1306_v8 = vadd.f32 %v1302_v7, %v5808_v45 }
 0xd66   :  { %v4866_v9 = vpop.f32.mrf.mxu0 }
 0xd67   :  { %v4416_v10 = vmul.f32 -1.442695, %v1306_v8 }
 0xd69   :  { %5264 = vpow2.f32 %v4416_v10 }
 0xd6c   :  { %v1378_v11 = vpop.f32.mrf.mxu1 }
 0xd6d   :  { %v1383_v14 = vrot.slane %v1378_v11, 2 }
 0xd6e   :  { %v4877_v15 = vpop.f32.mrf.mxu1 }
 0xd6f   :  { %v1385_v22 = vadd.f32 %v1383_v14, %v5813_v50 }
 0xd71   :  { %v4417_v13 = vmul.f32 -1.442695, %v1385_v22 }
 0xd73   :  { %5266 = vpow2.f32 %v4417_v13 }
 0xd74   :  { %5268 = vtanh.f32 %v1306_v8 }
 0xd76   :  { %v5265_v17 = vpop.eup %5264 }
 0xd77   :  { %v1390_v18 = vadd.f32 1.0, %v5265_v17 }
 0xd79   :  { %5270 = vrcp.f32 %v1390_v18 }
 0xd7a   :  { %5272 = vtanh.f32 %v1385_v22 }
 0xd80   :  { %v5267_v19 = vpop.eup %5266 }
 0xd81   :  { %v1418_v20 = vadd.f32 1.0, %v5267_v19  ;;  %v5269_v21 = vpop.eup %5268 }
 0xd83   :  { %5274 = vrcp.f32 %v1418_v20 }
 0xd86   :  { %v5271_v23 = vpop.eup %5270 }
 0xd87   :  { %v1393_v25 = vsel %vm5823_vm6, %v5269_v21, %v5271_v23  ;;  %v5273_v26 = vpop.eup %5272 }
 0xd88   :  { %1399 = vrot.lane.b32.xlu0 %v1393_v25, %s5582_s13  ;;  %v1397_v38 = vmul.f32 %v1395_v51, %v1393_v25 }
 0xd90   :  { %v5275_v27 = vpop.eup %5274 }
 0xd91   :  { %v1421_v28 = vsel %vm5823_vm6, %v5273_v26, %v5275_v27 }
 0xd92   :  { %1427 = vrot.lane.b32.xlu1 %v1421_v28, %s5582_s13  ;;  %v1425_v46 = vmul.f32 %v1423_v44, %v1421_v28 }
 0xdfa   :  { %v1400_v34 = vpop.permute.xlu0 %1399 }
 0xdfb   :  { %v1402_v35 = vmul.f32 %v1400_v34, %v1393_v25 }
 0xdfd   :  { %1404 = vrot.lane.b32.xlu0 %v1402_v35, %s5583_s16 }
 0xe04   :  { %v1428_v36 = vpop.permute.xlu1 %1427 }
 0xe05   :  { %v1430_v37 = vmul.f32 %v1428_v36, %v1421_v28 }
 0xe07   :  { %1432 = vrot.lane.b32.xlu1 %v1430_v37, %s5583_s16 }
 0xe6f   :  { %v1405_v57 = vpop.permute.xlu0 %1404 }
 0xe70   :  { %v6038_v43 = vadd.f32 %v1405_v57, %v1397_v38 }
 0xe72   :  { %5276 = vtanh.f32 %v6038_v43  ;;  %v1610_v21 = vrot.slane %v6038_v43, 6 }
 0xe79   :  { %v1433_v47 = vpop.permute.xlu1 %1432 }
 0xe7a   :  { %v6042_v48 = vadd.f32 %v1433_v47, %v1425_v46 }
 0xe7c   :  { %5278 = vtanh.f32 %v6042_v48  ;;  %v1638_v27 = vrot.slane %v6042_v48, 2  ;;  %v5456_v48 = vld [vmem:[%s6683_s5 + $0x18] sm:$0xff] }
 0xe7f   :  { %v5277_v49 = vpop.eup %5276 }
 0xe80   :  { %1410 = vrot.lane.b32.xlu0 %v5277_v49, %s5582_s13  ;;  %v5457_v49 = vld [vmem:[%s6683_s5 + $0x10] sm:$0xff] }
 0xe89   :  { %v5279_v52 = vpop.eup %5278 }
 0xe8a   :  { %1438 = vrot.lane.b32.xlu1 %v5279_v52, %s5582_s13  ;;  %v5458_v52 = vld [vmem:[%s6683_s5 + $0x8] sm:$0xff] }
 0xef2   :  { %v1411_v53 = vpop.permute.xlu0 %1410 }
 0xef3   :  { %v6047_v54 = vmul.f32 %v1411_v53, %v1393_v25  ;;  %v5459_v53 = vld [vmem:[%s6683_s5] sm:$0xff] }
 0xef5   :  { %1443 = vrot.lane.b32.xlu0 %v6047_v54, %s5583_s16 }
 0xefc   :  { %v1439_v55 = vpop.permute.xlu1 %1438 }
 0xefd   :  { %v6051_v56 = vmul.f32 %v1439_v55, %v1421_v28 }
 0xeff   :  { %v1522_v58 = vrot.slane %v6051_v56, 6 }
 0xf01   :  { %1523 = vrot.lane.b32.xlu1 %v1522_v58, %s5583_s16 }
 0xf67   :  { %v1444_v59 = vpop.permute.xlu0 %1443 }
 0xf68   :  { %4887 = vmatmul.mubr.msk.f32.vlgmr.msra.gmra.mxu0 %vm209_vm3, %v1444_v59 }
 0xf69   :  { %4901 = vmatpush3.msra.mxu0 %v5720_v29  ;;  %4908 = vmatprep.mubr.msk.f32.mxu0 %vm5581_vm2, %v5580_v30 }
 0xf6a   :  { %4902 = vmatprep.subr.mxu0 %v5580_v30 }
 0xf6b   :  { %4903 = vmatpush3.msra.mxu0 %v5727_v31 }
 0xf6c   :  { %4904 = vmatprep.subr.mxu0 %v5580_v30 }
 0xf6d   :  { %4905 = vmatpush3.msra.mxu0 %v5734_v32 }
 0xf6e   :  { %4906 = vmatprep.subr.mxu0 %v5580_v30 }
 0xf6f   :  { %4907 = vmatpush3.msra.mxu0 %v5741_v33 }
 0xf70   :  { %4922 = vmatprep.subr.mxu0 %v5580_v30 }
 0xf73   :  { %v1524_v60 = vpop.permute.xlu1 %1523 }
 0xf74   :  { %4898 = vmatmul.mubr.msk.f32.vlgmr.msra.gmra.mxu1 %vm209_vm3, %v1524_v60 }
 0xf75   :  { %4912 = vmatpush3.msra.mxu1 %v5764_v39  ;;  %4919 = vmatprep.mubr.msk.f32.mxu1 %vm5581_vm2, %v5580_v30 }
 0xf76   :  { %4913 = vmatprep.subr.mxu1 %v5580_v30 }
 0xf77   :  { %4914 = vmatpush3.msra.mxu1 %v5772_v40 }
 0xf78   :  { %4915 = vmatprep.subr.mxu1 %v5580_v30 }
 0xf79   :  { %4916 = vmatpush3.msra.mxu1 %v5781_v41 }
 0xf7a   :  { %4917 = vmatprep.subr.mxu1 %v5580_v30 }
 0xf7b   :  { %4918 = vmatpush3.msra.mxu1 %v5788_v42 }
 0xf7c   :  { %4933 = vmatprep.subr.mxu1 %v5580_v30 }
0x1028   :  { %v1513_v29 = vpop.f32.mrf.mxu0 }
0x1029   :  { %v1518_v31 = vrot.slane %v1513_v29, 6 }
0x102a   :  { %v4888_v32 = vpop.f32.mrf.mxu0 }
0x102b   :  { %v1520_v33 = vadd.f32 %v1518_v31, %v5808_v45 }
0x102d   :  { %v4420_v61 = vmul.f32 -1.442695, %v1520_v33 }
0x102f   :  { %5280 = vpow2.f32 %v4420_v61 }
0x1034   :  { %v1593_v62 = vpop.f32.mrf.mxu1 }
0x1035   :  { %v1598_v63 = vrot.slane %v1593_v62, 4 }
0x1036   :  { %v4899_v0 = vpop.f32.mrf.mxu1 }
0x1037   :  { %v1600_v3 = vadd.f32 %v1598_v63, %v5813_v50 }
0x1039   :  { %v4421_v6 = vmul.f32 -1.442695, %v1600_v3 }
0x103b   :  { %5282 = vpow2.f32 %v4421_v6 }
0x103c   :  { %v5281_v5 = vpop.eup %5280  ;;  %5284 = vtanh.f32 %v1520_v33 }
0x103d   :  { %v1605_v7 = vadd.f32 1.0, %v5281_v5 }
0x103f   :  { %5286 = vrcp.f32 %v1605_v7 }
0x1040   :  { %5288 = vtanh.f32 %v1600_v3 }
0x1048   :  { %v5283_v8 = vpop.eup %5282 }
0x1049   :  { %v1633_v9 = vadd.f32 1.0, %v5283_v8  ;;  %v5285_v10 = vpop.eup %5284 }
0x104b   :  { %5290 = vrcp.f32 %v1633_v9 }
0x104c   :  { %v5287_v11 = vpop.eup %5286 }
0x104d   :  { %v1608_v14 = vsel %vm5823_vm6, %v5285_v10, %v5287_v11  ;;  %v5289_v15 = vpop.eup %5288 }
0x104e   :  { %1614 = vrot.lane.b32.xlu0 %v1608_v14, %s5582_s13  ;;  %v1612_v23 = vmul.f32 %v1610_v21, %v1608_v14 }
0x1058   :  { %v5291_v22 = vpop.eup %5290 }
0x1059   :  { %v1636_v13 = vsel %vm5823_vm6, %v5289_v15, %v5291_v22 }
0x105a   :  { %1642 = vrot.lane.b32.xlu1 %v1636_v13, %s5582_s13  ;;  %v1640_v28 = vmul.f32 %v1638_v27, %v1636_v13 }
0x10c0   :  { %v1615_v17 = vpop.permute.xlu0 %1614 }
0x10c1   :  { %v1617_v18 = vmul.f32 %v1615_v17, %v1608_v14 }
0x10c3   :  { %1619 = vrot.lane.b32.xlu0 %v1617_v18, %s5583_s16 }
0x10cc   :  { %v1643_v19 = vpop.permute.xlu1 %1642 }
0x10cd   :  { %v1645_v20 = vmul.f32 %v1643_v19, %v1636_v13 }
0x10cf   :  { %1647 = vrot.lane.b32.xlu1 %v1645_v20, %s5583_s16 }
0x1135   :  { %v1620_v25 = vpop.permute.xlu0 %1619 }
0x1136   :  { %v6088_v26 = vadd.f32 %v1620_v25, %v1612_v23 }
0x1138   :  { %5292 = vtanh.f32 %v6088_v26  ;;  %v1826_v15 = vrot.slane %v6088_v26, 6 }
0x1141   :  { %v1648_v34 = vpop.permute.xlu1 %1647 }
0x1142   :  { %v6092_v35 = vadd.f32 %v1648_v34, %v1640_v28 }
0x1144   :  { %5294 = vtanh.f32 %v6092_v35  ;;  %v1854_v18 = vrot.slane %v6092_v35, 2 }
0x1145   :  { %v5293_v36 = vpop.eup %5292 }
0x1146   :  { %1625 = vrot.lane.b32.xlu0 %v5293_v36, %s5582_s13 }
0x1151   :  { %v5295_v37 = vpop.eup %5294 }
0x1152   :  { %1653 = vrot.lane.b32.xlu1 %v5295_v37, %s5582_s13 }
0x11b8   :  { %v1626_v51 = vpop.permute.xlu0 %1625 }
0x11b9   :  { %v6097_v38 = vmul.f32 %v1626_v51, %v1608_v14 }
0x11bb   :  { %v1658_v57 = vrot.slane %v6097_v38, 2  ;;  %v2092_v26 = vsel %vm2086_vm7, %v6047_v54, %v6097_v38 }
0x11bd   :  { %1659 = vrot.lane.b32.xlu0 %v1658_v57, %s5583_s16 }
0x11c4   :  { %v1654_v43 = vpop.permute.xlu1 %1653 }
0x11c5   :  { %v6101_v44 = vmul.f32 %v1654_v43, %v1636_v13 }
0x11c7   :  { %v1738_v46 = vrot.slane %v6101_v44, 4 }
0x11c9   :  { %1739 = vrot.lane.b32.xlu1 %v1738_v46, %s5583_s16 }
0x122f   :  { %v1660_v47 = vpop.permute.xlu0 %1659 }
0x1230   :  { %4909 = vmatmul.mubr.msk.f32.vlgmr.msra.gmra.mxu0 %vm209_vm3, %v1660_v47 }
0x1231   :  { %4923 = vmatpush3.msra.mxu0 %v5456_v48  ;;  %4930 = vmatprep.mubr.msk.f32.mxu0 %vm5581_vm2, %v5580_v30 }
0x1232   :  { %4924 = vmatprep.subr.mxu0 %v5580_v30 }
0x1233   :  { %4925 = vmatpush3.msra.mxu0 %v5457_v49 }
0x1234   :  { %4926 = vmatprep.subr.mxu0 %v5580_v30 }
0x1235   :  { %4927 = vmatpush3.msra.mxu0 %v5458_v52 }
0x1236   :  { %4928 = vmatprep.subr.mxu0 %v5580_v30 }
0x1237   :  { %4929 = vmatpush3.msra.mxu0 %v5459_v53 }
0x123b   :  { %v1740_v55 = vpop.permute.xlu1 %1739 }
0x123c   :  { %4920 = vmatmul.mubr.msk.f32.vlgmr.msra.gmra.mxu1 %vm209_vm3, %v1740_v55 }
0x123d   :  { %4934 = vmatpush3.msra.mxu1 %v5764_v39  ;;  %4941 = vmatprep.mubr.msk.f32.mxu1 %vm5581_vm2, %v5580_v30 }
0x123e   :  { %4935 = vmatprep.subr.mxu1 %v5580_v30 }
0x123f   :  { %4936 = vmatpush3.msra.mxu1 %v5772_v40 }
0x1240   :  { %4937 = vmatprep.subr.mxu1 %v5580_v30 }
0x1241   :  { %4938 = vmatpush3.msra.mxu1 %v5781_v41 }
0x1242   :  { %4939 = vmatprep.subr.mxu1 %v5580_v30 }
0x1243   :  { %4940 = vmatpush3.msra.mxu1 %v5788_v42 }
0x12f0   :  { %v1729_v58 = vpop.f32.mrf.mxu0 }
0x12f1   :  { %v1734_v59 = vrot.slane %v1729_v58, 4 }
0x12f2   :  { %v4910_v60 = vpop.f32.mrf.mxu0 }
0x12f3   :  { %v1736_v39 = vadd.f32 %v1734_v59, %v5808_v45 }
0x12f5   :  { %v4424_v29 = vmul.f32 -1.442695, %v1736_v39 }
0x12f7   :  { %5296 = vpow2.f32 %v4424_v29 }
0x12fc   :  { %v1809_v31 = vpop.f32.mrf.mxu1 }
0x12fd   :  { %v1814_v32 = vrot.slane %v1809_v31, 6 }
0x12fe   :  { %v4921_v33 = vpop.f32.mrf.mxu1 }
0x12ff   :  { %v1816_v40 = vadd.f32 %v1814_v32, %v5813_v50 }
0x1301   :  { %v4425_v61 = vmul.f32 -1.442695, %v1816_v40 }
0x1303   :  { %5298 = vpow2.f32 %v4425_v61 }
0x1304   :  { %v5297_v62 = vpop.eup %5296  ;;  %5300 = vtanh.f32 %v1736_v39 }
0x1305   :  { %v1821_v41 = vadd.f32 1.0, %v5297_v62 }
0x1307   :  { %5302 = vrcp.f32 %v1821_v41 }
0x1308   :  { %5304 = vtanh.f32 %v1816_v40 }
0x1310   :  { %v5299_v63 = vpop.eup %5298 }
0x1311   :  { %v1849_v42 = vadd.f32 1.0, %v5299_v63  ;;  %v5301_v0 = vpop.eup %5300 }
0x1313   :  { %5306 = vrcp.f32 %v1849_v42 }
0x1314   :  { %v5303_v3 = vpop.eup %5302 }
0x1315   :  { %v1824_v6 = vsel %vm5823_vm6, %v5301_v0, %v5303_v3  ;;  %v5305_v5 = vpop.eup %5304 }
0x1316   :  { %1830 = vrot.lane.b32.xlu0 %v1824_v6, %s5582_s13  ;;  %v1828_v22 = vmul.f32 %v1826_v15, %v1824_v6  ;;  %v2101_v15 = vld [vmem:[#allocation5] sm:$0xff] }
0x1320   :  { %v5307_v7 = vpop.eup %5306 }
0x1321   :  { %v1852_v8 = vsel %vm5823_vm6, %v5305_v5, %v5307_v7 }
0x1322   :  { %1858 = vrot.lane.b32.xlu1 %v1852_v8, %s5582_s13  ;;  %v1856_v19 = vmul.f32 %v1854_v18, %v1852_v8  ;;  %v2107_v18 = vld [vmem:[#allocation7 + $0x10] sm:$0xff] }
0x1388   :  { %v1831_v9 = vpop.permute.xlu0 %1830 }
0x1389   :  { %v1833_v10 = vmul.f32 %v1831_v9, %v1824_v6 }
0x138b   :  { %1835 = vrot.lane.b32.xlu0 %v1833_v10, %s5583_s16  ;;  %v2104_v10 = vld [vmem:[#allocation5 + $0x18] sm:$0xff] }
0x138c   :  { %4955 = vmatprep.subr.mxu1 %v2104_v10 }
0x1394   :  { %v1859_v11 = vpop.permute.xlu1 %1858 }
0x1395   :  { %v1861_v14 = vmul.f32 %v1859_v11, %v1852_v8  ;;  %v2103_v11 = vld [vmem:[#allocation5 + $0x10] sm:$0xff] }
0x1397   :  { %1863 = vrot.lane.b32.xlu1 %v1861_v14, %s5583_s16  ;;  %v2102_v14 = vld [vmem:[#allocation5 + $0x8] sm:$0xff] }
0x13fd   :  { %v1836_v13 = vpop.permute.xlu0 %1835 }
0x13fe   :  { %v1838_v17 = vadd.f32 %v1836_v13, %v1828_v22  ;;  %v2293_v22 = vld [vmem:[#allocation5 + $0x38] sm:$0xff] }
0x1400   :  { %5308 = vtanh.f32 %v1838_v17  ;;  %v2039_v63 = vrot.slane %v1838_v17, 6  ;;  %v2108_v17 = vld [vmem:[#allocation7 + $0x18] sm:$0xff] }
0x1401   :  { %4944 = vmatprep.subr.mxu0 %v2108_v17 }
0x1409   :  { %v1864_v20 = vpop.permute.xlu1 %1863 }
0x140a   :  { %v1866_v21 = vadd.f32 %v1864_v20, %v1856_v19  ;;  %v2105_v19 = vld [vmem:[#allocation7] sm:$0xff] }
0x140c   :  { %5310 = vtanh.f32 %v1866_v21 }
0x140d   :  { %v5309_v23 = vpop.eup %5308 }
0x140e   :  { %1841 = vrot.lane.b32.xlu0 %v5309_v23, %s5582_s13  ;;  %v2098_v23 = vsel %vm2086_vm7, %v6001_v4, %v5950_v12 }
0x1419   :  { %v5311_v25 = vpop.eup %5310 }
0x141a   :  { %1869 = vrot.lane.b32.xlu1 %v5311_v25, %s5582_s13 }
0x1480   :  { %v1842_v27 = vpop.permute.xlu0 %1841 }
0x1481   :  { %v1844_v28 = vmul.f32 %v1842_v27, %v1824_v6  ;;  %v2067_v6 = vrot.slane %v1866_v21, 2  ;;  %v2298_v27 = vld [vmem:[#allocation7 + $0x38] sm:$0xff] }
0x1483   :  { %v1874_v34 = vrot.slane %v1844_v28, 4  ;;  %v6151_v36 = vsel %vm2088_vm8, %v2092_v26, %v1844_v28  ;;  %v2099_v26 = vsel %vm2088_vm8, %v2098_v23, %v5897_v16 }
0x1485   :  { %1875 = vrot.lane.b32.xlu0 %v1874_v34, %s5583_s16  ;;  %v2100_v34 = vsel %vm2090_vm9, %v2099_v26, %v5847_v24  ;;  %v2291_v24 = vld [vmem:[#allocation5 + $0x28] sm:$0xff] }
0x148c   :  { %v1870_v35 = vpop.permute.xlu1 %1869 }
0x148d   :  { %v6154_v37 = vmul.f32 %v1870_v35, %v1852_v8 }
0x148f   :  { %v1954_v51 = vrot.slane %v6154_v37, 2 }
0x1491   :  { %1955 = vrot.lane.b32.xlu1 %v1954_v51, %s5583_s16 }
0x14f7   :  { %v1876_v57 = vpop.permute.xlu0 %1875 }
0x14f8   :  { %4931 = vmatmul.mubr.msk.f32.vlgmr.msra.gmra.mxu0 %vm209_vm3, %v1876_v57  ;;  %v2292_v57 = vld [vmem:[#allocation5 + $0x30] sm:$0xff] }
0x14f9   :  { %4945 = vmatpush3.msra.mxu0 %v2108_v17 }
0x14fa   :  { %4946 = vmatprep.subr.mxu0 %v2107_v18 }
0x14fb   :  { %4947 = vmatpush3.msra.mxu0 %v2107_v18 }
0x1503   :  { %v1956_v43 = vpop.permute.xlu1 %1955 }
0x1504   :  { %4942 = vmatmul.mubr.msk.f32.vlgmr.msra.gmra.mxu1 %vm209_vm3, %v1956_v43  ;;  %v2290_v43 = vld [vmem:[#allocation5 + $0x20] sm:$0xff] }
0x1505   :  { %4956 = vmatpush3.msra.mxu1 %v2104_v10 }
0x1506   :  { %4957 = vmatprep.subr.mxu1 %v2103_v11 }
0x1507   :  { %4958 = vmatpush3.msra.mxu1 %v2103_v11 }
0x1508   :  { %4959 = vmatprep.subr.mxu1 %v2102_v14 }
0x1509   :  { %4960 = vmatpush3.msra.mxu1 %v2102_v14 }
0x150a   :  { %4961 = vmatprep.subr.mxu1 %v2101_v15 }
0x150b   :  { %4962 = vmatpush3.msra.mxu1 %v2101_v15 }
0x150c   :  { %4977 = vmatprep.subr.mxu1 %v2293_v22 }
0x15b8   :  { %v1945_v54 = vpop.f32.mrf.mxu0 }
0x15b9   :  { %v1950_v38 = vrot.slane %v1945_v54, 2 }
0x15ba   :  { %v4932_v46 = vpop.f32.mrf.mxu0 }
0x15bb   :  { %v1952_v47 = vadd.f32 %v1950_v38, %v5808_v45  ;;  %v2297_v46 = vld [vmem:[#allocation7 + $0x30] sm:$0xff] }
0x15bd   :  { %v4428_v48 = vmul.f32 -1.442695, %v1952_v47 }
0x15bf   :  { %5312 = vpow2.f32 %v4428_v48  ;;  %v2296_v48 = vld [vmem:[#allocation7 + $0x28] sm:$0xff] }
0x15c4   :  { %v2025_v49 = vpop.f32.mrf.mxu1 }
0x15c5   :  { %v2029_v52 = vadd.f32 %v2025_v49, %v5813_v50  ;;  %v2295_v49 = vld [vmem:[#allocation7 + $0x20] sm:$0xff] }
0x15c6   :  { %v4943_v53 = vpop.f32.mrf.mxu1 }
0x15c7   :  { %v4429_v55 = vmul.f32 -1.442695, %v2029_v52  ;;  %v6243_v53 = vld [vmem:[%s6683_s5 + $0x50] sm:$0xff] }
0x15c9   :  { %5314 = vpow2.f32 %v4429_v55  ;;  %v6252_v55 = vld [vmem:[%s6683_s5 + $0x48] sm:$0xff] }
0x15ca   :  { %5316 = vtanh.f32 %v1952_v47  ;;  %v6224_v47 = vld [vmem:[%s6683_s5 + $0x60] sm:$0xff] }
0x15cc   :  { %v5313_v58 = vpop.eup %5312 }
0x15cd   :  { %v2034_v59 = vadd.f32 1.0, %v5313_v58  ;;  %v6261_v58 = vld [vmem:[%s6683_s5 + $0x40] sm:$0xff] }
0x15cf   :  { %5318 = vrcp.f32 %v2034_v59 }
0x15d0   :  { %5320 = vtanh.f32 %v2029_v52  ;;  %v6234_v52 = vld [vmem:[%s6683_s5 + $0x58] sm:$0xff] }
0x15d6   :  { %v5315_v60 = vpop.eup %5314 }
0x15d7   :  { %v2062_v39 = vadd.f32 1.0, %v5315_v60  ;;  %v5317_v29 = vpop.eup %5316 }
0x15d9   :  { %5322 = vrcp.f32 %v2062_v39 }
0x15dc   :  { %v5319_v31 = vpop.eup %5318 }
0x15dd   :  { %v2037_v45 = vsel %vm5823_vm6, %v5317_v29, %v5319_v31  ;;  %v5321_v32 = vpop.eup %5320  ;;  %v4435_v31 = vld [vmem:[%s6684_s6 + $0x2] ss:$0 sm:$0xff] }
0x15de   :  { %2043 = vrot.lane.b32.xlu0 %v2037_v45, %s5582_s13  ;;  %v2041_v42 = vmul.f32 %v2039_v63, %v2037_v45 }
0x15e6   :  { %v5323_v50 = vpop.eup %5322 }
0x15e7   :  { %v2065_v33 = vsel %vm5823_vm6, %v5321_v32, %v5323_v50 }
0x15e8   :  { %2071 = vrot.lane.b32.xlu1 %v2065_v33, %s5582_s13  ;;  %v2069_v5 = vmul.f32 %v2067_v6, %v2065_v33 }
0x1650   :  { %v2044_v40 = vpop.permute.xlu0 %2043 }
0x1651   :  { %v2046_v61 = vmul.f32 %v2044_v40, %v2037_v45 }
0x1653   :  { %2048 = vrot.lane.b32.xlu0 %v2046_v61, %s5583_s16 }
0x165a   :  { %v2072_v62 = vpop.permute.xlu1 %2071 }
0x165b   :  { %v2074_v41 = vmul.f32 %v2072_v62, %v2065_v33 }
0x165d   :  { %2076 = vrot.lane.b32.xlu1 %v2074_v41, %s5583_s16  ;;  %v4441_v41 = vld [vmem:[%s6684_s6 + $0x3] ss:$0 sm:$0xff] }
0x16c5   :  { %v2049_v0 = vpop.permute.xlu0 %2048 }
0x16c6   :  { %v2051_v3 = vadd.f32 %v2049_v0, %v2041_v42 }
0x16c8   :  { %5324 = vtanh.f32 %v2051_v3 }
0x16cf   :  { %v2077_v7 = vpop.permute.xlu1 %2076 }
0x16d0   :  { %v2079_v8 = vadd.f32 %v2077_v7, %v2069_v5 }
0x16d2   :  { %5326 = vtanh.f32 %v2079_v8 }
0x16d5   :  { %v5325_v9 = vpop.eup %5324 }
0x16d6   :  { %2054 = vrot.lane.b32.xlu0 %v5325_v9, %s5582_s13 }
0x16da   :  { %2196 = vrot.lane.b32.xlu0 %v5998_v1, %s5583_s16  ;;  %v2106_v1 = vld [vmem:[#allocation7 + $0x8] sm:$0xff] }
0x16db   :  { %4948 = vmatprep.subr.mxu0 %v2106_v1 }
0x16dc   :  { %4949 = vmatpush3.msra.mxu0 %v2106_v1 }
0x16dd   :  { %4950 = vmatprep.subr.mxu0 %v2105_v19 }
0x16de   :  { %4951 = vmatpush3.msra.mxu0 %v2105_v19 }
0x16df   :  { %v5327_v13 = vpop.eup %5326  ;;  %4966 = vmatprep.subr.mxu0 %v2298_v27 }
0x16e0   :  { %2082 = vrot.lane.b32.xlu1 %v5327_v13, %s5582_s13 }
0x1748   :  { %v2055_v20 = vpop.permute.xlu0 %2054 }
0x1749   :  { %v2057_v21 = vmul.f32 %v2055_v20, %v2037_v45 }
0x174b   :  { %v2094_v25 = vsel %vm2090_vm9, %v6151_v36, %v2057_v21 }
0x174c   :  { %2198 = vrot.lane.b32.xlu1 %v2094_v25, %s5583_s16  ;;  %v2197_v28 = vpop.permute.xlu0 %2196 }
0x174d   :  { %4963 = vmatprep.mubr.msk.f32.mxu1 %vm209_vm3, %v2197_v28 }
0x1750   :  { %2113 = vrot.lane.b32.xlu1 %v2100_v34, %s5583_s16 }
0x1752   :  { %v2083_v12 = vpop.permute.xlu1 %2082 }
0x1753   :  { %v2085_v4 = vmul.f32 %v2083_v12, %v2065_v33 }
0x1755   :  { %v2095_v36 = vsel %vm2086_vm7, %v2085_v4, %v6154_v37  ;;  %v6214_v37 = vld [vmem:[%s6683_s5 + $0x68] sm:$0xff] }
0x1756   :  { %v2096_v35 = vsel %vm2088_vm8, %v2095_v36, %v6101_v44  ;;  %v6205_v44 = vld [vmem:[%s6683_s5 + $0x70] sm:$0xff] }
0x1757   :  { %v2097_v51 = vsel %vm2090_vm9, %v2096_v35, %v6051_v56  ;;  %v6198_v56 = vld [vmem:[%s6683_s5 + $0x78] sm:$0xff] }
0x1758   :  { %2111 = vrot.lane.b32.xlu0 %v2097_v51, %s5583_s16 }
0x17be   :  { %v2199_v16 = vpop.permute.xlu1 %2198 }
0x17bf   :  { %4964 = vmatmul.mubr.msk.f32.vlgmr.msra.gmra.mxu1 %vm209_vm3, %v2199_v16 }
0x17c0   :  { %4978 = vmatpush3.msra.mxu1 %v2293_v22  ;;  %4985 = vmatprep.mubr.msk.f32.mxu1 %vm209_vm3, %v2197_v28 }
0x17c1   :  { %4979 = vmatprep.subr.mxu1 %v2292_v57 }
0x17c2   :  { %4980 = vmatpush3.msra.mxu1 %v2292_v57  ;;  %v2114_v38 = vpop.permute.xlu1 %2113 }
0x17c3   :  { %4981 = vmatprep.subr.mxu1 %v2291_v24 }
0x17c4   :  { %4982 = vmatpush3.msra.mxu1 %v2291_v24 }
0x17c5   :  { %4983 = vmatprep.subr.mxu1 %v2290_v43 }
0x17c6   :  { %4984 = vmatpush3.msra.mxu1 %v2290_v43 }
0x17c7   :  { %4986 = vmatmul.mubr.msk.f32.vlgmr.msra.gmra.mxu1 %vm209_vm3, %v2199_v16  ;;  %4999 = vmatprep.subr.mxu1 %v5580_v30 }
0x17c8   :  { %5000 = vmatpush3.msra.mxu1 %v6198_v56  ;;  %5007 = vmatprep.mubr.msk.f32.mxu1 %vm5581_vm2, %v5580_v30 }
0x17c9   :  { %5001 = vmatprep.subr.mxu1 %v5580_v30 }
0x17ca   :  { %v2112_v54 = vpop.permute.xlu0 %2111  ;;  %5002 = vmatpush3.msra.mxu1 %v6205_v44 }
0x17cb   :  { %4952 = vmatprep.mubr.msk.f32.mxu0 %vm209_vm3, %v2112_v54  ;;  %5003 = vmatprep.subr.mxu1 %v5580_v30 }
0x17cc   :  { %4953 = vmatmul.mubr.msk.f32.vlgmr.msra.gmra.mxu0 %vm209_vm3, %v2114_v38  ;;  %5004 = vmatpush3.msra.mxu1 %v6214_v37 }
0x17cd   :  { %4967 = vmatpush3.msra.mxu0 %v2298_v27  ;;  %4974 = vmatprep.mubr.msk.f32.mxu0 %vm209_vm3, %v2112_v54 }
0x17ce   :  { %4968 = vmatprep.subr.mxu0 %v2297_v46  ;;  %5005 = vmatprep.subr.mxu1 %v5580_v30 }
0x17cf   :  { %4969 = vmatpush3.msra.mxu0 %v2297_v46  ;;  %5006 = vmatpush3.msra.mxu1 %v6224_v47 }
0x17d0   :  { %4970 = vmatprep.subr.mxu0 %v2296_v48  ;;  %5008 = vmatmul.mubr.f32.vlgmr.msra.gmra.mxu1 %v5580_v30 }
0x17d1   :  { %4971 = vmatpush3.msra.mxu0 %v2296_v48  ;;  %5021 = vmatprep.subr.mxu1 %v5580_v30 }
0x17d2   :  { %4972 = vmatprep.subr.mxu0 %v2295_v49  ;;  %5022 = vmatpush3.msra.mxu1 %v6198_v56 }
0x17d3   :  { %4973 = vmatpush3.msra.mxu0 %v2295_v49  ;;  %5023 = vmatprep.subr.mxu1 %v5580_v30 }
0x17d4   :  { %4975 = vmatmul.mubr.msk.f32.vlgmr.msra.gmra.mxu0 %vm209_vm3, %v2114_v38  ;;  %4988 = vmatprep.subr.mxu0 %v5580_v30 }
0x17d5   :  { %4989 = vmatpush3.msra.mxu0 %v6234_v52  ;;  %4996 = vmatprep.mubr.msk.f32.mxu0 %vm5581_vm2, %v5580_v30 }
0x17d6   :  { %4990 = vmatprep.subr.mxu0 %v5580_v30  ;;  %5024 = vmatpush3.msra.mxu1 %v6205_v44 }
0x17d7   :  { %4991 = vmatpush3.msra.mxu0 %v6243_v53  ;;  %5025 = vmatprep.subr.mxu1 %v5580_v30 }
0x17d8   :  { %4992 = vmatprep.subr.mxu0 %v5580_v30  ;;  %5026 = vmatpush3.msra.mxu1 %v6214_v37 }
0x17d9   :  { %4993 = vmatpush3.msra.mxu0 %v6252_v55  ;;  %5027 = vmatprep.subr.mxu1 %v5580_v30 }
0x17da   :  { %4994 = vmatprep.subr.mxu0 %v5580_v30  ;;  %5028 = vmatpush3.msra.mxu1 %v6224_v47 }
0x17db   :  { %4995 = vmatpush3.msra.mxu0 %v6261_v58  ;;  %5029 = vmatprep.mubr.msk.f32.mxu1 %vm5581_vm2, %v5580_v30 }
0x17dc   :  { %4997 = vmatmul.mubr.f32.vlgmr.msra.gmra.mxu0 %v5580_v30  ;;  %5010 = vmatprep.subr.mxu0 %v5580_v30 }
0x17dd   :  { %5011 = vmatpush3.msra.mxu0 %v6234_v52  ;;  %5018 = vmatprep.mubr.msk.f32.mxu0 %vm5581_vm2, %v5580_v30 }
0x17de   :  { %5012 = vmatprep.subr.mxu0 %v5580_v30  ;;  %5043 = vmatprep.subr.mxu1 %v5580_v30 }
0x17df   :  { %5013 = vmatpush3.msra.mxu0 %v6243_v53 }
0x17e0   :  { %5014 = vmatprep.subr.mxu0 %v5580_v30 }
0x17e1   :  { %5015 = vmatpush3.msra.mxu0 %v6252_v55 }
0x17e2   :  { %5016 = vmatprep.subr.mxu0 %v5580_v30 }
0x17e3   :  { %5017 = vmatpush3.msra.mxu0 %v6261_v58 }
0x17e4   :  { %5032 = vmatprep.subr.mxu0 %v5580_v30 }
0x187f   :  { %v4965_v59 = vpop.f32.mrf.mxu1 }
0x1881   :  { %v2270_v60 = vpop.f32.mrf.mxu1 }
0x1887   :  { %v4987_v39 = vpop.f32.mrf.mxu1 }
0x1889   :  { %v2440_v32 = vpop.f32.mrf.mxu1 }
0x188c   :  { %v4954_v29 = vpop.f32.mrf.mxu0 }
0x188d   :  { %v2276_v45 = vadd.f32 %v4965_v59, %v4954_v29 }
0x188e   :  { %v2185_v40 = vpop.f32.mrf.mxu0 }
0x188f   :  { %v6287_v50 = vadd.f32 %v4435_v31, %v2276_v45  ;;  %v2271_v3 = vadd.f32 %v2270_v60, %v2185_v40 }
0x1890   :  { %v2606_v33 = vpop.f32.mrf.mxu1 }
0x1891   :  { %v2611_v42 = vrot.slane %v2606_v33, 2  ;;  %v6297_v9 = vadd.f32 %v4435_v31, %v2271_v3 }
0x1892   :  { %v5009_v61 = vpop.f32.mrf.mxu1 }
0x1894   :  { %v4976_v62 = vpop.f32.mrf.mxu0 }
0x1895   :  { %v2446_v63 = vadd.f32 %v4987_v39, %v4976_v62 }
0x1896   :  { %v2365_v0 = vpop.f32.mrf.mxu0 }
0x1897   :  { %v6292_v6 = vadd.f32 %v4441_v41, %v2446_v63  ;;  %v2441_v5 = vadd.f32 %v2440_v32, %v2365_v0 }
0x1899   :  { %v2613_v7 = vadd.f32 %v2611_v42, %v6292_v6  ;;  %v6295_v8 = vadd.f32 %v4441_v41, %v2441_v5 }
0x189b   :  { %v4451_v10 = vmul.f32 -1.442695, %v2613_v7 }
0x189c   :  { %v2535_v11 = vpop.f32.mrf.mxu0 }
0x189d   :  { %5328 = vpow2.f32 %v4451_v10  ;;  %v2539_v14 = vadd.f32 %v2535_v11, %v6297_v9 }
0x189e   :  { %v4998_v15 = vpop.f32.mrf.mxu0 }
0x189f   :  { %v4450_v22 = vmul.f32 -1.442695, %v2539_v14 }
0x18a1   :  { %5330 = vpow2.f32 %v4450_v22 }
0x18a2   :  { %5332 = vtanh.f32 %v2613_v7 }
0x18aa   :  { %v5329_v13 = vpop.eup %5328 }
0x18ab   :  { %v2643_v17 = vadd.f32 1.0, %v5329_v13 }
0x18ad   :  { %5334 = vrcp.f32 %v2643_v17 }
0x18ae   :  { %v5331_v18 = vpop.eup %5330  ;;  %5336 = vtanh.f32 %v2539_v14 }
0x18af   :  { %v2618_v1 = vadd.f32 1.0, %v5331_v18  ;;  %v5333_v19 = vpop.eup %5332 }
0x18b1   :  { %5338 = vrcp.f32 %v2618_v1 }
0x18ba   :  { %v5335_v20 = vpop.eup %5334 }
0x18bb   :  { %v2646_v21 = vsel %vm5823_vm6, %v5333_v19, %v5335_v20  ;;  %v5337_v23 = vpop.eup %5336 }
0x18bc   :  { %2649 = vrot.lane.b32.xlu0 %v2646_v21, %s5582_s13  ;;  %v2647_v4 = vmul.f32 0.0, %v2646_v21 }
0x18be   :  { %v5339_v25 = vpop.eup %5338 }
0x18bf   :  { %v2621_v27 = vsel %vm5823_vm6, %v5337_v23, %v5339_v25 }
0x18c0   :  { %2624 = vrot.lane.b32.xlu1 %v2621_v27, %s5582_s13  ;;  %v2622_v51 = vmul.f32 0.0, %v2621_v27 }
0x192e   :  { %v2650_v28 = vpop.permute.xlu0 %2649 }
0x192f   :  { %v2652_v26 = vmul.f32 %v2650_v28, %v2646_v21 }
0x1931   :  { %2654 = vrot.lane.b32.xlu0 %v2652_v26, %s5583_s16 }
0x1932   :  { %v2625_v34 = vpop.permute.xlu1 %2624 }
0x1933   :  { %v2627_v12 = vmul.f32 %v2625_v34, %v2621_v27 }
0x1935   :  { %2629 = vrot.lane.b32.xlu1 %v2627_v12, %s5583_s16 }
0x19a3   :  { %v2655_v36 = vpop.permute.xlu0 %2654 }
0x19a4   :  { %v6308_v35 = vadd.f32 %v2655_v36, %v2647_v4 }
0x19a6   :  { %5340 = vtanh.f32 %v6308_v35  ;;  %v2860_v1 = vrot.slane %v6308_v35, 2 }
0x19a7   :  { %v2630_v16 = vpop.permute.xlu1 %2629 }
0x19a8   :  { %v6311_v57 = vadd.f32 %v2630_v16, %v2622_v51 }
0x19aa   :  { %5342 = vtanh.f32 %v6311_v57  ;;  %v2832_v19 = vrot.slane %v6311_v57, 6 }
0x19b3   :  { %v5341_v24 = vpop.eup %5340 }
0x19b4   :  { %2660 = vrot.lane.b32.xlu0 %v5341_v24, %s5582_s13 }
0x19b7   :  { %v5343_v43 = vpop.eup %5342 }
0x19b8   :  { %2635 = vrot.lane.b32.xlu1 %v5343_v43, %s5582_s13 }
0x1a26   :  { %v2661_v54 = vpop.permute.xlu0 %2660 }
0x1a27   :  { %v6316_v38 = vmul.f32 %v2661_v54, %v2646_v21 }
0x1a29   :  { %v2744_v46 = vrot.slane %v6316_v38, 6 }
0x1a2a   :  { %v2636_v48 = vpop.permute.xlu1 %2635 }
0x1a2b   :  { %v6319_v49 = vmul.f32 %v2636_v48, %v2621_v27  ;;  %2745 = vrot.lane.b32.xlu0 %v2744_v46, %s5583_s16 }
0x1a2d   :  { %2665 = vrot.lane.b32.xlu1 %v6319_v49, %s5583_s16 }
0x1a9d   :  { %v2746_v59 = vpop.permute.xlu0 %2745 }
0x1a9e   :  { %5030 = vmatmul.mubr.msk.f32.vlgmr.msra.gmra.mxu1 %vm209_vm3, %v2746_v59 }
0x1a9f   :  { %v2666_v60 = vpop.permute.xlu1 %2665  ;;  %5044 = vmatpush3.msra.mxu1 %v6198_v56  ;;  %5051 = vmatprep.mubr.msk.f32.mxu1 %vm5581_vm2, %v5580_v30 }
0x1aa0   :  { %5019 = vmatmul.mubr.msk.f32.vlgmr.msra.gmra.mxu0 %vm209_vm3, %v2666_v60  ;;  %5045 = vmatprep.subr.mxu1 %v5580_v30 }
0x1aa1   :  { %5033 = vmatpush3.msra.mxu0 %v6234_v52  ;;  %5046 = vmatpush3.msra.mxu1 %v6205_v44 }
0x1aa2   :  { %5034 = vmatprep.subr.mxu0 %v5580_v30  ;;  %5047 = vmatprep.subr.mxu1 %v5580_v30 }
0x1aa3   :  { %5035 = vmatpush3.msra.mxu0 %v6243_v53  ;;  %5048 = vmatpush3.msra.mxu1 %v6214_v37 }
0x1aa4   :  { %5036 = vmatprep.subr.mxu0 %v5580_v30  ;;  %5049 = vmatprep.subr.mxu1 %v5580_v30 }
0x1aa5   :  { %5050 = vmatpush3.msra.mxu1 %v6224_v47  ;;  %5037 = vmatpush3.msra.mxu0 %v6252_v55 }
0x1aa6   :  { %5038 = vmatprep.subr.mxu0 %v5580_v30  ;;  %5040 = vmatprep.mubr.msk.f32.mxu0 %vm5581_vm2, %v5580_v30 }
0x1aa7   :  { %5039 = vmatpush3.msra.mxu0 %v6261_v58  ;;  %5065 = vmatprep.subr.mxu1 %v5580_v30 }
0x1aa8   :  { %5054 = vmatprep.subr.mxu0 %v5580_v30 }
0x1b5e   :  { %v2815_v39 = vpop.f32.mrf.mxu1 }
0x1b5f   :  { %v2820_v29 = vrot.slane %v2815_v39, 4 }
0x1b60   :  { %v2735_v31 = vpop.f32.mrf.mxu0  ;;  %v5031_v45 = vpop.f32.mrf.mxu1 }
0x1b61   :  { %v2822_v32 = vadd.f32 %v2820_v29, %v6292_v6  ;;  %v2740_v33 = vrot.slane %v2735_v31, 6 }
0x1b62   :  { %v5020_v40 = vpop.f32.mrf.mxu0 }
0x1b63   :  { %v4455_v61 = vmul.f32 -1.442695, %v2822_v32  ;;  %v2742_v62 = vadd.f32 %v2740_v33, %v6297_v9 }
0x1b65   :  { %5344 = vpow2.f32 %v4455_v61  ;;  %v4454_v41 = vmul.f32 -1.442695, %v2742_v62 }
0x1b67   :  { %5346 = vpow2.f32 %v4454_v41 }
0x1b68   :  { %5348 = vtanh.f32 %v2822_v32 }
0x1b72   :  { %v5345_v63 = vpop.eup %5344 }
0x1b73   :  { %v2855_v42 = vadd.f32 1.0, %v5345_v63 }
0x1b74   :  { %v5347_v0 = vpop.eup %5346 }
0x1b75   :  { %5350 = vrcp.f32 %v2855_v42  ;;  %v2827_v3 = vadd.f32 1.0, %v5347_v0  ;;  %v5349_v5 = vpop.eup %5348 }
0x1b76   :  { %5352 = vtanh.f32 %v2742_v62 }
0x1b77   :  { %5354 = vrcp.f32 %v2827_v3 }
0x1b82   :  { %v5351_v7 = vpop.eup %5350 }
0x1b83   :  { %v5353_v10 = vpop.eup %5352  ;;  %v2858_v11 = vsel %vm5823_vm6, %v5349_v5, %v5351_v7 }
0x1b84   :  { %v5355_v14 = vpop.eup %5354  ;;  %2864 = vrot.lane.b32.xlu0 %v2858_v11, %s5582_s13  ;;  %v2862_v20 = vmul.f32 %v2860_v1, %v2858_v11 }
0x1b85   :  { %v2830_v15 = vsel %vm5823_vm6, %v5353_v10, %v5355_v14 }
0x1b86   :  { %2836 = vrot.lane.b32.xlu1 %v2830_v15, %s5582_s13  ;;  %v2834_v25 = vmul.f32 %v2832_v19, %v2830_v15 }
0x1bf6   :  { %v2865_v22 = vpop.permute.xlu0 %2864 }
0x1bf7   :  { %v2867_v13 = vmul.f32 %v2865_v22, %v2858_v11 }
0x1bf8   :  { %v2837_v17 = vpop.permute.xlu1 %2836 }
0x1bf9   :  { %v2839_v18 = vmul.f32 %v2837_v17, %v2830_v15  ;;  %2869 = vrot.lane.b32.xlu0 %v2867_v13, %s5583_s16 }
0x1bfb   :  { %2841 = vrot.lane.b32.xlu1 %v2839_v18, %s5583_s16 }
0x1c6b   :  { %v2870_v21 = vpop.permute.xlu0 %2869 }
0x1c6c   :  { %v6358_v23 = vadd.f32 %v2870_v21, %v2862_v20 }
0x1c6d   :  { %v2842_v27 = vpop.permute.xlu1 %2841 }
0x1c6e   :  { %5356 = vtanh.f32 %v6358_v23  ;;  %v6361_v28 = vadd.f32 %v2842_v27, %v2834_v25  ;;  %v3076_v14 = vrot.slane %v6358_v23, 2 }
0x1c70   :  { %5358 = vtanh.f32 %v6361_v28 }
0x1c7b   :  { %v5357_v26 = vpop.eup %5356 }
0x1c7c   :  { %2875 = vrot.lane.b32.xlu0 %v5357_v26, %s5582_s13 }
0x1c7d   :  { %v5359_v34 = vpop.eup %5358 }
0x1c7e   :  { %2847 = vrot.lane.b32.xlu1 %v5359_v34, %s5582_s13 }
0x1cee   :  { %v2876_v12 = vpop.permute.xlu0 %2875 }
0x1cef   :  { %v6366_v4 = vmul.f32 %v2876_v12, %v2858_v11 }
0x1cf0   :  { %v2848_v36 = vpop.permute.xlu1 %2847 }
0x1cf1   :  { %v2960_v35 = vrot.slane %v6366_v4, 4  ;;  %v6369_v51 = vmul.f32 %v2848_v36, %v2830_v15  ;;  %v3048_v15 = vrot.slane %v6361_v28, 6 }
0x1cf3   :  { %v2880_v16 = vrot.slane %v6369_v51, 2  ;;  %2961 = vrot.lane.b32.xlu0 %v2960_v35, %s5583_s16  ;;  %v4164_v34 = vsel %vm2086_vm7, %v6319_v49, %v6369_v51 }
0x1cf5   :  { %2881 = vrot.lane.b32.xlu1 %v2880_v16, %s5583_s16 }
0x1d65   :  { %v2962_v57 = vpop.permute.xlu0 %2961 }
0x1d66   :  { %5052 = vmatmul.mubr.msk.f32.vlgmr.msra.gmra.mxu1 %vm209_vm3, %v2962_v57 }
0x1d67   :  { %v2882_v24 = vpop.permute.xlu1 %2881  ;;  %5066 = vmatpush3.msra.mxu1 %v6198_v56  ;;  %5073 = vmatprep.mubr.msk.f32.mxu1 %vm5581_vm2, %v5580_v30 }
0x1d68   :  { %5041 = vmatmul.mubr.msk.f32.vlgmr.msra.gmra.mxu0 %vm209_vm3, %v2882_v24  ;;  %5067 = vmatprep.subr.mxu1 %v5580_v30 }
0x1d69   :  { %5055 = vmatpush3.msra.mxu0 %v6234_v52  ;;  %5068 = vmatpush3.msra.mxu1 %v6205_v44 }
0x1d6a   :  { %5056 = vmatprep.subr.mxu0 %v5580_v30  ;;  %5069 = vmatprep.subr.mxu1 %v5580_v30 }
0x1d6b   :  { %5057 = vmatpush3.msra.mxu0 %v6243_v53  ;;  %5070 = vmatpush3.msra.mxu1 %v6214_v37 }
0x1d6c   :  { %5058 = vmatprep.subr.mxu0 %v5580_v30  ;;  %5071 = vmatprep.subr.mxu1 %v5580_v30 }
0x1d6d   :  { %5072 = vmatpush3.msra.mxu1 %v6224_v47  ;;  %5059 = vmatpush3.msra.mxu0 %v6252_v55 }
0x1d6e   :  { %5060 = vmatprep.subr.mxu0 %v5580_v30  ;;  %5062 = vmatprep.mubr.msk.f32.mxu0 %vm5581_vm2, %v5580_v30 }
0x1d6f   :  { %5061 = vmatpush3.msra.mxu0 %v6261_v58  ;;  %5087 = vmatprep.subr.mxu1 %v5580_v30 }
0x1d70   :  { %5076 = vmatprep.subr.mxu0 %v5580_v30 }
0x1e26   :  { %v3031_v43 = vpop.f32.mrf.mxu1 }
0x1e27   :  { %v3036_v54 = vrot.slane %v3031_v43, 6 }
0x1e28   :  { %v2951_v46 = vpop.f32.mrf.mxu0  ;;  %v5053_v48 = vpop.f32.mrf.mxu1 }
0x1e29   :  { %v3038_v59 = vadd.f32 %v3036_v54, %v6292_v6  ;;  %v2956_v60 = vrot.slane %v2951_v46, 4 }
0x1e2a   :  { %v5042_v39 = vpop.f32.mrf.mxu0 }
0x1e2b   :  { %v4459_v29 = vmul.f32 -1.442695, %v3038_v59  ;;  %v2958_v31 = vadd.f32 %v2956_v60, %v6297_v9 }
0x1e2d   :  { %5360 = vpow2.f32 %v4459_v29  ;;  %v4458_v45 = vmul.f32 -1.442695, %v2958_v31 }
0x1e2f   :  { %5362 = vpow2.f32 %v4458_v45 }
0x1e30   :  { %5364 = vtanh.f32 %v3038_v59 }
0x1e3a   :  { %v5361_v32 = vpop.eup %5360 }
0x1e3b   :  { %v3071_v33 = vadd.f32 1.0, %v5361_v32 }
0x1e3c   :  { %v5363_v40 = vpop.eup %5362 }
0x1e3d   :  { %5366 = vrcp.f32 %v3071_v33  ;;  %v3043_v61 = vadd.f32 1.0, %v5363_v40  ;;  %v5365_v62 = vpop.eup %5364 }
0x1e3e   :  { %5368 = vtanh.f32 %v2958_v31 }
0x1e3f   :  { %5370 = vrcp.f32 %v3043_v61 }
0x1e4a   :  { %v5367_v41 = vpop.eup %5366 }
0x1e4b   :  { %v5369_v63 = vpop.eup %5368  ;;  %v3074_v42 = vsel %vm5823_vm6, %v5365_v62, %v5367_v41 }
0x1e4c   :  { %v5371_v0 = vpop.eup %5370  ;;  %3080 = vrot.lane.b32.xlu0 %v3074_v42, %s5582_s13  ;;  %v3078_v22 = vmul.f32 %v3076_v14, %v3074_v42 }
0x1e4d   :  { %v3046_v3 = vsel %vm5823_vm6, %v5369_v63, %v5371_v0 }
0x1e4e   :  { %3052 = vrot.lane.b32.xlu1 %v3046_v3, %s5582_s13  ;;  %v3050_v18 = vmul.f32 %v3048_v15, %v3046_v3 }
0x1ebe   :  { %v3081_v5 = vpop.permute.xlu0 %3080 }
0x1ebf   :  { %v3083_v7 = vmul.f32 %v3081_v5, %v3074_v42 }
0x1ec0   :  { %v3053_v10 = vpop.permute.xlu1 %3052 }
0x1ec1   :  { %v3055_v11 = vmul.f32 %v3053_v10, %v3046_v3  ;;  %3085 = vrot.lane.b32.xlu0 %v3083_v7, %s5583_s16 }
0x1ec3   :  { %3057 = vrot.lane.b32.xlu1 %v3055_v11, %s5583_s16 }
0x1f33   :  { %v3086_v13 = vpop.permute.xlu0 %3085 }
0x1f34   :  { %v6408_v17 = vadd.f32 %v3086_v13, %v3078_v22 }
0x1f35   :  { %v3058_v1 = vpop.permute.xlu1 %3057 }
0x1f36   :  { %5372 = vtanh.f32 %v6408_v17  ;;  %v6411_v19 = vadd.f32 %v3058_v1, %v3050_v18 }
0x1f38   :  { %5374 = vtanh.f32 %v6411_v19  ;;  %v3261_v5 = vrot.slane %v6411_v19, 6 }
0x1f43   :  { %v5373_v20 = vpop.eup %5372 }
0x1f44   :  { %3091 = vrot.lane.b32.xlu0 %v5373_v20, %s5582_s13 }
0x1f45   :  { %v5375_v21 = vpop.eup %5374 }
0x1f46   :  { %3063 = vrot.lane.b32.xlu1 %v5375_v21, %s5582_s13 }
0x1fb6   :  { %v3092_v23 = vpop.permute.xlu0 %3091 }
0x1fb7   :  { %v6416_v25 = vmul.f32 %v3092_v23, %v3074_v42  ;;  %v3289_v42 = vrot.slane %v6408_v17, 2 }
0x1fb8   :  { %v3064_v27 = vpop.permute.xlu1 %3063 }
0x1fb9   :  { %v3176_v28 = vrot.slane %v6416_v25, 2  ;;  %v3066_v26 = vmul.f32 %v3064_v27, %v3046_v3 }
0x1fbb   :  { %v3096_v12 = vrot.slane %v3066_v26, 4  ;;  %v6423_v36 = vsel %vm2088_vm8, %v4164_v34, %v3066_v26  ;;  %3177 = vrot.lane.b32.xlu0 %v3176_v28, %s5583_s16 }
0x1fbd   :  { %3097 = vrot.lane.b32.xlu1 %v3096_v12, %s5583_s16 }
0x202d   :  { %v3178_v35 = vpop.permute.xlu0 %3177 }
0x202e   :  { %5074 = vmatmul.mubr.msk.f32.vlgmr.msra.gmra.mxu1 %vm209_vm3, %v3178_v35 }
0x202f   :  { %v3098_v16 = vpop.permute.xlu1 %3097  ;;  %5088 = vmatpush3.msra.mxu1 %v6198_v56  ;;  %5095 = vmatprep.mubr.msk.f32.mxu1 %vm5581_vm2, %v5580_v30 }
0x2030   :  { %5063 = vmatmul.mubr.msk.f32.vlgmr.msra.gmra.mxu0 %vm209_vm3, %v3098_v16  ;;  %5089 = vmatprep.subr.mxu1 %v5580_v30 }
0x2031   :  { %5090 = vmatpush3.msra.mxu1 %v6205_v44  ;;  %5077 = vmatpush3.msra.mxu0 %v6234_v52 }
0x2032   :  { %5091 = vmatprep.subr.mxu1 %v5580_v30  ;;  %5078 = vmatprep.subr.mxu0 %v5580_v30 }
0x2033   :  { %5092 = vmatpush3.msra.mxu1 %v6214_v37  ;;  %5079 = vmatpush3.msra.mxu0 %v6243_v53 }
0x2034   :  { %5093 = vmatprep.subr.mxu1 %v5580_v30  ;;  %5080 = vmatprep.subr.mxu0 %v5580_v30 }
0x2035   :  { %5094 = vmatpush3.msra.mxu1 %v6224_v47  ;;  %5081 = vmatpush3.msra.mxu0 %v6252_v55 }
0x2036   :  { %5082 = vmatprep.subr.mxu0 %v5580_v30  ;;  %5084 = vmatprep.mubr.msk.f32.mxu0 %vm5581_vm2, %v5580_v30 }
0x2037   :  { %5083 = vmatpush3.msra.mxu0 %v6261_v58  ;;  %5109 = vmatprep.subr.mxu1 %v5580_v30 }
0x2038   :  { %5098 = vmatprep.subr.mxu0 %v5580_v30 }
0x20ee   :  { %v3247_v49 = vpop.f32.mrf.mxu1 }
0x20ef   :  { %v3251_v51 = vadd.f32 %v3247_v49, %v6292_v6 }
0x20f0   :  { %v3167_v57 = vpop.f32.mrf.mxu0  ;;  %v5075_v24 = vpop.f32.mrf.mxu1 }
0x20f1   :  { %v4463_v43 = vmul.f32 -1.442695, %v3251_v51  ;;  %v3172_v54 = vrot.slane %v3167_v57, 2 }
0x20f2   :  { %v5064_v46 = vpop.f32.mrf.mxu0 }
0x20f3   :  { %5376 = vpow2.f32 %v4463_v43  ;;  %v3174_v48 = vadd.f32 %v3172_v54, %v6297_v9 }
0x20f5   :  { %v4462_v59 = vmul.f32 -1.442695, %v3174_v48 }
0x20f7   :  { %5378 = vpow2.f32 %v4462_v59 }
0x20f8   :  { %5380 = vtanh.f32 %v3251_v51 }
0x2100   :  { %v5377_v60 = vpop.eup %5376 }
0x2101   :  { %v3284_v39 = vadd.f32 1.0, %v5377_v60 }
0x2103   :  { %5382 = vrcp.f32 %v3284_v39 }
0x2104   :  { %v5379_v29 = vpop.eup %5378  ;;  %5384 = vtanh.f32 %v3174_v48 }
0x2105   :  { %v3256_v31 = vadd.f32 1.0, %v5379_v29  ;;  %v5381_v45 = vpop.eup %5380 }
0x2107   :  { %5386 = vrcp.f32 %v3256_v31 }
0x2110   :  { %v5383_v6 = vpop.eup %5382 }
0x2111   :  { %v3287_v32 = vsel %vm5823_vm6, %v5381_v45, %v5383_v6  ;;  %v5385_v33 = vpop.eup %5384 }
0x2112   :  { %3293 = vrot.lane.b32.xlu0 %v3287_v32, %s5582_s13  ;;  %v3291_v0 = vmul.f32 %v3289_v42, %v3287_v32 }
0x2114   :  { %v5387_v40 = vpop.eup %5386 }
0x2115   :  { %v3259_v9 = vsel %vm5823_vm6, %v5385_v33, %v5387_v40 }
0x2116   :  { %3265 = vrot.lane.b32.xlu1 %v3259_v9, %s5582_s13  ;;  %v3263_v10 = vmul.f32 %v3261_v5, %v3259_v9 }
0x2184   :  { %v3294_v61 = vpop.permute.xlu0 %3293 }
0x2185   :  { %v3296_v62 = vmul.f32 %v3294_v61, %v3287_v32 }
0x2187   :  { %3298 = vrot.lane.b32.xlu0 %v3296_v62, %s5583_s16 }
0x2188   :  { %v3266_v41 = vpop.permute.xlu1 %3265 }
0x2189   :  { %v3268_v63 = vmul.f32 %v3266_v41, %v3259_v9 }
0x218b   :  { %3270 = vrot.lane.b32.xlu1 %v3268_v63, %s5583_s16 }
0x21f9   :  { %v3299_v3 = vpop.permute.xlu0 %3298 }
0x21fa   :  { %v6461_v7 = vadd.f32 %v3299_v3, %v3291_v0 }
0x21fc   :  { %5388 = vtanh.f32 %v6461_v7 }
0x21fd   :  { %v3271_v11 = vpop.permute.xlu1 %3270 }
0x21fe   :  { %v6464_v14 = vadd.f32 %v3271_v11, %v3263_v10 }
0x2200   :  { %5390 = vtanh.f32 %v6464_v14 }
0x2209   :  { %v5389_v15 = vpop.eup %5388 }
0x220a   :  { %3304 = vrot.lane.b32.xlu0 %v5389_v15, %s5582_s13 }
0x220d   :  { %v5391_v22 = vpop.eup %5390 }
0x220e   :  { %3276 = vrot.lane.b32.xlu1 %v5391_v22, %s5582_s13 }
0x227c   :  { %v3305_v13 = vpop.permute.xlu0 %3304 }
0x227d   :  { %v6469_v17 = vmul.f32 %v3305_v13, %v3287_v32  ;;  %v3501_v32 = vrot.slane %v6461_v7, 2 }
0x227f   :  { %3386 = vrot.lane.b32.xlu0 %v6469_v17, %s5583_s16 }
0x2280   :  { %v3277_v18 = vpop.permute.xlu1 %3276 }
0x2281   :  { %v3279_v1 = vmul.f32 %v3277_v18, %v3259_v9  ;;  %v3473_v9 = vrot.slane %v6464_v14, 6 }
0x2283   :  { %v3309_v19 = vrot.slane %v3279_v1, 6  ;;  %v6475_v20 = vsel %vm2090_vm9, %v6423_v36, %v3279_v1 }
0x2285   :  { %3310 = vrot.lane.b32.xlu1 %v3309_v19, %s5583_s16 }
0x22f1   :  { %v3387_v21 = vpop.permute.xlu0 %3386 }
0x22f2   :  { %5096 = vmatmul.mubr.msk.f32.vlgmr.msra.gmra.mxu1 %vm209_vm3, %v3387_v21 }
0x22f3   :  { %5110 = vmatpush3.msra.mxu1 %v6198_v56  ;;  %5117 = vmatprep.mubr.msk.f32.mxu1 %vm5581_vm2, %v5580_v30 }
0x22f4   :  { %5111 = vmatprep.subr.mxu1 %v5580_v30 }
0x22f5   :  { %5112 = vmatpush3.msra.mxu1 %v6205_v44 }
0x22f6   :  { %5113 = vmatprep.subr.mxu1 %v5580_v30 }
0x22f7   :  { %v3311_v23 = vpop.permute.xlu1 %3310  ;;  %5114 = vmatpush3.msra.mxu1 %v6214_v37 }
0x22f8   :  { %5085 = vmatmul.mubr.msk.f32.vlgmr.msra.gmra.mxu0 %vm209_vm3, %v3311_v23  ;;  %5115 = vmatprep.subr.mxu1 %v5580_v30 }
0x22f9   :  { %5099 = vmatpush3.msra.mxu0 %v6234_v52  ;;  %5116 = vmatpush3.msra.mxu1 %v6224_v47 }
0x22fa   :  { %5100 = vmatprep.subr.mxu0 %v5580_v30  ;;  %5106 = vmatprep.mubr.msk.f32.mxu0 %vm5581_vm2, %v5580_v30 }
0x22fb   :  { %5101 = vmatpush3.msra.mxu0 %v6243_v53  ;;  %5131 = vmatprep.subr.mxu1 %v5580_v30 }
0x22fc   :  { %5102 = vmatprep.subr.mxu0 %v5580_v30 }
0x22fd   :  { %5103 = vmatpush3.msra.mxu0 %v6252_v55 }
0x22fe   :  { %5104 = vmatprep.subr.mxu0 %v5580_v30 }
0x22ff   :  { %5105 = vmatpush3.msra.mxu0 %v6261_v58 }
0x2300   :  { %5120 = vmatprep.subr.mxu0 %v5580_v30 }
0x23b2   :  { %v3456_v27 = vpop.f32.mrf.mxu1 }
0x23b3   :  { %v3461_v28 = vrot.slane %v3456_v27, 2 }
0x23b4   :  { %v5097_v26 = vpop.f32.mrf.mxu1 }
0x23b5   :  { %v3463_v34 = vadd.f32 %v3461_v28, %v6295_v8 }
0x23b7   :  { %v4467_v12 = vmul.f32 -1.442695, %v3463_v34 }
0x23b8   :  { %v3380_v36 = vpop.f32.mrf.mxu0 }
0x23b9   :  { %5392 = vpow2.f32 %v4467_v12  ;;  %v3384_v35 = vadd.f32 %v3380_v36, %v6287_v50 }
0x23ba   :  { %v5086_v16 = vpop.f32.mrf.mxu0 }
0x23bb   :  { %v4466_v49 = vmul.f32 -1.442695, %v3384_v35 }
0x23bd   :  { %5394 = vpow2.f32 %v4466_v49 }
0x23be   :  { %5396 = vtanh.f32 %v3463_v34 }
0x23c6   :  { %v5393_v51 = vpop.eup %5392 }
0x23c7   :  { %v3496_v57 = vadd.f32 1.0, %v5393_v51 }
0x23c9   :  { %5398 = vrcp.f32 %v3496_v57 }
0x23ca   :  { %v5395_v24 = vpop.eup %5394  ;;  %5400 = vtanh.f32 %v3384_v35 }
0x23cb   :  { %v3468_v43 = vadd.f32 1.0, %v5395_v24  ;;  %v5397_v54 = vpop.eup %5396 }
0x23cd   :  { %5402 = vrcp.f32 %v3468_v43 }
0x23d6   :  { %v5399_v46 = vpop.eup %5398 }
0x23d7   :  { %v3499_v48 = vsel %vm5823_vm6, %v5397_v54, %v5399_v46  ;;  %v5401_v59 = vpop.eup %5400 }
0x23d8   :  { %3505 = vrot.lane.b32.xlu0 %v3499_v48, %s5582_s13  ;;  %v3503_v33 = vmul.f32 %v3501_v32, %v3499_v48 }
0x23da   :  { %v5403_v60 = vpop.eup %5402 }
0x23db   :  { %v3471_v39 = vsel %vm5823_vm6, %v5401_v59, %v5403_v60 }
0x23dc   :  { %3477 = vrot.lane.b32.xlu1 %v3471_v39, %s5582_s13  ;;  %v3475_v62 = vmul.f32 %v3473_v9, %v3471_v39 }
0x244a   :  { %v3506_v29 = vpop.permute.xlu0 %3505 }
0x244b   :  { %v3508_v31 = vmul.f32 %v3506_v29, %v3499_v48 }
0x244d   :  { %3510 = vrot.lane.b32.xlu0 %v3508_v31, %s5583_s16 }
0x244e   :  { %v3478_v45 = vpop.permute.xlu1 %3477 }
0x244f   :  { %v3480_v6 = vmul.f32 %v3478_v45, %v3471_v39 }
0x2451   :  { %3482 = vrot.lane.b32.xlu1 %v3480_v6, %s5583_s16 }
0x24bf   :  { %v3511_v40 = vpop.permute.xlu0 %3510 }
0x24c0   :  { %v6512_v61 = vadd.f32 %v3511_v40, %v3503_v33 }
0x24c2   :  { %5404 = vtanh.f32 %v6512_v61  ;;  %v3716_v54 = vrot.slane %v6512_v61, 2 }
0x24c3   :  { %v3483_v41 = vpop.permute.xlu1 %3482 }
0x24c4   :  { %v6515_v63 = vadd.f32 %v3483_v41, %v3475_v62 }
0x24c6   :  { %5406 = vtanh.f32 %v6515_v63  ;;  %v3688_v46 = vrot.slane %v6515_v63, 6 }
0x24cf   :  { %v5405_v42 = vpop.eup %5404 }
0x24d0   :  { %3516 = vrot.lane.b32.xlu0 %v5405_v42, %s5582_s13  ;;  %v5460_v42 = vld [vmem:[%s6683_s5 + $0x78] sm:$0xff] }
0x24d3   :  { %v5407_v0 = vpop.eup %5406 }
0x24d4   :  { %3488 = vrot.lane.b32.xlu1 %v5407_v0, %s5582_s13  ;;  %v5461_v0 = vld [vmem:[%s6683_s5 + $0x70] sm:$0xff] }
0x2542   :  { %v3517_v3 = vpop.permute.xlu0 %3516 }
0x2543   :  { %v6520_v5 = vmul.f32 %v3517_v3, %v3499_v48  ;;  %v5462_v3 = vld [vmem:[%s6683_s5 + $0x68] sm:$0xff] }
0x2545   :  { %v3600_v7 = vrot.slane %v6520_v5, 6 }
0x2546   :  { %v3489_v10 = vpop.permute.xlu1 %3488 }
0x2547   :  { %v6523_v11 = vmul.f32 %v3489_v10, %v3471_v39  ;;  %3601 = vrot.lane.b32.xlu0 %v3600_v7, %s5583_s16 }
0x2549   :  { %3521 = vrot.lane.b32.xlu1 %v6523_v11, %s5583_s16 }
0x25b9   :  { %v3602_v14 = vpop.permute.xlu0 %3601 }
0x25ba   :  { %5118 = vmatmul.mubr.msk.f32.vlgmr.msra.gmra.mxu1 %vm209_vm3, %v3602_v14 }
0x25bb   :  { %v3522_v15 = vpop.permute.xlu1 %3521  ;;  %5132 = vmatpush3.msra.mxu1 %v6198_v56  ;;  %5139 = vmatprep.mubr.msk.f32.mxu1 %vm5581_vm2, %v5580_v30 }
0x25bc   :  { %5107 = vmatmul.mubr.msk.f32.vlgmr.msra.gmra.mxu0 %vm209_vm3, %v3522_v15  ;;  %5133 = vmatprep.subr.mxu1 %v5580_v30 }
0x25bd   :  { %5121 = vmatpush3.msra.mxu0 %v6234_v52  ;;  %5134 = vmatpush3.msra.mxu1 %v6205_v44 }
0x25be   :  { %5122 = vmatprep.subr.mxu0 %v5580_v30  ;;  %5135 = vmatprep.subr.mxu1 %v5580_v30 }
0x25bf   :  { %5123 = vmatpush3.msra.mxu0 %v6243_v53  ;;  %5136 = vmatpush3.msra.mxu1 %v6214_v37 }
0x25c0   :  { %5124 = vmatprep.subr.mxu0 %v5580_v30  ;;  %5137 = vmatprep.subr.mxu1 %v5580_v30 }
0x25c1   :  { %5138 = vmatpush3.msra.mxu1 %v6224_v47  ;;  %5125 = vmatpush3.msra.mxu0 %v6252_v55 }
0x25c2   :  { %5126 = vmatprep.subr.mxu0 %v5580_v30  ;;  %5128 = vmatprep.mubr.msk.f32.mxu0 %vm5581_vm2, %v5580_v30 }
0x25c3   :  { %5127 = vmatpush3.msra.mxu0 %v6261_v58  ;;  %5153 = vmatprep.subr.mxu1 %v5580_v30 }
0x25c4   :  { %5142 = vmatprep.subr.mxu0 %v5580_v30 }
0x267a   :  { %v3671_v56 = vpop.f32.mrf.mxu1 }
0x267b   :  { %v3676_v44 = vrot.slane %v3671_v56, 4 }
0x267c   :  { %v3591_v37 = vpop.f32.mrf.mxu0  ;;  %v5119_v22 = vpop.f32.mrf.mxu1 }
0x267d   :  { %v3678_v13 = vadd.f32 %v3676_v44, %v6295_v8  ;;  %v3596_v47 = vrot.slane %v3591_v37, 6 }
0x267e   :  { %v5108_v18 = vpop.f32.mrf.mxu0 }
0x267f   :  { %v4471_v1 = vmul.f32 -1.442695, %v3678_v13  ;;  %v3598_v19 = vadd.f32 %v3596_v47, %v6287_v50 }
0x2681   :  { %5408 = vpow2.f32 %v4471_v1  ;;  %v4470_v21 = vmul.f32 -1.442695, %v3598_v19 }
0x2683   :  { %5410 = vpow2.f32 %v4470_v21 }
0x2684   :  { %5412 = vtanh.f32 %v3678_v13 }
0x268e   :  { %v5409_v23 = vpop.eup %5408 }
0x268f   :  { %v3711_v27 = vadd.f32 1.0, %v5409_v23 }
0x2690   :  { %v5411_v28 = vpop.eup %5410 }
0x2691   :  { %5414 = vrcp.f32 %v3711_v27  ;;  %v3683_v26 = vadd.f32 1.0, %v5411_v28  ;;  %v5413_v34 = vpop.eup %5412 }
0x2692   :  { %5416 = vtanh.f32 %v3598_v19 }
0x2693   :  { %5418 = vrcp.f32 %v3683_v26 }
0x269e   :  { %v5415_v12 = vpop.eup %5414 }
0x269f   :  { %v5417_v36 = vpop.eup %5416  ;;  %v3714_v35 = vsel %vm5823_vm6, %v5413_v34, %v5415_v12 }
0x26a0   :  { %v5419_v16 = vpop.eup %5418  ;;  %3720 = vrot.lane.b32.xlu0 %v3714_v35, %s5582_s13  ;;  %v3718_v48 = vmul.f32 %v3716_v54, %v3714_v35 }
0x26a1   :  { %v3686_v49 = vsel %vm5823_vm6, %v5417_v36, %v5419_v16 }
0x26a2   :  { %3692 = vrot.lane.b32.xlu1 %v3686_v49, %s5582_s13  ;;  %v3690_v39 = vmul.f32 %v3688_v46, %v3686_v49 }
0x2712   :  { %v3721_v51 = vpop.permute.xlu0 %3720 }
0x2713   :  { %v3723_v57 = vmul.f32 %v3721_v51, %v3714_v35 }
0x2714   :  { %v3693_v24 = vpop.permute.xlu1 %3692 }
0x2715   :  { %v3695_v43 = vmul.f32 %v3693_v24, %v3686_v49  ;;  %3725 = vrot.lane.b32.xlu0 %v3723_v57, %s5583_s16 }
0x2717   :  { %3697 = vrot.lane.b32.xlu1 %v3695_v43, %s5583_s16 }
0x2787   :  { %v3726_v59 = vpop.permute.xlu0 %3725 }
0x2788   :  { %v6562_v60 = vadd.f32 %v3726_v59, %v3718_v48 }
0x2789   :  { %v3698_v29 = vpop.permute.xlu1 %3697 }
0x278a   :  { %5420 = vtanh.f32 %v6562_v60  ;;  %v6565_v31 = vadd.f32 %v3698_v29, %v3690_v39  ;;  %v3932_v36 = vrot.slane %v6562_v60, 2 }
0x278c   :  { %5422 = vtanh.f32 %v6565_v31 }
0x2797   :  { %v5421_v45 = vpop.eup %5420 }
0x2798   :  { %3731 = vrot.lane.b32.xlu0 %v5421_v45, %s5582_s13 }
0x2799   :  { %v5423_v6 = vpop.eup %5422 }
0x279a   :  { %3703 = vrot.lane.b32.xlu1 %v5423_v6, %s5582_s13 }
0x280a   :  { %v3732_v32 = vpop.permute.xlu0 %3731 }
0x280b   :  { %v6570_v33 = vmul.f32 %v3732_v32, %v3714_v35  ;;  %v3904_v35 = vrot.slane %v6565_v31, 6 }
0x280c   :  { %v3704_v40 = vpop.permute.xlu1 %3703 }
0x280d   :  { %v3816_v9 = vrot.slane %v6570_v33, 4  ;;  %v6573_v61 = vmul.f32 %v3704_v40, %v3686_v49 }
0x280f   :  { %v3736_v62 = vrot.slane %v6573_v61, 2  ;;  %3817 = vrot.lane.b32.xlu0 %v3816_v9, %s5583_s16  ;;  %v4167_v31 = vsel %vm2086_vm7, %v6523_v11, %v6573_v61 }
0x2811   :  { %3737 = vrot.lane.b32.xlu1 %v3736_v62, %s5583_s16 }
0x2881   :  { %v3818_v41 = vpop.permute.xlu0 %3817 }
0x2882   :  { %5140 = vmatmul.mubr.msk.f32.vlgmr.msra.gmra.mxu1 %vm209_vm3, %v3818_v41 }
0x2883   :  { %v3738_v63 = vpop.permute.xlu1 %3737  ;;  %5154 = vmatpush3.msra.mxu1 %v5460_v42  ;;  %5161 = vmatprep.mubr.msk.f32.mxu1 %vm5581_vm2, %v5580_v30 }
0x2884   :  { %5129 = vmatmul.mubr.msk.f32.vlgmr.msra.gmra.mxu0 %vm209_vm3, %v3738_v63  ;;  %5155 = vmatprep.subr.mxu1 %v5580_v30 }
0x2885   :  { %5143 = vmatpush3.msra.mxu0 %v6234_v52  ;;  %5156 = vmatpush3.msra.mxu1 %v5461_v0  ;;  %v5463_v52 = vld [vmem:[%s6683_s5 + $0x60] sm:$0xff] }
0x2886   :  { %5144 = vmatprep.subr.mxu0 %v5580_v30  ;;  %5157 = vmatprep.subr.mxu1 %v5580_v30 }
0x2887   :  { %5145 = vmatpush3.msra.mxu0 %v6243_v53  ;;  %5158 = vmatpush3.msra.mxu1 %v5462_v3 }
0x2888   :  { %5146 = vmatprep.subr.mxu0 %v5580_v30  ;;  %5159 = vmatprep.subr.mxu1 %v5580_v30 }
0x2889   :  { %5160 = vmatpush3.msra.mxu1 %v5463_v52  ;;  %5147 = vmatpush3.msra.mxu0 %v6252_v55 }
0x288a   :  { %5148 = vmatprep.subr.mxu0 %v5580_v30  ;;  %5150 = vmatprep.mubr.msk.f32.mxu0 %vm5581_vm2, %v5580_v30 }
0x288b   :  { %5149 = vmatpush3.msra.mxu0 %v6261_v58 }
0x2942   :  { %v3887_v53 = vpop.f32.mrf.mxu1 }
0x2943   :  { %v3892_v7 = vrot.slane %v3887_v53, 6 }
0x2944   :  { %v3807_v10 = vpop.f32.mrf.mxu0  ;;  %v5141_v14 = vpop.f32.mrf.mxu1 }
0x2945   :  { %v3894_v15 = vadd.f32 %v3892_v7, %v6295_v8  ;;  %v3812_v56 = vrot.slane %v3807_v10, 4 }
0x2946   :  { %v5130_v44 = vpop.f32.mrf.mxu0 }
0x2947   :  { %v4475_v37 = vmul.f32 -1.442695, %v3894_v15  ;;  %v3814_v22 = vadd.f32 %v3812_v56, %v6287_v50 }
0x2949   :  { %5424 = vpow2.f32 %v4475_v37  ;;  %v4474_v55 = vmul.f32 -1.442695, %v3814_v22 }
0x294b   :  { %5426 = vpow2.f32 %v4474_v55 }
0x294c   :  { %5428 = vtanh.f32 %v3894_v15 }
0x2956   :  { %v5425_v13 = vpop.eup %5424 }
0x2957   :  { %v3927_v47 = vadd.f32 1.0, %v5425_v13 }
0x2958   :  { %v5427_v18 = vpop.eup %5426 }
0x2959   :  { %5430 = vrcp.f32 %v3927_v47  ;;  %v3899_v30 = vadd.f32 1.0, %v5427_v18  ;;  %v5429_v58 = vpop.eup %5428 }
0x295a   :  { %5432 = vtanh.f32 %v3814_v22 }
0x295b   :  { %5434 = vrcp.f32 %v3899_v30 }
0x2966   :  { %v5431_v1 = vpop.eup %5430 }
0x2967   :  { %v5433_v19 = vpop.eup %5432  ;;  %v3930_v21 = vsel %vm5823_vm6, %v5429_v58, %v5431_v1 }
0x2968   :  { %v5435_v23 = vpop.eup %5434  ;;  %3936 = vrot.lane.b32.xlu0 %v3930_v21, %s5582_s13  ;;  %v3934_v16 = vmul.f32 %v3932_v36, %v3930_v21 }
0x2969   :  { %v3902_v27 = vsel %vm5823_vm6, %v5433_v19, %v5435_v23  ;;  %v4179_v23 = vld [vmem:[#allocation8 + $0x18] sm:$0xff] }
0x296a   :  { %3908 = vrot.lane.b32.xlu1 %v3902_v27, %s5582_s13  ;;  %v3906_v57 = vmul.f32 %v3904_v35, %v3902_v27  ;;  %5175 = vmatprep.subr.mxu1 %v4179_v23  ;;  %v4182_v35 = vld [vmem:[#allocation8 + $0x28] sm:$0xff] }
0x29da   :  { %v3937_v28 = vpop.permute.xlu0 %3936 }
0x29db   :  { %v3939_v26 = vmul.f32 %v3937_v28, %v3930_v21  ;;  %v4178_v28 = vld [vmem:[#allocation8 + $0x10] sm:$0xff] }
0x29dc   :  { %v3909_v34 = vpop.permute.xlu1 %3908 }
0x29dd   :  { %v3911_v12 = vmul.f32 %v3909_v34, %v3902_v27  ;;  %3941 = vrot.lane.b32.xlu0 %v3939_v26, %s5583_s16  ;;  %v4183_v26 = vld [vmem:[#allocation8 + $0x30] sm:$0xff]  ;;  %v4177_v34 = vld [vmem:[#allocation8 + $0x8] sm:$0xff] }
0x29df   :  { %3913 = vrot.lane.b32.xlu1 %v3911_v12, %s5583_s16 }
0x2a4f   :  { %v3942_v49 = vpop.permute.xlu0 %3941 }
0x2a50   :  { %v3944_v51 = vadd.f32 %v3942_v49, %v3934_v16  ;;  %v4176_v16 = vld [vmem:[#allocation8] sm:$0xff] }
0x2a51   :  { %v3914_v24 = vpop.permute.xlu1 %3913  ;;  %v4181_v49 = vld [vmem:[#allocation8 + $0x20] sm:$0xff] }
0x2a52   :  { %5436 = vtanh.f32 %v3944_v51  ;;  %v3916_v43 = vadd.f32 %v3914_v24, %v3906_v57  ;;  %v4145_v47 = vrot.slane %v3944_v51, 2  ;;  %v4173_v24 = vsel %vm2086_vm7, %v6469_v17, %v6416_v25 }
0x2a54   :  { %5438 = vtanh.f32 %v3916_v43  ;;  %v4117_v58 = vrot.slane %v3916_v43, 6 }
0x2a5f   :  { %v5437_v54 = vpop.eup %5436 }
0x2a60   :  { %3947 = vrot.lane.b32.xlu0 %v5437_v54, %s5582_s13 }
0x2a61   :  { %v5439_v46 = vpop.eup %5438 }
0x2a62   :  { %3919 = vrot.lane.b32.xlu1 %v5439_v46, %s5582_s13 }
0x2ad2   :  { %v3948_v48 = vpop.permute.xlu0 %3947 }
0x2ad3   :  { %v6620_v59 = vmul.f32 %v3948_v48, %v3930_v21 }
0x2ad4   :  { %v3920_v60 = vpop.permute.xlu1 %3919 }
0x2ad5   :  { %v4032_v39 = vrot.slane %v6620_v59, 2  ;;  %v3922_v29 = vmul.f32 %v3920_v60, %v3902_v27  ;;  %v4184_v27 = vld [vmem:[#allocation8 + $0x38] sm:$0xff]  ;;  %v4174_v60 = vsel %vm2088_vm8, %v4173_v24, %v6366_v4 }
0x2ad6   :  { %5164 = vmatprep.subr.mxu0 %v4184_v27  ;;  %v4175_v17 = vsel %vm2090_vm9, %v4174_v60, %v6316_v38 }
0x2ad7   :  { %v3952_v45 = vrot.slane %v3922_v29, 4  ;;  %v6627_v6 = vsel %vm2088_vm8, %v4167_v31, %v3922_v29  ;;  %4033 = vrot.lane.b32.xlu0 %v4032_v39, %s5583_s16  ;;  %v4484_v31 = vld [vmem:[%s6686_s8] ss:$0 sm:$0xff] }
0x2ad9   :  { %3953 = vrot.lane.b32.xlu1 %v3952_v45, %s5583_s16 }
0x2b49   :  { %v4034_v32 = vpop.permute.xlu0 %4033 }
0x2b4a   :  { %5162 = vmatmul.mubr.msk.f32.vlgmr.msra.gmra.mxu1 %vm209_vm3, %v4034_v32 }
0x2b4b   :  { %v3954_v40 = vpop.permute.xlu1 %3953  ;;  %5176 = vmatpush3.msra.mxu1 %v4179_v23 }
0x2b4c   :  { %5151 = vmatmul.mubr.msk.f32.vlgmr.msra.gmra.mxu0 %vm209_vm3, %v3954_v40  ;;  %5177 = vmatprep.subr.mxu1 %v4178_v28 }
0x2b4d   :  { %5165 = vmatpush3.msra.mxu0 %v4184_v27  ;;  %5178 = vmatpush3.msra.mxu1 %v4178_v28 }
0x2b4e   :  { %5166 = vmatprep.subr.mxu0 %v4183_v26  ;;  %5179 = vmatprep.subr.mxu1 %v4177_v34 }
0x2b4f   :  { %5167 = vmatpush3.msra.mxu0 %v4183_v26  ;;  %5180 = vmatpush3.msra.mxu1 %v4177_v34 }
0x2b50   :  { %5168 = vmatprep.subr.mxu0 %v4182_v35  ;;  %5181 = vmatprep.subr.mxu1 %v4176_v16 }
0x2b51   :  { %5169 = vmatpush3.msra.mxu0 %v4182_v35  ;;  %5182 = vmatpush3.msra.mxu1 %v4176_v16 }
0x2b52   :  { %5170 = vmatprep.subr.mxu0 %v4181_v49 }
0x2b53   :  { %5171 = vmatpush3.msra.mxu0 %v4181_v49 }
0x2c0a   :  { %v4103_v9 = vpop.f32.mrf.mxu1 }
0x2c0b   :  { %v4107_v62 = vadd.f32 %v4103_v9, %v6295_v8 }
0x2c0c   :  { %v4023_v41 = vpop.f32.mrf.mxu0  ;;  %v5163_v63 = vpop.f32.mrf.mxu1 }
0x2c0d   :  { %v4479_v11 = vmul.f32 -1.442695, %v4107_v62  ;;  %v4028_v61 = vrot.slane %v4023_v41, 2 }
0x2c0e   :  { %v5152_v42 = vpop.f32.mrf.mxu0 }
0x2c0f   :  { %5440 = vpow2.f32 %v4479_v11  ;;  %v4030_v0 = vadd.f32 %v4028_v61, %v6287_v50 }
0x2c11   :  { %v4478_v3 = vmul.f32 -1.442695, %v4030_v0 }
0x2c13   :  { %5442 = vpow2.f32 %v4478_v3 }
0x2c14   :  { %5444 = vtanh.f32 %v4107_v62 }
0x2c1c   :  { %v5441_v52 = vpop.eup %5440 }
0x2c1d   :  { %v4140_v53 = vadd.f32 1.0, %v5441_v52 }
0x2c1f   :  { %5446 = vrcp.f32 %v4140_v53 }
0x2c20   :  { %v5443_v7 = vpop.eup %5442  ;;  %5448 = vtanh.f32 %v4030_v0 }
0x2c21   :  { %v4112_v10 = vadd.f32 1.0, %v5443_v7  ;;  %v5445_v14 = vpop.eup %5444 }
0x2c23   :  { %5450 = vrcp.f32 %v4112_v10 }
0x2c2c   :  { %v5447_v8 = vpop.eup %5446 }
0x2c2d   :  { %v4143_v15 = vsel %vm5823_vm6, %v5445_v14, %v5447_v8  ;;  %v5449_v56 = vpop.eup %5448 }
0x2c2e   :  { %4149 = vrot.lane.b32.xlu0 %v4143_v15, %s5582_s13  ;;  %v4147_v18 = vmul.f32 %v4145_v47, %v4143_v15 }
0x2c30   :  { %v5451_v44 = vpop.eup %5450 }
0x2c31   :  { %v4115_v50 = vsel %vm5823_vm6, %v5449_v56, %v5451_v44 }
0x2c32   :  { %4121 = vrot.lane.b32.xlu1 %v4115_v50, %s5582_s13  ;;  %v4119_v19 = vmul.f32 %v4117_v58, %v4115_v50 }
0x2ca0   :  { %v4150_v37 = vpop.permute.xlu0 %4149 }
0x2ca1   :  { %v4152_v22 = vmul.f32 %v4150_v37, %v4143_v15 }
0x2ca3   :  { %4154 = vrot.lane.b32.xlu0 %v4152_v22, %s5583_s16 }
0x2ca4   :  { %v4122_v55 = vpop.permute.xlu1 %4121 }
0x2ca5   :  { %v4124_v13 = vmul.f32 %v4122_v55, %v4115_v50 }
0x2ca7   :  { %4126 = vrot.lane.b32.xlu1 %v4124_v13, %s5583_s16 }
0x2d15   :  { %v4155_v30 = vpop.permute.xlu0 %4154 }
0x2d16   :  { %v4157_v1 = vadd.f32 %v4155_v30, %v4147_v18 }
0x2d18   :  { %5452 = vtanh.f32 %v4157_v1 }
0x2d19   :  { %v4127_v21 = vpop.permute.xlu1 %4126 }
0x2d1a   :  { %v4129_v2 = vadd.f32 %v4127_v21, %v4119_v19 }
0x2d1c   :  { %5454 = vtanh.f32 %v4129_v2 }
0x2d25   :  { %v5453_v12 = vpop.eup %5452 }
0x2d26   :  { %4160 = vrot.lane.b32.xlu0 %v5453_v12, %s5582_s13 }
0x2d29   :  { %v5455_v36 = vpop.eup %5454 }
0x2d2a   :  { %4132 = vrot.lane.b32.xlu1 %v5455_v36, %s5582_s13 }
0x2d2e   :  { %4272 = vrot.lane.b32.xlu1 %v6475_v20, %s5583_s16 }
0x2d98   :  { %v4161_v51 = vpop.permute.xlu0 %4160 }
0x2d99   :  { %v4163_v57 = vmul.f32 %v4161_v51, %v4143_v15 }
0x2d9b   :  { %v4170_v43 = vsel %vm2086_vm7, %v4163_v57, %v6620_v59 }
0x2d9c   :  { %v4133_v54 = vpop.permute.xlu1 %4132  ;;  %v4171_v20 = vsel %vm2088_vm8, %v4170_v43, %v6570_v33 }
0x2d9d   :  { %v4135_v46 = vmul.f32 %v4133_v54, %v4115_v50  ;;  %v4172_v48 = vsel %vm2090_vm9, %v4171_v20, %v6520_v5 }
0x2d9e   :  { %4187 = vrot.lane.b32.xlu0 %v4172_v48, %s5583_s16 }
0x2d9f   :  { %v4169_v39 = vsel %vm2090_vm9, %v6627_v6, %v4135_v46 }
0x2da0   :  { %4274 = vrot.lane.b32.xlu1 %v4169_v39, %s5583_s16  ;;  %v4273_v25 = vpop.permute.xlu1 %4272 }
0x2da1   :  { %5183 = vmatprep.mubr.msk.f32.mxu1 %vm209_vm3, %v4273_v25 }
0x2da2   :  { %4189 = vrot.lane.b32.xlu0 %v4175_v17, %s5583_s16  ;;  %s4371_s16 = sshll.u32 %s5584_s26, 4  ;;  %s4372_s16 = int_to_ptr.vmem [resolvable:$true] %s4371_s16 }
0x2da3   :  { %s5544_s2 = scalar_lea.vmem %s4372_s16, 256  ;;  %p5549_p7 = scmp.lt.s32.totalorder %s4372_s16, %s4372_s16 }
0x2da4   :  { %p5545_p6 = scmp.ne.s32.totalorder %s4372_s16, %s5544_s2  ;;  %p5550_p8 = scmp.lt.s32.totalorder %s5544_s2, %s5544_s2 }
0x2da6   :  { %p5551_p9 = por %p5550_p8, %p5549_p7 }
0x2da8   :  { %p5552_p10 = pnand %p5551_p9, %p5545_p6 }
0x2e10   :  { %v4188_v33 = vpop.permute.xlu0 %4187 }
0x2e11   :  { %5172 = vmatprep.mubr.msk.f32.mxu0 %vm209_vm3, %v4188_v33 }
0x2e12   :  { %v4275_v5 = vpop.permute.xlu1 %4274 }
0x2e13   :  { %5184 = vmatmul.mubr.msk.f32.vlgmr.msra.gmra.mxu1 %vm209_vm3, %v4275_v5 }
0x2e14   :  { %v4190_v4 = vpop.permute.xlu0 %4189 }
0x2e15   :  { %5173 = vmatmul.mubr.msk.f32.vlgmr.msra.gmra.mxu0 %vm209_vm3, %v4190_v4 }
0x2ed3   :  { %v5185_v59 = vpop.f32.mrf.mxu1 }
0x2ed5   :  { %v5174_v29 = vpop.f32.mrf.mxu0  ;;  %v4346_v6 = vpop.f32.mrf.mxu1 }
0x2ed6   :  { %v4352_v45 = vadd.f32 %v5185_v59, %v5174_v29 }
0x2ed7   :  { %v4261_v38 = vpop.f32.mrf.mxu0 }
0x2ed8   :  { %v4363_v32 = vadd.f32 %v4484_v31, %v4352_v45  ;;  %v4347_v40 = vadd.f32 %v4346_v6, %v4261_v38 }
0x2eda   :  { %4365 = vst [vmem:[#allocation10 + $0x8] sm:$0xff] %v4363_v32  ;;  %v4362_v9 = vadd.f32 %v4484_v31, %v4347_v40 }
0x2edc   :  { %4364 = vst [vmem:[#allocation10] sm:$0xff] %v4362_v9 }
0x2edd   :  { %5555 = shalt.err (!%p5552_p10)
}
0x2ede   :  { %4377 = dma.vmem_to_hbm [thread:$0]  %s4372_s16, 256, %s6687_s9, [#allocation4], %s5574_s14, %s5574_s14, %s5575_s15  }
0x2edf   :  { %5570 = dma.done.wait [#allocation4], 256  }
0x2ee0   :  { %5571 = vsyncadd [#allocation4], 4294967040 }
0x2ee1   :  { %4381 = vsyncpa [#allocation3], 1 }
0x2ee2   :  { %4382 = vsyncpa [#allocation6], 1 }
0x2ee3   :  { %4383 = vsyncpa [#allocation9], 1 }
0x2ee4   :  { %4384 = vsyncpa [#allocation4], 1 }

</bundles_post_ra>
